<compile_context>
chip_gen: v7x
topology: tpu7x:2x2x1
jax: 0.10.0
libtpu: 0.0.40
codegen_flags: <defaults>
</compile_context>

<pallas_src>
import functools

import jax
import jax.numpy as jnp
import numpy as np
from jax.experimental import pallas as pl
from jax.experimental.pallas import tpu as pltpu


# ---------------------------------------------------------------------------
# Kernel A: M-tiled matmul (+ optional bias, optional LeakyReLU).  Used for
# the two conv layers without InstanceNorm (conv1, conv5).
# ---------------------------------------------------------------------------
def _matmul_bias_act_kernel(x_ref, w_ref, *rest, slope, activate, has_bias):
    if has_bias:
        b_ref, o_ref = rest
    else:
        (o_ref,) = rest
    # bf16 x bf16 -> f32 accumulation on the MXU.
    acc = jnp.dot(x_ref[...], w_ref[...], preferred_element_type=jnp.float32)
    if has_bias:
        acc = acc + b_ref[...]                      # (1, N) f32, grid-resident
    if activate:
        acc = jnp.where(acc >= 0, acc, slope * acc)  # LeakyReLU in f32
    o_ref[...] = acc.astype(o_ref.dtype)


def _pick_row_tile(m, target=512):
    """Largest multiple of 8 that divides m and is <= target, else m itself."""
    if m <= target:
        return m
    t = min(target, m)
    t -= t % 8
    for cand in range(t, 7, -8):
        if m % cand == 0:
            return cand
    return m


def pallas_matmul_bias_act(x, w, b=None, *, slope=0.2, activate=True,
                           out_dtype=jnp.float32, row_tile=512):
    """x: (M, K) bf16, w: (K, N) bf16, b: (1, N) f32 or None -> (M, N)."""
    M, K = x.shape
    N = w.shape[1]
    tm = _pick_row_tile(M, row_tile)
    has_bias = b is not None
    kernel = functools.partial(_matmul_bias_act_kernel, slope=slope,
                               activate=activate, has_bias=has_bias)
    in_specs = [
        pl.BlockSpec((tm, K), lambda i: (i, 0)),    # patch-row tile (pipelined)
        pl.BlockSpec((K, N), lambda i: (0, 0)),     # weights: resident
    ]
    operands = [x, w]
    if has_bias:
        in_specs.append(pl.BlockSpec((1, N), lambda i: (0, 0)))  # bias: resident
        operands.append(b)
    bytes_accessed = int(x.size * x.dtype.itemsize
                         + w.size * w.dtype.itemsize
                         + (b.size * b.dtype.itemsize if has_bias else 0)
                         + M * N * np.dtype(out_dtype).itemsize)
    return pl.pallas_call(
        kernel,
        out_shape=jax.ShapeDtypeStruct((M, N), out_dtype),
        grid=(M // tm,),
        in_specs=in_specs,
        out_specs=pl.BlockSpec((tm, N), lambda i: (i, 0)),
        compiler_params=pltpu.CompilerParams(dimension_semantics=("parallel",)),
        cost_estimate=pl.CostEstimate(flops=2 * M * K * N, transcendentals=0,
                                      bytes_accessed=bytes_accessed),
    )(*operands)


# ---------------------------------------------------------------------------
# Kernel B: fused conv-matmul + InstanceNorm + LeakyReLU, one image per grid
# step, in the natural (OH*OW, Cout) layout (no transposes).
# ---------------------------------------------------------------------------
def _conv_inorm_lrelu_kernel(x_ref, w_ref, o_ref, *, eps, slope, activate):
    y = jnp.dot(x_ref[...], w_ref[...], preferred_element_type=jnp.float32)
    mean = jnp.mean(y, axis=0, keepdims=True)                  # per channel
    var = jnp.mean(jnp.square(y - mean), axis=0, keepdims=True)  # biased var
    y = (y - mean) * jax.lax.rsqrt(var + eps)
    if activate:           # identity (not ReLU) when activate=False
        y = jnp.where(y >= 0, y, slope * y)
    o_ref[...] = y.astype(o_ref.dtype)


def pallas_conv_inorm_lrelu(patches3, w, *, eps=1e-5, slope=0.2, activate=True,
                            out_dtype=jnp.bfloat16):
    """patches3: (N, OH*OW, K) bf16, w: (K, Cout) bf16 -> (N, OH*OW, Cout)."""
    n, ohw, K = patches3.shape
    cout = w.shape[1]
    kernel = functools.partial(_conv_inorm_lrelu_kernel, eps=eps, slope=slope,
                               activate=activate)
    bytes_accessed = int(patches3.size * patches3.dtype.itemsize
                         + w.size * w.dtype.itemsize
                         + n * ohw * cout * np.dtype(out_dtype).itemsize)
    return pl.pallas_call(
        kernel,
        out_shape=jax.ShapeDtypeStruct((n, ohw, cout), out_dtype),
        grid=(n,),
        in_specs=[
            pl.BlockSpec((None, ohw, K), lambda i: (i, 0, 0)),   # one image
            pl.BlockSpec((K, cout), lambda i: (0, 0)),           # weights resident
        ],
        out_specs=pl.BlockSpec((None, ohw, cout), lambda i: (i, 0, 0)),
        compiler_params=pltpu.CompilerParams(dimension_semantics=("parallel",)),
        cost_estimate=pl.CostEstimate(flops=2 * n * ohw * K * cout,
                                      transcendentals=n * cout,
                                      bytes_accessed=bytes_accessed),
    )(patches3, w)


# ---------------------------------------------------------------------------
# Glue: im2col patch extraction (plain XLA data movement, bf16 in / bf16 out)
# ---------------------------------------------------------------------------
def im2col(x_nhwc, kh, kw, stride, pad):
    x = jnp.pad(x_nhwc, ((0, 0), (pad, pad), (pad, pad), (0, 0)))
    n, hp, wp, c = x.shape
    oh = (hp - kh) // stride + 1
    ow = (wp - kw) // stride + 1
    pieces = []
    for i in range(kh):
        for j in range(kw):
            pieces.append(x[:, i:i + stride * oh:stride, j:j + stride * ow:stride, :])
    p = jnp.stack(pieces, axis=3)                  # (N, OH, OW, KH*KW, C)
    return p.reshape(n, oh * ow, kh * kw * c), oh, ow


def conv_block(x_nhwc, w_oihw, bias, *, stride, pad, normalize, activate,
               slope=0.2, out_dtype=jnp.float32):
    """One `conv_general` block.  x in NHWC, weight in PyTorch OIHW layout."""
    n = x_nhwc.shape[0]
    cout, cin, kh, kw = w_oihw.shape
    k = kh * kw * cin
    patches, oh, ow = im2col(x_nhwc.astype(jnp.bfloat16), kh, kw, stride, pad)
    wmat = (jnp.transpose(w_oihw, (2, 3, 1, 0))
            .reshape(k, cout).astype(jnp.bfloat16))

    if normalize:
        # conv -> InstanceNorm -> LeakyReLU fused in a single kernel per image.
        y = pallas_conv_inorm_lrelu(patches, wmat, eps=1e-5, slope=slope,
                                    activate=activate, out_dtype=out_dtype)
        return y.reshape(n, oh, ow, cout)

    # No-norm path: flatten batch into M and tile over M.
    pf = patches.reshape(n * oh * ow, k)
    coutp = cout
    if cout < 8:                 # 1-channel head: pad lanes to 128 (dense vst)
        coutp = 128
        wmat = jnp.pad(wmat, ((0, 0), (0, coutp - cout)))
    bvec = None
    if bias is not None:
        bvec = jnp.pad(bias.astype(jnp.float32).reshape(1, cout),
                       ((0, 0), (0, coutp - cout)))
    y = pallas_matmul_bias_act(pf, wmat, bvec, slope=slope, activate=activate,
                               out_dtype=out_dtype)
    return y[:, :cout].reshape(n, oh, ow, cout)


# ---------------------------------------------------------------------------
# Discriminator
# ---------------------------------------------------------------------------
def init_params(key, channels=8):
    def w_init(kk, shape):
        fan_in = shape[1] * shape[2] * shape[3]
        return (jax.random.normal(kk, shape, jnp.float32) / np.sqrt(fan_in)
                ).astype(jnp.float32)

    ks = jax.random.split(key, 6)
    c = channels
    return {
        "w1": w_init(ks[0], (c, 3, 4, 4)),
        "w2": w_init(ks[1], (2 * c, c, 4, 4)),
        "w3": w_init(ks[2], (4 * c, 2 * c, 4, 4)),
        "w4": w_init(ks[3], (8 * c, 4 * c, 4, 4)),
        "w5": w_init(ks[4], (1, 8 * c, 4, 4)),
        "b5": (0.01 * jax.random.normal(ks[5], (1,), jnp.float32)).astype(jnp.float32),
    }


def discriminator_forward(params, x_nchw):
    x = jnp.transpose(x_nchw, (0, 2, 3, 1))   # NCHW -> NHWC (once)
    x = conv_block(x, params["w1"], None, stride=2, pad=1, normalize=False,
                   activate=True, out_dtype=jnp.bfloat16)
    x = conv_block(x, params["w2"], None, stride=2, pad=1, normalize=True,
                   activate=True, out_dtype=jnp.bfloat16)
    x = conv_block(x, params["w3"], None, stride=2, pad=1, normalize=True,
                   activate=True, out_dtype=jnp.bfloat16)
    x = conv_block(x, params["w4"], None, stride=1, pad=1, normalize=True,
                   activate=True, out_dtype=jnp.bfloat16)
    x = conv_block(x, params["w5"], params["b5"], stride=1, pad=1,
                   normalize=False, activate=False, out_dtype=jnp.float32)
    return jnp.transpose(x, (0, 3, 1, 2)).astype(jnp.float32)   # NHWC -> NCHW


# ---------------------------------------------------------------------------
# Pure-JAX reference (same bf16-in / f32-accumulate numerics, for checking)
# ---------------------------------------------------------------------------
def _ref_conv(x_nhwc, w_oihw, b, stride, pad):
    w_hwio = jnp.transpose(w_oihw, (2, 3, 1, 0)).astype(jnp.bfloat16)
    y = jax.lax.conv_general_dilated(
        x_nhwc.astype(jnp.bfloat16), w_hwio, (stride, stride),
        [(pad, pad), (pad, pad)],
        dimension_numbers=("NHWC", "HWIO", "NHWC"),
        preferred_element_type=jnp.float32)
    if b is not None:
        y = y + b.astype(jnp.float32)
    return y


def _ref_inorm(x, eps=1e-5):
    m = jnp.mean(x, axis=(1, 2), keepdims=True)
    v = jnp.mean(jnp.square(x - m), axis=(1, 2), keepdims=True)
    return (x - m) * jax.lax.rsqrt(v + eps)


def _lrelu(x, s=0.2):
    return jnp.where(x >= 0, x, s * x)


def reference_forward(params, x_nchw):
    x = jnp.transpose(x_nchw, (0, 2, 3, 1))
    x = _lrelu(_ref_conv(x, params["w1"], None, 2, 1)).astype(jnp.bfloat16)
    x = _lrelu(_ref_inorm(_ref_conv(x, params["w2"], None, 2, 1))).astype(jnp.bfloat16)
    x = _lrelu(_ref_inorm(_ref_conv(x, params["w3"], None, 2, 1))).astype(jnp.bfloat16)
    x = _lrelu(_ref_inorm(_ref_conv(x, params["w4"], None, 1, 1))).astype(jnp.bfloat16)
    x = _ref_conv(x, params["w5"], params["b5"], 1, 1)
    return jnp.transpose(x, (0, 3, 1, 2)).astype(jnp.float32)


# ---------------------------------------------------------------------------
if __name__ == "__main__":
    key = jax.random.PRNGKey(0)
    k_x, k_p = jax.random.split(key)

    channels = 8                     # small synthetic width (PyTorch default 64)
    x = jax.random.normal(k_x, (2, 3, 64, 64), jnp.float32)   # NCHW like PyTorch
    params = init_params(k_p, channels=channels)

    fwd = jax.jit(discriminator_forward)
    out = jax.block_until_ready(fwd(params, x))

    ref = jax.block_until_ready(jax.jit(reference_forward)(params, x))

    assert out.shape == (2, 1, 6, 6), out.shape
    np.testing.assert_allclose(np.asarray(out), np.asarray(ref),
                               rtol=2e-2, atol=2e-2)

    print("KERNEL_OK")
</pallas_src>

<mosaic_0001>
module attributes {stable_mosaic.version = 11 : i64} {
  func.func @_matmul_bias_act_kernel(%arg0: i32, %arg1: memref<512x48xbf16, #tpu.memory_space<vmem>>, %arg2: memref<48x8xbf16, #tpu.memory_space<vmem>>, %arg3: memref<512x8xbf16, #tpu.memory_space<vmem>>) attributes {dimension_semantics = [#tpu.dimension_semantics<parallel>], iteration_bounds = array<i64: 4>, scalar_prefetch = 0 : i64, scratch_operands = 0 : i64, tpu.core_type = #tpu.core_type<tc>, window_params = [{transform_indices = @transform_0, window_bounds = array<i64: 512, 48>}, {pipeline_mode = #tpu.pipeline_mode<synchronous>, transform_indices = @transform_1, window_bounds = array<i64: 48, 8>}, {transform_indices = @transform_2, window_bounds = array<i64: 512, 8>}]} {
    %c0 = arith.constant 0 : index
    %c0_0 = arith.constant 0 : index
    %0 = vector.load %arg1[%c0, %c0_0] : memref<512x48xbf16, #tpu.memory_space<vmem>>, vector<512x48xbf16>
    %c0_1 = arith.constant 0 : index
    %c0_2 = arith.constant 0 : index
    %1 = vector.load %arg2[%c0_1, %c0_2] : memref<48x8xbf16, #tpu.memory_space<vmem>>, vector<48x8xbf16>
    %cst = arith.constant dense<0.000000e+00> : vector<512x8xf32>
    %2 = tpu.matmul %0, %1, %cst {dimension_numbers = #tpu.dot_dimension_numbers<[1], [0], [0], [1], [0, 0, 1, 1], [], []>} : vector<512x48xbf16>, vector<48x8xbf16>, vector<512x8xf32> -> vector<512x8xf32>
    %cst_3 = arith.constant 0.000000e+00 : f32
    %3 = vector.broadcast %cst_3 : f32 to vector<512x8xf32>
    %4 = arith.cmpf oge, %2, %3 : vector<512x8xf32>
    %cst_4 = arith.constant 2.000000e-01 : f32
    %5 = vector.broadcast %cst_4 : f32 to vector<512x8xf32>
    %6 = arith.mulf %5, %2 : vector<512x8xf32>
    %7 = arith.select %4, %2, %6 : vector<512x8xi1>, vector<512x8xf32>
    %8 = arith.truncf %7 : vector<512x8xf32> to vector<512x8xbf16>
    %c0_5 = arith.constant 0 : index
    %c0_6 = arith.constant 0 : index
    %9 = vector.load %arg3[%c0_5, %c0_6] : memref<512x8xbf16, #tpu.memory_space<vmem>>, vector<512x8xbf16>
    tpu.vector_store %arg3[%c0_5, %c0_6], %8 {strides = array<i32>} : memref<512x8xbf16, #tpu.memory_space<vmem>>, vector<512x8xbf16>,
    return
  }
  func.func @transform_0(%arg0: i32) -> (i32, i32) {
    %c0_i32 = arith.constant 0 : i32
    %c0_i32_0 = arith.constant 0 : i32
    return %arg0, %c0_i32 : i32, i32
  }
  func.func @transform_1(%arg0: i32) -> (i32, i32) {
    %c0_i32 = arith.constant 0 : i32
    %c0_i32_0 = arith.constant 0 : i32
    %c0_i32_1 = arith.constant 0 : i32
    return %c0_i32, %c0_i32_0 : i32, i32
  }
  func.func @transform_2(%arg0: i32) -> (i32, i32) {
    %c0_i32 = arith.constant 0 : i32
    %c0_i32_0 = arith.constant 0 : i32
    return %arg0, %c0_i32 : i32, i32
  }
}

module attributes {stable_mosaic.version = 11 : i64} {
  func.func @_conv_inorm_lrelu_kernel(%arg0: i32, %arg1: memref<1x256x128xbf16, #tpu.memory_space<vmem>>, %arg2: memref<128x16xbf16, #tpu.memory_space<vmem>>, %arg3: memref<1x256x16xbf16, #tpu.memory_space<vmem>>) attributes {dimension_semantics = [#tpu.dimension_semantics<parallel>], iteration_bounds = array<i64: 2>, scalar_prefetch = 0 : i64, scratch_operands = 0 : i64, tpu.core_type = #tpu.core_type<tc>, window_params = [{transform_indices = @transform_0, window_bounds = array<i64: 1, 256, 128>}, {pipeline_mode = #tpu.pipeline_mode<synchronous>, transform_indices = @transform_1, window_bounds = array<i64: 128, 16>}, {transform_indices = @transform_2, window_bounds = array<i64: 1, 256, 16>}]} {
    %c0 = arith.constant 0 : index
    %c0_0 = arith.constant 0 : index
    %c0_1 = arith.constant 0 : index
    %0 = vector.load %arg1[%c0, %c0_0, %c0_1] : memref<1x256x128xbf16, #tpu.memory_space<vmem>>, vector<1x256x128xbf16>
    %1 = vector.shape_cast %0 : vector<1x256x128xbf16> to vector<256x128xbf16>
    %c0_2 = arith.constant 0 : index
    %c0_3 = arith.constant 0 : index
    %2 = vector.load %arg2[%c0_2, %c0_3] : memref<128x16xbf16, #tpu.memory_space<vmem>>, vector<128x16xbf16>
    %cst = arith.constant dense<0.000000e+00> : vector<256x16xf32>
    %3 = tpu.matmul %1, %2, %cst {dimension_numbers = #tpu.dot_dimension_numbers<[1], [0], [0], [1], [0, 0, 1, 1], [], []>} : vector<256x128xbf16>, vector<128x16xbf16>, vector<256x16xf32> -> vector<256x16xf32>
    %cst_4 = arith.constant dense<0.000000e+00> : vector<16xf32>
    %4 = vector.multi_reduction <add>, %3, %cst_4 [0] : vector<256x16xf32> to vector<16xf32>
    %5 = vector.shape_cast %4 : vector<16xf32> to vector<1x16xf32>
    %cst_5 = arith.constant 2.560000e+02 : f32
    %6 = vector.broadcast %cst_5 : f32 to vector<1x16xf32>
    %7 = arith.divf %5, %6 : vector<1x16xf32>
    %8 = vector.broadcast %7 : vector<1x16xf32> to vector<256x16xf32>
    %9 = arith.subf %3, %8 : vector<256x16xf32>
    %10 = arith.mulf %9, %9 : vector<256x16xf32>
    %cst_6 = arith.constant dense<0.000000e+00> : vector<16xf32>
    %11 = vector.multi_reduction <add>, %10, %cst_6 [0] : vector<256x16xf32> to vector<16xf32>
    %12 = vector.shape_cast %11 : vector<16xf32> to vector<1x16xf32>
    %cst_7 = arith.constant 2.560000e+02 : f32
    %13 = vector.broadcast %cst_7 : f32 to vector<1x16xf32>
    %14 = arith.divf %12, %13 : vector<1x16xf32>
    %15 = vector.broadcast %7 : vector<1x16xf32> to vector<256x16xf32>
    %16 = arith.subf %3, %15 : vector<256x16xf32>
    %cst_8 = arith.constant 9.99999974E-6 : f32
    %17 = vector.broadcast %cst_8 : f32 to vector<1x16xf32>
    %18 = arith.addf %14, %17 : vector<1x16xf32>
    %19 = math.rsqrt %18 : vector<1x16xf32>
    %20 = vector.broadcast %19 : vector<1x16xf32> to vector<256x16xf32>
    %21 = arith.mulf %16, %20 : vector<256x16xf32>
    %cst_9 = arith.constant 0.000000e+00 : f32
    %22 = vector.broadcast %cst_9 : f32 to vector<256x16xf32>
    %23 = arith.cmpf oge, %21, %22 : vector<256x16xf32>
    %cst_10 = arith.constant 2.000000e-01 : f32
    %24 = vector.broadcast %cst_10 : f32 to vector<256x16xf32>
    %25 = arith.mulf %24, %21 : vector<256x16xf32>
    %26 = arith.select %23, %21, %25 : vector<256x16xi1>, vector<256x16xf32>
    %27 = arith.truncf %26 : vector<256x16xf32> to vector<256x16xbf16>
    %c0_11 = arith.constant 0 : index
    %c0_12 = arith.constant 0 : index
    %c0_13 = arith.constant 0 : index
    %28 = vector.load %arg3[%c0_11, %c0_12, %c0_13] : memref<1x256x16xbf16, #tpu.memory_space<vmem>>, vector<1x256x16xbf16>
    %29 = vector.shape_cast %28 : vector<1x256x16xbf16> to vector<256x16xbf16>
    %30 = vector.shape_cast %27 : vector<256x16xbf16> to vector<1x256x16xbf16>
    tpu.vector_store %arg3[%c0_11, %c0_12, %c0_13], %30 {strides = array<i32>} : memref<1x256x16xbf16, #tpu.memory_space<vmem>>, vector<1x256x16xbf16>,
    return
  }
  func.func @transform_0(%arg0: i32) -> (i32, i32, i32) {
    %c0_i32 = arith.constant 0 : i32
    %c0_i32_0 = arith.constant 0 : i32
    %c0_i32_1 = arith.constant 0 : i32
    return %arg0, %c0_i32, %c0_i32_0 : i32, i32, i32
  }
  func.func @transform_1(%arg0: i32) -> (i32, i32) {
    %c0_i32 = arith.constant 0 : i32
    %c0_i32_0 = arith.constant 0 : i32
    %c0_i32_1 = arith.constant 0 : i32
    return %c0_i32, %c0_i32_0 : i32, i32
  }
  func.func @transform_2(%arg0: i32) -> (i32, i32, i32) {
    %c0_i32 = arith.constant 0 : i32
    %c0_i32_0 = arith.constant 0 : i32
    %c0_i32_1 = arith.constant 0 : i32
    return %arg0, %c0_i32, %c0_i32_0 : i32, i32, i32
  }
}

module attributes {stable_mosaic.version = 11 : i64} {
  func.func @_conv_inorm_lrelu_kernel(%arg0: i32, %arg1: memref<1x64x256xbf16, #tpu.memory_space<vmem>>, %arg2: memref<256x32xbf16, #tpu.memory_space<vmem>>, %arg3: memref<1x64x32xbf16, #tpu.memory_space<vmem>>) attributes {dimension_semantics = [#tpu.dimension_semantics<parallel>], iteration_bounds = array<i64: 2>, scalar_prefetch = 0 : i64, scratch_operands = 0 : i64, tpu.core_type = #tpu.core_type<tc>, window_params = [{transform_indices = @transform_0, window_bounds = array<i64: 1, 64, 256>}, {pipeline_mode = #tpu.pipeline_mode<synchronous>, transform_indices = @transform_1, window_bounds = array<i64: 256, 32>}, {transform_indices = @transform_2, window_bounds = array<i64: 1, 64, 32>}]} {
    %c0 = arith.constant 0 : index
    %c0_0 = arith.constant 0 : index
    %c0_1 = arith.constant 0 : index
    %0 = vector.load %arg1[%c0, %c0_0, %c0_1] : memref<1x64x256xbf16, #tpu.memory_space<vmem>>, vector<1x64x256xbf16>
    %1 = vector.shape_cast %0 : vector<1x64x256xbf16> to vector<64x256xbf16>
    %c0_2 = arith.constant 0 : index
    %c0_3 = arith.constant 0 : index
    %2 = vector.load %arg2[%c0_2, %c0_3] : memref<256x32xbf16, #tpu.memory_space<vmem>>, vector<256x32xbf16>
    %cst = arith.constant dense<0.000000e+00> : vector<64x32xf32>
    %3 = tpu.matmul %1, %2, %cst {dimension_numbers = #tpu.dot_dimension_numbers<[1], [0], [0], [1], [0, 0, 1, 1], [], []>} : vector<64x256xbf16>, vector<256x32xbf16>, vector<64x32xf32> -> vector<64x32xf32>
    %cst_4 = arith.constant dense<0.000000e+00> : vector<32xf32>
    %4 = vector.multi_reduction <add>, %3, %cst_4 [0] : vector<64x32xf32> to vector<32xf32>
    %5 = vector.shape_cast %4 : vector<32xf32> to vector<1x32xf32>
    %cst_5 = arith.constant 6.400000e+01 : f32
    %6 = vector.broadcast %cst_5 : f32 to vector<1x32xf32>
    %7 = arith.divf %5, %6 : vector<1x32xf32>
    %8 = vector.broadcast %7 : vector<1x32xf32> to vector<64x32xf32>
    %9 = arith.subf %3, %8 : vector<64x32xf32>
    %10 = arith.mulf %9, %9 : vector<64x32xf32>
    %cst_6 = arith.constant dense<0.000000e+00> : vector<32xf32>
    %11 = vector.multi_reduction <add>, %10, %cst_6 [0] : vector<64x32xf32> to vector<32xf32>
    %12 = vector.shape_cast %11 : vector<32xf32> to vector<1x32xf32>
    %cst_7 = arith.constant 6.400000e+01 : f32
    %13 = vector.broadcast %cst_7 : f32 to vector<1x32xf32>
    %14 = arith.divf %12, %13 : vector<1x32xf32>
    %15 = vector.broadcast %7 : vector<1x32xf32> to vector<64x32xf32>
    %16 = arith.subf %3, %15 : vector<64x32xf32>
    %cst_8 = arith.constant 9.99999974E-6 : f32
    %17 = vector.broadcast %cst_8 : f32 to vector<1x32xf32>
    %18 = arith.addf %14, %17 : vector<1x32xf32>
    %19 = math.rsqrt %18 : vector<1x32xf32>
    %20 = vector.broadcast %19 : vector<1x32xf32> to vector<64x32xf32>
    %21 = arith.mulf %16, %20 : vector<64x32xf32>
    %cst_9 = arith.constant 0.000000e+00 : f32
    %22 = vector.broadcast %cst_9 : f32 to vector<64x32xf32>
    %23 = arith.cmpf oge, %21, %22 : vector<64x32xf32>
    %cst_10 = arith.constant 2.000000e-01 : f32
    %24 = vector.broadcast %cst_10 : f32 to vector<64x32xf32>
    %25 = arith.mulf %24, %21 : vector<64x32xf32>
    %26 = arith.select %23, %21, %25 : vector<64x32xi1>, vector<64x32xf32>
    %27 = arith.truncf %26 : vector<64x32xf32> to vector<64x32xbf16>
    %c0_11 = arith.constant 0 : index
    %c0_12 = arith.constant 0 : index
    %c0_13 = arith.constant 0 : index
    %28 = vector.load %arg3[%c0_11, %c0_12, %c0_13] : memref<1x64x32xbf16, #tpu.memory_space<vmem>>, vector<1x64x32xbf16>
    %29 = vector.shape_cast %28 : vector<1x64x32xbf16> to vector<64x32xbf16>
    %30 = vector.shape_cast %27 : vector<64x32xbf16> to vector<1x64x32xbf16>
    tpu.vector_store %arg3[%c0_11, %c0_12, %c0_13], %30 {strides = array<i32>} : memref<1x64x32xbf16, #tpu.memory_space<vmem>>, vector<1x64x32xbf16>,
    return
  }
  func.func @transform_0(%arg0: i32) -> (i32, i32, i32) {
    %c0_i32 = arith.constant 0 : i32
    %c0_i32_0 = arith.constant 0 : i32
    %c0_i32_1 = arith.constant 0 : i32
    return %arg0, %c0_i32, %c0_i32_0 : i32, i32, i32
  }
  func.func @transform_1(%arg0: i32) -> (i32, i32) {
    %c0_i32 = arith.constant 0 : i32
    %c0_i32_0 = arith.constant 0 : i32
    %c0_i32_1 = arith.constant 0 : i32
    return %c0_i32, %c0_i32_0 : i32, i32
  }
  func.func @transform_2(%arg0: i32) -> (i32, i32, i32) {
    %c0_i32 = arith.constant 0 : i32
    %c0_i32_0 = arith.constant 0 : i32
    %c0_i32_1 = arith.constant 0 : i32
    return %arg0, %c0_i32, %c0_i32_0 : i32, i32, i32
  }
}

module attributes {stable_mosaic.version = 11 : i64} {
  func.func @_conv_inorm_lrelu_kernel(%arg0: i32, %arg1: memref<1x49x512xbf16, #tpu.memory_space<vmem>>, %arg2: memref<512x64xbf16, #tpu.memory_space<vmem>>, %arg3: memref<1x49x64xbf16, #tpu.memory_space<vmem>>) attributes {dimension_semantics = [#tpu.dimension_semantics<parallel>], iteration_bounds = array<i64: 2>, scalar_prefetch = 0 : i64, scratch_operands = 0 : i64, tpu.core_type = #tpu.core_type<tc>, window_params = [{transform_indices = @transform_0, window_bounds = array<i64: 1, 49, 512>}, {pipeline_mode = #tpu.pipeline_mode<synchronous>, transform_indices = @transform_1, window_bounds = array<i64: 512, 64>}, {transform_indices = @transform_2, window_bounds = array<i64: 1, 49, 64>}]} {
    %c0 = arith.constant 0 : index
    %c0_0 = arith.constant 0 : index
    %c0_1 = arith.constant 0 : index
    %0 = vector.load %arg1[%c0, %c0_0, %c0_1] : memref<1x49x512xbf16, #tpu.memory_space<vmem>>, vector<1x49x512xbf16>
    %1 = vector.shape_cast %0 : vector<1x49x512xbf16> to vector<49x512xbf16>
    %c0_2 = arith.constant 0 : index
    %c0_3 = arith.constant 0 : index
    %2 = vector.load %arg2[%c0_2, %c0_3] : memref<512x64xbf16, #tpu.memory_space<vmem>>, vector<512x64xbf16>
    %cst = arith.constant dense<0.000000e+00> : vector<49x64xf32>
    %3 = tpu.matmul %1, %2, %cst {dimension_numbers = #tpu.dot_dimension_numbers<[1], [0], [0], [1], [0, 0, 1, 1], [], []>} : vector<49x512xbf16>, vector<512x64xbf16>, vector<49x64xf32> -> vector<49x64xf32>
    %cst_4 = arith.constant dense<0.000000e+00> : vector<64xf32>
    %4 = vector.multi_reduction <add>, %3, %cst_4 [0] : vector<49x64xf32> to vector<64xf32>
    %5 = vector.shape_cast %4 : vector<64xf32> to vector<1x64xf32>
    %cst_5 = arith.constant 4.900000e+01 : f32
    %6 = vector.broadcast %cst_5 : f32 to vector<1x64xf32>
    %7 = arith.divf %5, %6 : vector<1x64xf32>
    %8 = vector.broadcast %7 : vector<1x64xf32> to vector<49x64xf32>
    %9 = arith.subf %3, %8 : vector<49x64xf32>
    %10 = arith.mulf %9, %9 : vector<49x64xf32>
    %cst_6 = arith.constant dense<0.000000e+00> : vector<64xf32>
    %11 = vector.multi_reduction <add>, %10, %cst_6 [0] : vector<49x64xf32> to vector<64xf32>
    %12 = vector.shape_cast %11 : vector<64xf32> to vector<1x64xf32>
    %cst_7 = arith.constant 4.900000e+01 : f32
    %13 = vector.broadcast %cst_7 : f32 to vector<1x64xf32>
    %14 = arith.divf %12, %13 : vector<1x64xf32>
    %15 = vector.broadcast %7 : vector<1x64xf32> to vector<49x64xf32>
    %16 = arith.subf %3, %15 : vector<49x64xf32>
    %cst_8 = arith.constant 9.99999974E-6 : f32
    %17 = vector.broadcast %cst_8 : f32 to vector<1x64xf32>
    %18 = arith.addf %14, %17 : vector<1x64xf32>
    %19 = math.rsqrt %18 : vector<1x64xf32>
    %20 = vector.broadcast %19 : vector<1x64xf32> to vector<49x64xf32>
    %21 = arith.mulf %16, %20 : vector<49x64xf32>
    %cst_9 = arith.constant 0.000000e+00 : f32
    %22 = vector.broadcast %cst_9 : f32 to vector<49x64xf32>
    %23 = arith.cmpf oge, %21, %22 : vector<49x64xf32>
    %cst_10 = arith.constant 2.000000e-01 : f32
    %24 = vector.broadcast %cst_10 : f32 to vector<49x64xf32>
    %25 = arith.mulf %24, %21 : vector<49x64xf32>
    %26 = arith.select %23, %21, %25 : vector<49x64xi1>, vector<49x64xf32>
    %27 = arith.truncf %26 : vector<49x64xf32> to vector<49x64xbf16>
    %c0_11 = arith.constant 0 : index
    %c0_12 = arith.constant 0 : index
    %c0_13 = arith.constant 0 : index
    %28 = vector.load %arg3[%c0_11, %c0_12, %c0_13] : memref<1x49x64xbf16, #tpu.memory_space<vmem>>, vector<1x49x64xbf16>
    %29 = vector.shape_cast %28 : vector<1x49x64xbf16> to vector<49x64xbf16>
    %30 = vector.shape_cast %27 : vector<49x64xbf16> to vector<1x49x64xbf16>
    tpu.vector_store %arg3[%c0_11, %c0_12, %c0_13], %30 {strides = array<i32>} : memref<1x49x64xbf16, #tpu.memory_space<vmem>>, vector<1x49x64xbf16>,
    return
  }
  func.func @transform_0(%arg0: i32) -> (i32, i32, i32) {
    %c0_i32 = arith.constant 0 : i32
    %c0_i32_0 = arith.constant 0 : i32
    %c0_i32_1 = arith.constant 0 : i32
    return %arg0, %c0_i32, %c0_i32_0 : i32, i32, i32
  }
  func.func @transform_1(%arg0: i32) -> (i32, i32) {
    %c0_i32 = arith.constant 0 : i32
    %c0_i32_0 = arith.constant 0 : i32
    %c0_i32_1 = arith.constant 0 : i32
    return %c0_i32, %c0_i32_0 : i32, i32
  }
  func.func @transform_2(%arg0: i32) -> (i32, i32, i32) {
    %c0_i32 = arith.constant 0 : i32
    %c0_i32_0 = arith.constant 0 : i32
    %c0_i32_1 = arith.constant 0 : i32
    return %arg0, %c0_i32, %c0_i32_0 : i32, i32, i32
  }
}

module attributes {stable_mosaic.version = 11 : i64} {
  func.func @_matmul_bias_act_kernel(%arg0: i32, %arg1: memref<72x1024xbf16, #tpu.memory_space<vmem>>, %arg2: memref<1024x128xbf16, #tpu.memory_space<vmem>>, %arg3: memref<1x128xf32, #tpu.memory_space<vmem>>, %arg4: memref<72x128xf32, #tpu.memory_space<vmem>>) attributes {dimension_semantics = [#tpu.dimension_semantics<parallel>], iteration_bounds = array<i64: 1>, scalar_prefetch = 0 : i64, scratch_operands = 0 : i64, tpu.core_type = #tpu.core_type<tc>, window_params = [{transform_indices = @transform_0, window_bounds = array<i64: 72, 1024>}, {pipeline_mode = #tpu.pipeline_mode<synchronous>, transform_indices = @transform_1, window_bounds = array<i64: 1024, 128>}, {pipeline_mode = #tpu.pipeline_mode<synchronous>, transform_indices = @transform_2, window_bounds = array<i64: 1, 128>}, {transform_indices = @transform_3, window_bounds = array<i64: 72, 128>}]} {
    %c0 = arith.constant 0 : index
    %c0_0 = arith.constant 0 : index
    %0 = vector.load %arg1[%c0, %c0_0] : memref<72x1024xbf16, #tpu.memory_space<vmem>>, vector<72x1024xbf16>
    %c0_1 = arith.constant 0 : index
    %c0_2 = arith.constant 0 : index
    %1 = vector.load %arg2[%c0_1, %c0_2] : memref<1024x128xbf16, #tpu.memory_space<vmem>>, vector<1024x128xbf16>
    %cst = arith.constant dense<0.000000e+00> : vector<72x128xf32>
    %2 = tpu.matmul %0, %1, %cst {dimension_numbers = #tpu.dot_dimension_numbers<[1], [0], [0], [1], [0, 0, 1, 1], [], []>} : vector<72x1024xbf16>, vector<1024x128xbf16>, vector<72x128xf32> -> vector<72x128xf32>
    %c0_3 = arith.constant 0 : index
    %c0_4 = arith.constant 0 : index
    %3 = vector.load %arg3[%c0_3, %c0_4] : memref<1x128xf32, #tpu.memory_space<vmem>>, vector<1x128xf32>
    %4 = vector.broadcast %3 : vector<1x128xf32> to vector<72x128xf32>
    %5 = arith.addf %2, %4 : vector<72x128xf32>
    %c0_5 = arith.constant 0 : index
    %c0_6 = arith.constant 0 : index
    %6 = vector.load %arg4[%c0_5, %c0_6] : memref<72x128xf32, #tpu.memory_space<vmem>>, vector<72x128xf32>
    tpu.vector_store %arg4[%c0_5, %c0_6], %5 {strides = array<i32>} : memref<72x128xf32, #tpu.memory_space<vmem>>, vector<72x128xf32>,
    return
  }
  func.func @transform_0(%arg0: i32) -> (i32, i32) {
    %c0_i32 = arith.constant 0 : i32
    %c0_i32_0 = arith.constant 0 : i32
    return %arg0, %c0_i32 : i32, i32
  }
  func.func @transform_1(%arg0: i32) -> (i32, i32) {
    %c0_i32 = arith.constant 0 : i32
    %c0_i32_0 = arith.constant 0 : i32
    %c0_i32_1 = arith.constant 0 : i32
    return %c0_i32, %c0_i32_0 : i32, i32
  }
  func.func @transform_2(%arg0: i32) -> (i32, i32) {
    %c0_i32 = arith.constant 0 : i32
    %c0_i32_0 = arith.constant 0 : i32
    %c0_i32_1 = arith.constant 0 : i32
    return %c0_i32, %c0_i32_0 : i32, i32
  }
  func.func @transform_3(%arg0: i32) -> (i32, i32) {
    %c0_i32 = arith.constant 0 : i32
    %c0_i32_0 = arith.constant 0 : i32
    return %arg0, %c0_i32 : i32, i32
  }
}

</mosaic_0001>

<bundles_post_ra>
// kernel: discriminator_forward.5
= control target key start
LH: loop header
LB: loop body
LE: loop exit
PB: predicated region body
PF: predicated region fallthrough
CT: control target
= control target key end

     0   :  { %s1734_s9 = smov 0   ;;  %s1964_s0 = inlined_call_operand.vmem [shape: bf16[2048,48], index: 0, kind: input, shape index: {}]   ;;  %s1965_s1 = inlined_call_operand.vmem [shape: bf16[48,8], index: 1, kind: input, shape index: {}]   ;;  %s1966_s2 = inlined_call_operand.vmem [shape: bf16[2048,8], index: 2, kind: output, shape index: {}]  }
   0x1 LB: > { %s1351_s10 = sadd.s32 4294967295, %s1717_s9   ;;  %p1355_p0 = scmp.ge.s32.totalorder %s1717_s9, 1  ;;  %s1717_s9 = sphi %s1734_s9, %s12_s9  }
   0x2   : > { %p113_p1 = scmp.lt.s32.totalorder %s1717_s9, 5 }
   0x4   : > { %p114_p2 = pnand %p1355_p0, %p113_p1 }
   0x5   : > { %v1676_v0 = vld [vmem:[%s1965_s1] sm:$0xff] (!%p114_p2)   ;;  %s1356_s13 = sshll.u32 (!%p114_p2), %s1351_s10, 6  ;;  %v1677_v1 = vld [vmem:[%s1965_s1 + $0x8] sm:$0xff] (!%p114_p2)   ;;  %v1678_v2 = vld [vmem:[%s1965_s1 + $0x10] sm:$0xff] (!%p114_p2)   ;;  %vm396_vm0 = vcmask (!%p114_p2), 392192   ;;  %vm1230_vm3 = vcmask (!%p114_p2), 60416  }
   0x6   : > { %117 = sbr.rel (%p114_p2) target bundleno = 302 (0x12e), region = 28  ;;  %p136_p3 = scmp.lt.s32.totalorder (!%p114_p2), %s1356_s13, 255  ;;  %1592 = vmatprep.subr.bf16.mxu0 (!%p114_p2), %v1676_v0  ;;  %1662 = vmatprep.subr.bf16.mxu1 (!%p114_p2), %v1676_v0 }
   0x7   : > { %1593 = vmatpush3.bf16.msra.mxu0 (!%p114_p2), %v1676_v0  ;;  %1665 = vmatpush3.bf16.msra.mxu1 (!%p114_p2), %v1676_v0 }
   0x8   : > { %1594 = vmatprep.subr.bf16.mxu0 (!%p114_p2), %v1677_v1  ;;  %1663 = vmatprep.subr.bf16.mxu1 (!%p114_p2), %v1677_v1 }
   0xb   : > { %1595 = vmatpush3.bf16.msra.mxu0 (!%p114_p2), %v1677_v1  ;;  %1666 = vmatpush3.bf16.msra.mxu1 (!%p114_p2), %v1677_v1 }
   0xc   : > { %1596 = vmatprep.subr.bf16.mxu0 (!%p114_p2), %v1678_v2  ;;  %1664 = vmatprep.subr.bf16.mxu1 (!%p114_p2), %v1678_v2 }
   0xd   : > { %s1968_s13 = smov (!%p136_p3, %s1356_s13), 255 }
   0xe   : > { %s1357_s18 = sshll.u32 %s1968_s13, 2 }
   0xf   : > { %s1759_s21 = scalar_lea.vmem %s1964_s0, %s1357_s18  ;;  %1597 = vmatpush3.bf16.msra.mxu0 %v1678_v2  ;;  %1667 = vmatpush3.bf16.msra.mxu1 %v1678_v2  ;;  %s1830_s24 = scalar_lea.vmem %s1966_s2, %s1357_s18 }
  0x10   : > { %v1679_v3 = vld [vmem:[%s1759_s21] sm:$0xff]   ;;  %v1681_v5 = vld [vmem:[%s1759_s21 + $0x8] sm:$0xff]   ;;  %v1683_v7 = vld [vmem:[%s1759_s21 + $0x10] sm:$0xff]  }
  0x11   : > { %v1680_v4 = vld [vmem:[%s1759_s21 + $0x80] sm:$0xff]   ;;  %1598 = vmatprep.mubr.msk.bf16.mxu0 %vm396_vm0, %v1679_v3  ;;  %v1682_v6 = vld [vmem:[%s1759_s21 + $0x88] sm:$0xff]   ;;  %v1684_v8 = vld [vmem:[%s1759_s21 + $0x90] sm:$0xff]  }
  0x12   : > { %1630 = vmatprep.mubr.msk.bf16.mxu1 %vm396_vm0, %v1680_v4  ;;  %1599 = vmatmul.mubr.msk.bf16.vlgmr.msra.gmra.mrb[0].mxu0 %vm396_vm0, %v1681_v5  ;;  %v1685_v9 = vld [vmem:[%s1759_s21 + $0x18] sm:$0xff]   ;;  %v1687_v11 = vld [vmem:[%s1759_s21 + $0x20] sm:$0xff]   ;;  %v1689_v13 = vld [vmem:[%s1759_s21 + $0x28] sm:$0xff]  }
  0x13   : > { %1631 = vmatmul.mubr.msk.bf16.vlgmr.msra.gmra.mrb[0].mxu1 %vm396_vm0, %v1682_v6  ;;  %1602 = vmatprep.mubr.msk.bf16.mxu0 %vm396_vm0, %v1683_v7  ;;  %v1686_v10 = vld [vmem:[%s1759_s21 + $0x98] sm:$0xff]   ;;  %v1688_v12 = vld [vmem:[%s1759_s21 + $0xa0] sm:$0xff]   ;;  %v1690_v14 = vld [vmem:[%s1759_s21 + $0xa8] sm:$0xff]  }
  0x14   : > { %1634 = vmatprep.mubr.msk.bf16.mxu1 %vm396_vm0, %v1684_v8  ;;  %v1691_v15 = vld [vmem:[%s1759_s21 + $0x30] sm:$0xff]   ;;  %v1693_v17 = vld [vmem:[%s1759_s21 + $0x38] sm:$0xff]   ;;  %v1695_v19 = vld [vmem:[%s1759_s21 + $0x40] sm:$0xff]  }
  0x15   : > { %v1692_v16 = vld [vmem:[%s1759_s21 + $0xb0] sm:$0xff]   ;;  %v1694_v18 = vld [vmem:[%s1759_s21 + $0xb8] sm:$0xff]   ;;  %v1696_v20 = vld [vmem:[%s1759_s21 + $0xc0] sm:$0xff]  }
  0x16   : > { %v1697_v21 = vld [vmem:[%s1759_s21 + $0x48] sm:$0xff]   ;;  %v1699_v23 = vld [vmem:[%s1759_s21 + $0x50] sm:$0xff]   ;;  %v1701_v25 = vld [vmem:[%s1759_s21 + $0x58] sm:$0xff]  }
  0x17   : > { %v1698_v22 = vld [vmem:[%s1759_s21 + $0xc8] sm:$0xff]   ;;  %v1700_v24 = vld [vmem:[%s1759_s21 + $0xd0] sm:$0xff]   ;;  %v1702_v26 = vld [vmem:[%s1759_s21 + $0xd8] sm:$0xff]  }
  0x18   : > { %v1703_v27 = vld [vmem:[%s1759_s21 + $0x60] sm:$0xff]   ;;  %v1705_v29 = vld [vmem:[%s1759_s21 + $0x68] sm:$0xff]   ;;  %v1707_v31 = vld [vmem:[%s1759_s21 + $0x70] sm:$0xff]  }
  0x19   : > { %v1704_v28 = vld [vmem:[%s1759_s21 + $0xe0] sm:$0xff]   ;;  %v1706_v30 = vld [vmem:[%s1759_s21 + $0xe8] sm:$0xff]   ;;  %v1708_v32 = vld [vmem:[%s1759_s21 + $0xf0] sm:$0xff]  }
  0x1a   : > { %1603 = vmatmul.mubr.msk.bf16.gmra.mrb[4].mxu0 %vm396_vm0, %v1685_v9  ;;  %v1709_v33 = vld [vmem:[%s1759_s21 + $0x78] sm:$0xff]  }
  0x1b   : > { %1635 = vmatmul.mubr.msk.bf16.gmra.mrb[4].mxu1 %vm396_vm0, %v1686_v10  ;;  %1606 = vmatprep.mubr.msk.bf16.mxu0 %vm396_vm0, %v1687_v11  ;;  %v1710_v34 = vld [vmem:[%s1759_s21 + $0xf8] sm:$0xff]  }
  0x1c   : > { %1638 = vmatprep.mubr.msk.bf16.mxu1 %vm396_vm0, %v1688_v12 }
  0x22   : > { %1607 = vmatmul.mubr.msk.bf16.gmra.mrb[8].mxu0 %vm396_vm0, %v1689_v13 }
  0x23   : > { %1639 = vmatmul.mubr.msk.bf16.gmra.mrb[8].mxu1 %vm396_vm0, %v1690_v14  ;;  %1610 = vmatprep.mubr.msk.bf16.mxu0 %vm396_vm0, %v1691_v15 }
  0x24   : > { %1642 = vmatprep.mubr.msk.bf16.mxu1 %vm396_vm0, %v1692_v16 }
  0x2a   : > { %1611 = vmatmul.mubr.msk.bf16.gmra.mrb[12].mxu0 %vm396_vm0, %v1693_v17 }
  0x2b   : > { %1643 = vmatmul.mubr.msk.bf16.gmra.mrb[12].mxu1 %vm396_vm0, %v1694_v18  ;;  %1614 = vmatprep.mubr.msk.bf16.mxu0 %vm396_vm0, %v1695_v19 }
  0x2c   : > { %1646 = vmatprep.mubr.msk.bf16.mxu1 %vm396_vm0, %v1696_v20 }
  0x32   : > { %1615 = vmatmul.mubr.msk.bf16.gmra.mrb[16].mxu0 %vm396_vm0, %v1697_v21 }
  0x33   : > { %1647 = vmatmul.mubr.msk.bf16.gmra.mrb[16].mxu1 %vm396_vm0, %v1698_v22  ;;  %1618 = vmatprep.mubr.msk.bf16.mxu0 %vm396_vm0, %v1699_v23 }
  0x34   : > { %1650 = vmatprep.mubr.msk.bf16.mxu1 %vm396_vm0, %v1700_v24 }
  0x3a   : > { %1619 = vmatmul.mubr.msk.bf16.gmra.mrb[20].mxu0 %vm396_vm0, %v1701_v25 }
  0x3b   : > { %1651 = vmatmul.mubr.msk.bf16.gmra.mrb[20].mxu1 %vm396_vm0, %v1702_v26  ;;  %1622 = vmatprep.mubr.msk.bf16.mxu0 %vm396_vm0, %v1703_v27 }
  0x3c   : > { %1654 = vmatprep.mubr.msk.bf16.mxu1 %vm396_vm0, %v1704_v28 }
  0x42   : > { %1623 = vmatmul.mubr.msk.bf16.gmra.mrb[24].mxu0 %vm396_vm0, %v1705_v29 }
  0x43   : > { %1655 = vmatmul.mubr.msk.bf16.gmra.mrb[24].mxu1 %vm396_vm0, %v1706_v30  ;;  %1626 = vmatprep.mubr.msk.bf16.mxu0 %vm396_vm0, %v1707_v31 }
  0x44   : > { %1658 = vmatprep.mubr.msk.bf16.mxu1 %vm396_vm0, %v1708_v32 }
  0x4a   : > { %1627 = vmatmul.mubr.msk.bf16.gmra.mrb[28].mxu0 %vm396_vm0, %v1709_v33 }
  0x4b   : > { %1659 = vmatmul.mubr.msk.bf16.gmra.mrb[28].mxu1 %vm396_vm0, %v1710_v34 }
  0xe5   : > { %v1600_v35 = vpop.f32.mrb[0].mxu0 }
  0xe6   : > { %v1632_v36 = vpop.f32.mrb[0].mxu1  ;;  %vm784_vm1 = vcmp.ge.f32.partialorder %v1600_v35, 0.0  ;;  %v848_v37 = vmul.f32 0.2, %v1600_v35  ;;  %v527_v39 = vpop.f32.mrb[1].mxu0 }
  0xe7   : > { %vm816_vm2 = vcmp.ge.f32.partialorder %v1632_v36, 0.0  ;;  %v880_v38 = vmul.f32 0.2, %v1632_v36  ;;  %v655_v40 = vpop.f32.mrb[1].mxu1  ;;  %vm782_vm4 = vcmp.ge.f32.partialorder %v527_v39, 0.0  ;;  %v1601_v44 = vpop.f32.mrb[2].mxu0 }
  0xe8   : > { %v912_v41 = vsel %vm784_vm1, %v1600_v35, %v848_v37  ;;  %v846_v43 = vmul.f32 0.2, %v527_v39  ;;  %v1633_v45 = vpop.f32.mrb[2].mxu1  ;;  %vm814_vm5 = vcmp.ge.f32.partialorder %v655_v40, 0.0  ;;  %v878_v48 = vmul.f32 0.2, %v655_v40 }
  0xe9   : > { %v944_v42 = vsel %vm816_vm2, %v1632_v36, %v880_v38  ;;  %v1495_v46 = vpack.c.bf16 %v912_v41, %v912_v41  ;;  %v530_v49 = vpop.f32.mrb[3].mxu0  ;;  %v658_v50 = vpop.f32.mrb[3].mxu1  ;;  %vm785_vm6 = vcmp.ge.f32.partialorder %v1601_v44, 0.0  ;;  %v849_v52 = vmul.f32 0.2, %v1601_v44 }
  0xea   : > { %v1527_v47 = vpack.c.bf16 %v944_v42, %v944_v42  ;;  %v910_v51 = vsel %vm782_vm4, %v527_v39, %v846_v43  ;;  %vm817_vm7 = vcmp.ge.f32.partialorder %v1633_v45, 0.0  ;;  %v942_v54 = vsel %vm814_vm5, %v655_v40, %v878_v48 }
  0xeb   : > { %1233 = vst.msk [vmem:[%s1830_s24 + $0x8] sm:$0xf] %vm1230_vm3, %v1495_v46  ;;  %v1493_v53 = vpack.c.bf16 %v910_v51, %v910_v51  ;;  %v881_v55 = vmul.f32 0.2, %v1633_v45  ;;  %vm783_vm8 = vcmp.ge.f32.partialorder %v530_v49, 0.0  ;;  %v1525_v56 = vpack.c.bf16 %v942_v54, %v942_v54 }
  0xec   : > { %1265 = vst.msk [vmem:[%s1830_s24 + $0x88] sm:$0xf] %vm1230_vm3, %v1527_v47  ;;  %v913_v57 = vsel %vm785_vm6, %v1601_v44, %v849_v52  ;;  %v847_v58 = vmul.f32 0.2, %v530_v49  ;;  %vm815_vm9 = vcmp.ge.f32.partialorder %v658_v50, 0.0 }
  0xed   : > { %1231 = vst.msk [vmem:[%s1830_s24] sm:$0xf] %vm1230_vm3, %v1493_v53  ;;  %v1496_v59 = vpack.c.bf16 %v913_v57, %v913_v57  ;;  %v945_v60 = vsel %vm817_vm7, %v1633_v45, %v881_v55  ;;  %v879_v61 = vmul.f32 0.2, %v658_v50  ;;  %v1604_v62 = vpop.f32.mrb[4].mxu0 }
  0xee   : > { %v1636_v63 = vpop.f32.mrb[4].mxu1  ;;  %1263 = vst.msk [vmem:[%s1830_s24 + $0x80] sm:$0xf] %vm1230_vm3, %v1525_v56  ;;  %v1528_v0 = vpack.c.bf16 %v945_v60, %v945_v60  ;;  %v911_v1 = vsel %vm783_vm8, %v530_v49, %v847_v58  ;;  %vm788_vm10 = vcmp.ge.f32.partialorder %v1604_v62, 0.0  ;;  %v852_v2 = vmul.f32 0.2, %v1604_v62 }
  0xef   : > { %v543_v3 = vpop.f32.mrb[5].mxu0  ;;  %v671_v4 = vpop.f32.mrb[5].mxu1  ;;  %1234 = vst.msk [vmem:[%s1830_s24 + $0xc] sm:$0xf] %vm1230_vm3, %v1496_v59  ;;  %v1494_v5 = vpack.c.bf16 %v911_v1, %v911_v1  ;;  %v943_v6 = vsel %vm815_vm9, %v658_v50, %v879_v61  ;;  %vm820_vm11 = vcmp.ge.f32.partialorder %v1636_v63, 0.0 }
  0xf0   : > { %v884_v7 = vmul.f32 0.2, %v1636_v63  ;;  %v1605_v8 = vpop.f32.mrb[6].mxu0  ;;  %v1637_v9 = vpop.f32.mrb[6].mxu1  ;;  %1266 = vst.msk [vmem:[%s1830_s24 + $0x8c] sm:$0xf] %vm1230_vm3, %v1528_v0  ;;  %v1526_v10 = vpack.c.bf16 %v943_v6, %v943_v6  ;;  %v916_v11 = vsel %vm788_vm10, %v1604_v62, %v852_v2 }
  0xf1   : > { %vm786_vm12 = vcmp.ge.f32.partialorder %v543_v3, 0.0  ;;  %v850_v12 = vmul.f32 0.2, %v543_v3  ;;  %v546_v13 = vpop.f32.mrb[7].mxu0  ;;  %v674_v14 = vpop.f32.mrb[7].mxu1  ;;  %v1499_v15 = vpack.c.bf16 %v916_v11, %v916_v11  ;;  %vm818_vm13 = vcmp.ge.f32.partialorder %v671_v4, 0.0 }
  0xf2   : > { %1232 = vst.msk [vmem:[%s1830_s24 + $0x4] sm:$0xf] %vm1230_vm3, %v1494_v5  ;;  %v948_v16 = vsel %vm820_vm11, %v1636_v63, %v884_v7  ;;  %v882_v17 = vmul.f32 0.2, %v671_v4  ;;  %1264 = vst.msk [vmem:[%s1830_s24 + $0x84] sm:$0xf] %vm1230_vm3, %v1526_v10 }
  0xf3   : > { %v1531_v18 = vpack.c.bf16 %v948_v16, %v948_v16  ;;  %v914_v19 = vsel %vm786_vm12, %v543_v3, %v850_v12  ;;  %vm789_vm14 = vcmp.ge.f32.partialorder %v1605_v8, 0.0  ;;  %v853_v20 = vmul.f32 0.2, %v1605_v8  ;;  %1237 = vst.msk [vmem:[%s1830_s24 + $0x18] sm:$0xf] %vm1230_vm3, %v1499_v15 }
  0xf4   : > { %v1497_v21 = vpack.c.bf16 %v914_v19, %v914_v19  ;;  %v946_v22 = vsel %vm818_vm13, %v671_v4, %v882_v17  ;;  %vm821_vm15 = vcmp.ge.f32.partialorder %v1637_v9, 0.0  ;;  %v885_v23 = vmul.f32 0.2, %v1637_v9 }
  0xf5   : > { %1269 = vst.msk [vmem:[%s1830_s24 + $0x98] sm:$0xf] %vm1230_vm3, %v1531_v18  ;;  %v1529_v24 = vpack.c.bf16 %v946_v22, %v946_v22  ;;  %v917_v25 = vsel %vm789_vm14, %v1605_v8, %v853_v20  ;;  %vm787_vm0 = vcmp.ge.f32.partialorder %v546_v13, 0.0  ;;  %v851_v26 = vmul.f32 0.2, %v546_v13  ;;  %v1608_v30 = vpop.f32.mrb[8].mxu0 }
  0xf6   : > { %1235 = vst.msk [vmem:[%s1830_s24 + $0x10] sm:$0xf] %vm1230_vm3, %v1497_v21  ;;  %v1500_v27 = vpack.c.bf16 %v917_v25, %v917_v25  ;;  %v949_v28 = vsel %vm821_vm15, %v1637_v9, %v885_v23  ;;  %vm819_vm1 = vcmp.ge.f32.partialorder %v674_v14, 0.0  ;;  %v883_v29 = vmul.f32 0.2, %v674_v14  ;;  %v1640_v31 = vpop.f32.mrb[8].mxu1 }
  0xf7   : > { %1267 = vst.msk [vmem:[%s1830_s24 + $0x90] sm:$0xf] %vm1230_vm3, %v1529_v24  ;;  %v1532_v32 = vpack.c.bf16 %v949_v28, %v949_v28  ;;  %v915_v33 = vsel %vm787_vm0, %v546_v13, %v851_v26  ;;  %vm792_vm2 = vcmp.ge.f32.partialorder %v1608_v30, 0.0  ;;  %v856_v34 = vmul.f32 0.2, %v1608_v30  ;;  %v559_v35 = vpop.f32.mrb[9].mxu0 }
  0xf8   : > { %v687_v36 = vpop.f32.mrb[9].mxu1  ;;  %1238 = vst.msk [vmem:[%s1830_s24 + $0x1c] sm:$0xf] %vm1230_vm3, %v1500_v27  ;;  %v1498_v37 = vpack.c.bf16 %v915_v33, %v915_v33  ;;  %v947_v38 = vsel %vm819_vm1, %v674_v14, %v883_v29  ;;  %vm824_vm4 = vcmp.ge.f32.partialorder %v1640_v31, 0.0  ;;  %v888_v39 = vmul.f32 0.2, %v1640_v31 }
  0xf9   : > { %v1609_v40 = vpop.f32.mrb[10].mxu0  ;;  %v1641_v41 = vpop.f32.mrb[10].mxu1  ;;  %1270 = vst.msk [vmem:[%s1830_s24 + $0x9c] sm:$0xf] %vm1230_vm3, %v1532_v32  ;;  %v1530_v42 = vpack.c.bf16 %v947_v38, %v947_v38  ;;  %v920_v43 = vsel %vm792_vm2, %v1608_v30, %v856_v34  ;;  %vm790_vm5 = vcmp.ge.f32.partialorder %v559_v35, 0.0  ;;  %vm822_vm6 = vcmp.ge.f32.partialorder %v687_v36, 0.0 }
  0xfa   : > { %v854_v44 = vmul.f32 0.2, %v559_v35  ;;  %v562_v45 = vpop.f32.mrb[11].mxu0  ;;  %v690_v46 = vpop.f32.mrb[11].mxu1  ;;  %1236 = vst.msk [vmem:[%s1830_s24 + $0x14] sm:$0xf] %vm1230_vm3, %v1498_v37  ;;  %v1503_v47 = vpack.c.bf16 %v920_v43, %v920_v43  ;;  %v952_v48 = vsel %vm824_vm4, %v1640_v31, %v888_v39 }
  0xfb   : > { %v886_v49 = vmul.f32 0.2, %v687_v36  ;;  %1268 = vst.msk [vmem:[%s1830_s24 + $0x94] sm:$0xf] %vm1230_vm3, %v1530_v42  ;;  %v1535_v50 = vpack.c.bf16 %v952_v48, %v952_v48  ;;  %vm793_vm7 = vcmp.ge.f32.partialorder %v1609_v40, 0.0  ;;  %vm825_vm8 = vcmp.ge.f32.partialorder %v1641_v41, 0.0 }
  0xfc   : > { %v918_v51 = vsel %vm790_vm5, %v559_v35, %v854_v44  ;;  %v857_v52 = vmul.f32 0.2, %v1609_v40  ;;  %1241 = vst.msk [vmem:[%s1830_s24 + $0x28] sm:$0xf] %vm1230_vm3, %v1503_v47  ;;  %v889_v55 = vmul.f32 0.2, %v1641_v41 }
  0xfd   : > { %v1501_v53 = vpack.c.bf16 %v918_v51, %v918_v51  ;;  %v950_v54 = vsel %vm822_vm6, %v687_v36, %v886_v49  ;;  %1273 = vst.msk [vmem:[%s1830_s24 + $0xa8] sm:$0xf] %vm1230_vm3, %v1535_v50  ;;  %vm791_vm9 = vcmp.ge.f32.partialorder %v562_v45, 0.0  ;;  %v855_v58 = vmul.f32 0.2, %v562_v45  ;;  %v1612_v62 = vpop.f32.mrb[12].mxu0 }
  0xfe   : > { %v1533_v56 = vpack.c.bf16 %v950_v54, %v950_v54  ;;  %v921_v57 = vsel %vm793_vm7, %v1609_v40, %v857_v52  ;;  %v953_v60 = vsel %vm825_vm8, %v1641_v41, %v889_v55  ;;  %vm823_vm10 = vcmp.ge.f32.partialorder %v690_v46, 0.0  ;;  %v1644_v63 = vpop.f32.mrb[12].mxu1  ;;  %v575_v3 = vpop.f32.mrb[13].mxu0 }
  0xff   : > { %1239 = vst.msk [vmem:[%s1830_s24 + $0x20] sm:$0xf] %vm1230_vm3, %v1501_v53  ;;  %v1504_v59 = vpack.c.bf16 %v921_v57, %v921_v57  ;;  %v887_v61 = vmul.f32 0.2, %v690_v46  ;;  %v1536_v0 = vpack.c.bf16 %v953_v60, %v953_v60  ;;  %v919_v1 = vsel %vm791_vm9, %v562_v45, %v855_v58  ;;  %v703_v4 = vpop.f32.mrb[13].mxu1  ;;  %v1613_v8 = vpop.f32.mrb[14].mxu0 }
 0x100   : > { %1271 = vst.msk [vmem:[%s1830_s24 + $0xa0] sm:$0xf] %vm1230_vm3, %v1533_v56  ;;  %vm796_vm11 = vcmp.ge.f32.partialorder %v1612_v62, 0.0  ;;  %v860_v2 = vmul.f32 0.2, %v1612_v62  ;;  %v1502_v5 = vpack.c.bf16 %v919_v1, %v919_v1  ;;  %vm828_vm12 = vcmp.ge.f32.partialorder %v1644_v63, 0.0 }
 0x101   : > { %1242 = vst.msk [vmem:[%s1830_s24 + $0x2c] sm:$0xf] %vm1230_vm3, %v1504_v59  ;;  %v951_v6 = vsel %vm823_vm10, %v690_v46, %v887_v61  ;;  %v892_v7 = vmul.f32 0.2, %v1644_v63  ;;  %v1645_v9 = vpop.f32.mrb[14].mxu1  ;;  %vm794_vm13 = vcmp.ge.f32.partialorder %v575_v3, 0.0 }
 0x102   : > { %1274 = vst.msk [vmem:[%s1830_s24 + $0xac] sm:$0xf] %vm1230_vm3, %v1536_v0  ;;  %v1534_v10 = vpack.c.bf16 %v951_v6, %v951_v6  ;;  %v924_v11 = vsel %vm796_vm11, %v1612_v62, %v860_v2  ;;  %v858_v12 = vmul.f32 0.2, %v575_v3  ;;  %v578_v13 = vpop.f32.mrb[15].mxu0  ;;  %v706_v14 = vpop.f32.mrb[15].mxu1 }
 0x103   : > { %1240 = vst.msk [vmem:[%s1830_s24 + $0x24] sm:$0xf] %vm1230_vm3, %v1502_v5  ;;  %v1507_v15 = vpack.c.bf16 %v924_v11, %v924_v11  ;;  %v956_v16 = vsel %vm828_vm12, %v1644_v63, %v892_v7  ;;  %vm826_vm14 = vcmp.ge.f32.partialorder %v703_v4, 0.0  ;;  %v890_v17 = vmul.f32 0.2, %v703_v4 }
 0x104   : > { %1272 = vst.msk [vmem:[%s1830_s24 + $0xa4] sm:$0xf] %vm1230_vm3, %v1534_v10  ;;  %v1539_v18 = vpack.c.bf16 %v956_v16, %v956_v16  ;;  %v922_v19 = vsel %vm794_vm13, %v575_v3, %v858_v12  ;;  %vm797_vm15 = vcmp.ge.f32.partialorder %v1613_v8, 0.0  ;;  %v861_v20 = vmul.f32 0.2, %v1613_v8 }
 0x105   : > { %1245 = vst.msk [vmem:[%s1830_s24 + $0x38] sm:$0xf] %vm1230_vm3, %v1507_v15  ;;  %v1505_v21 = vpack.c.bf16 %v922_v19, %v922_v19  ;;  %v954_v22 = vsel %vm826_vm14, %v703_v4, %v890_v17  ;;  %vm829_vm0 = vcmp.ge.f32.partialorder %v1645_v9, 0.0  ;;  %v893_v23 = vmul.f32 0.2, %v1645_v9  ;;  %v1616_v30 = vpop.f32.mrb[16].mxu0 }
 0x106   : > { %1277 = vst.msk [vmem:[%s1830_s24 + $0xb8] sm:$0xf] %vm1230_vm3, %v1539_v18  ;;  %v1537_v24 = vpack.c.bf16 %v954_v22, %v954_v22  ;;  %v925_v25 = vsel %vm797_vm15, %v1613_v8, %v861_v20  ;;  %vm795_vm1 = vcmp.ge.f32.partialorder %v578_v13, 0.0  ;;  %v859_v26 = vmul.f32 0.2, %v578_v13  ;;  %v1648_v31 = vpop.f32.mrb[16].mxu1 }
 0x107   : > { %1243 = vst.msk [vmem:[%s1830_s24 + $0x30] sm:$0xf] %vm1230_vm3, %v1505_v21  ;;  %v1508_v27 = vpack.c.bf16 %v925_v25, %v925_v25  ;;  %v957_v28 = vsel %vm829_vm0, %v1645_v9, %v893_v23  ;;  %vm827_vm2 = vcmp.ge.f32.partialorder %v706_v14, 0.0  ;;  %v891_v29 = vmul.f32 0.2, %v706_v14  ;;  %v591_v35 = vpop.f32.mrb[17].mxu0 }
 0x108   : > { %1275 = vst.msk [vmem:[%s1830_s24 + $0xb0] sm:$0xf] %vm1230_vm3, %v1537_v24  ;;  %v1540_v32 = vpack.c.bf16 %v957_v28, %v957_v28  ;;  %v923_v33 = vsel %vm795_vm1, %v578_v13, %v859_v26  ;;  %vm800_vm4 = vcmp.ge.f32.partialorder %v1616_v30, 0.0  ;;  %v864_v34 = vmul.f32 0.2, %v1616_v30  ;;  %v719_v36 = vpop.f32.mrb[17].mxu1 }
 0x109   : > { %1246 = vst.msk [vmem:[%s1830_s24 + $0x3c] sm:$0xf] %vm1230_vm3, %v1508_v27  ;;  %v1506_v37 = vpack.c.bf16 %v923_v33, %v923_v33  ;;  %v955_v38 = vsel %vm827_vm2, %v706_v14, %v891_v29  ;;  %vm832_vm5 = vcmp.ge.f32.partialorder %v1648_v31, 0.0  ;;  %v896_v39 = vmul.f32 0.2, %v1648_v31  ;;  %v1617_v40 = vpop.f32.mrb[18].mxu0 }
 0x10a   : > { %v1649_v41 = vpop.f32.mrb[18].mxu1  ;;  %1278 = vst.msk [vmem:[%s1830_s24 + $0xbc] sm:$0xf] %vm1230_vm3, %v1540_v32  ;;  %v1538_v42 = vpack.c.bf16 %v955_v38, %v955_v38  ;;  %v928_v43 = vsel %vm800_vm4, %v1616_v30, %v864_v34  ;;  %vm798_vm6 = vcmp.ge.f32.partialorder %v591_v35, 0.0  ;;  %v862_v44 = vmul.f32 0.2, %v591_v35 }
 0x10b   : > { %v594_v45 = vpop.f32.mrb[19].mxu0  ;;  %v722_v46 = vpop.f32.mrb[19].mxu1  ;;  %1244 = vst.msk [vmem:[%s1830_s24 + $0x34] sm:$0xf] %vm1230_vm3, %v1506_v37  ;;  %v1511_v47 = vpack.c.bf16 %v928_v43, %v928_v43  ;;  %v960_v48 = vsel %vm832_vm5, %v1648_v31, %v896_v39  ;;  %vm830_vm7 = vcmp.ge.f32.partialorder %v719_v36, 0.0  ;;  %vm801_vm8 = vcmp.ge.f32.partialorder %v1617_v40, 0.0 }
 0x10c   : > { %v894_v49 = vmul.f32 0.2, %v719_v36  ;;  %1276 = vst.msk [vmem:[%s1830_s24 + $0xb4] sm:$0xf] %vm1230_vm3, %v1538_v42  ;;  %v1543_v50 = vpack.c.bf16 %v960_v48, %v960_v48  ;;  %v926_v51 = vsel %vm798_vm6, %v591_v35, %v862_v44  ;;  %v865_v52 = vmul.f32 0.2, %v1617_v40 }
 0x10d   : > { %1249 = vst.msk [vmem:[%s1830_s24 + $0x48] sm:$0xf] %vm1230_vm3, %v1511_v47  ;;  %v1509_v53 = vpack.c.bf16 %v926_v51, %v926_v51  ;;  %vm833_vm9 = vcmp.ge.f32.partialorder %v1649_v41, 0.0  ;;  %v897_v55 = vmul.f32 0.2, %v1649_v41  ;;  %vm799_vm10 = vcmp.ge.f32.partialorder %v594_v45, 0.0 }
 0x10e   : > { %v958_v54 = vsel %vm830_vm7, %v719_v36, %v894_v49  ;;  %1281 = vst.msk [vmem:[%s1830_s24 + $0xc8] sm:$0xf] %vm1230_vm3, %v1543_v50  ;;  %v929_v57 = vsel %vm801_vm8, %v1617_v40, %v865_v52  ;;  %v863_v58 = vmul.f32 0.2, %v594_v45  ;;  %vm831_vm11 = vcmp.ge.f32.partialorder %v722_v46, 0.0  ;;  %v1620_v62 = vpop.f32.mrb[20].mxu0 }
 0x10f   : > { %v1541_v56 = vpack.c.bf16 %v958_v54, %v958_v54  ;;  %1247 = vst.msk [vmem:[%s1830_s24 + $0x40] sm:$0xf] %vm1230_vm3, %v1509_v53  ;;  %v1512_v59 = vpack.c.bf16 %v929_v57, %v929_v57  ;;  %v961_v60 = vsel %vm833_vm9, %v1649_v41, %v897_v55  ;;  %v895_v61 = vmul.f32 0.2, %v722_v46  ;;  %v1652_v63 = vpop.f32.mrb[20].mxu1  ;;  %v607_v3 = vpop.f32.mrb[21].mxu0 }
 0x110   : > { %v1544_v0 = vpack.c.bf16 %v961_v60, %v961_v60  ;;  %v927_v1 = vsel %vm799_vm10, %v594_v45, %v863_v58  ;;  %vm804_vm12 = vcmp.ge.f32.partialorder %v1620_v62, 0.0  ;;  %v868_v2 = vmul.f32 0.2, %v1620_v62  ;;  %v735_v4 = vpop.f32.mrb[21].mxu1  ;;  %v1621_v8 = vpop.f32.mrb[22].mxu0 }
 0x111   : > { %1279 = vst.msk [vmem:[%s1830_s24 + $0xc0] sm:$0xf] %vm1230_vm3, %v1541_v56  ;;  %1250 = vst.msk [vmem:[%s1830_s24 + $0x4c] sm:$0xf] %vm1230_vm3, %v1512_v59  ;;  %v1510_v5 = vpack.c.bf16 %v927_v1, %v927_v1  ;;  %v959_v6 = vsel %vm831_vm11, %v722_v46, %v895_v61  ;;  %vm836_vm13 = vcmp.ge.f32.partialorder %v1652_v63, 0.0  ;;  %v1653_v9 = vpop.f32.mrb[22].mxu1 }
 0x112   : > { %v900_v7 = vmul.f32 0.2, %v1652_v63  ;;  %1282 = vst.msk [vmem:[%s1830_s24 + $0xcc] sm:$0xf] %vm1230_vm3, %v1544_v0  ;;  %v1542_v10 = vpack.c.bf16 %v959_v6, %v959_v6  ;;  %v932_v11 = vsel %vm804_vm12, %v1620_v62, %v868_v2  ;;  %vm802_vm14 = vcmp.ge.f32.partialorder %v607_v3, 0.0  ;;  %v610_v13 = vpop.f32.mrb[23].mxu0 }
 0x113   : > { %v866_v12 = vmul.f32 0.2, %v607_v3  ;;  %v738_v14 = vpop.f32.mrb[23].mxu1  ;;  %1248 = vst.msk [vmem:[%s1830_s24 + $0x44] sm:$0xf] %vm1230_vm3, %v1510_v5  ;;  %v1515_v15 = vpack.c.bf16 %v932_v11, %v932_v11  ;;  %vm834_vm15 = vcmp.ge.f32.partialorder %v735_v4, 0.0 }
 0x114   : > { %v964_v16 = vsel %vm836_vm13, %v1652_v63, %v900_v7  ;;  %v898_v17 = vmul.f32 0.2, %v735_v4  ;;  %1280 = vst.msk [vmem:[%s1830_s24 + $0xc4] sm:$0xf] %vm1230_vm3, %v1542_v10  ;;  %vm805_vm0 = vcmp.ge.f32.partialorder %v1621_v8, 0.0  ;;  %vm837_vm1 = vcmp.ge.f32.partialorder %v1653_v9, 0.0 }
 0x115   : > { %v1547_v18 = vpack.c.bf16 %v964_v16, %v964_v16  ;;  %v930_v19 = vsel %vm802_vm14, %v607_v3, %v866_v12  ;;  %v869_v20 = vmul.f32 0.2, %v1621_v8  ;;  %1253 = vst.msk [vmem:[%s1830_s24 + $0x58] sm:$0xf] %vm1230_vm3, %v1515_v15  ;;  %v901_v23 = vmul.f32 0.2, %v1653_v9 }
 0x116   : > { %v1513_v21 = vpack.c.bf16 %v930_v19, %v930_v19  ;;  %v962_v22 = vsel %vm834_vm15, %v735_v4, %v898_v17  ;;  %vm803_vm2 = vcmp.ge.f32.partialorder %v610_v13, 0.0  ;;  %v867_v26 = vmul.f32 0.2, %v610_v13  ;;  %v1624_v30 = vpop.f32.mrb[24].mxu0  ;;  %v1656_v31 = vpop.f32.mrb[24].mxu1 }
 0x117   : > { %1285 = vst.msk [vmem:[%s1830_s24 + $0xd8] sm:$0xf] %vm1230_vm3, %v1547_v18  ;;  %v1545_v24 = vpack.c.bf16 %v962_v22, %v962_v22  ;;  %v933_v25 = vsel %vm805_vm0, %v1621_v8, %v869_v20  ;;  %v965_v28 = vsel %vm837_vm1, %v1653_v9, %v901_v23  ;;  %vm835_vm4 = vcmp.ge.f32.partialorder %v738_v14, 0.0  ;;  %v623_v35 = vpop.f32.mrb[25].mxu0  ;;  %v751_v36 = vpop.f32.mrb[25].mxu1 }
 0x118   : > { %1251 = vst.msk [vmem:[%s1830_s24 + $0x50] sm:$0xf] %vm1230_vm3, %v1513_v21  ;;  %v1516_v27 = vpack.c.bf16 %v933_v25, %v933_v25  ;;  %v899_v29 = vmul.f32 0.2, %v738_v14  ;;  %v1548_v32 = vpack.c.bf16 %v965_v28, %v965_v28  ;;  %v931_v33 = vsel %vm803_vm2, %v610_v13, %v867_v26  ;;  %v1625_v40 = vpop.f32.mrb[26].mxu0  ;;  %v1657_v41 = vpop.f32.mrb[26].mxu1 }
 0x119   : > { %1283 = vst.msk [vmem:[%s1830_s24 + $0xd0] sm:$0xf] %vm1230_vm3, %v1545_v24  ;;  %vm808_vm5 = vcmp.ge.f32.partialorder %v1624_v30, 0.0  ;;  %v872_v34 = vmul.f32 0.2, %v1624_v30  ;;  %v1514_v37 = vpack.c.bf16 %v931_v33, %v931_v33  ;;  %vm840_vm6 = vcmp.ge.f32.partialorder %v1656_v31, 0.0 }
 0x11a   : > { %1254 = vst.msk [vmem:[%s1830_s24 + $0x5c] sm:$0xf] %vm1230_vm3, %v1516_v27  ;;  %v963_v38 = vsel %vm835_vm4, %v738_v14, %v899_v29  ;;  %v904_v39 = vmul.f32 0.2, %v1656_v31  ;;  %1286 = vst.msk [vmem:[%s1830_s24 + $0xdc] sm:$0xf] %vm1230_vm3, %v1548_v32 }
 0x11b   : > { %v1546_v42 = vpack.c.bf16 %v963_v38, %v963_v38  ;;  %v936_v43 = vsel %vm808_vm5, %v1624_v30, %v872_v34  ;;  %vm806_vm7 = vcmp.ge.f32.partialorder %v623_v35, 0.0  ;;  %v870_v44 = vmul.f32 0.2, %v623_v35  ;;  %v626_v45 = vpop.f32.mrb[27].mxu0  ;;  %v754_v46 = vpop.f32.mrb[27].mxu1 }
 0x11c   : > { %1252 = vst.msk [vmem:[%s1830_s24 + $0x54] sm:$0xf] %vm1230_vm3, %v1514_v37  ;;  %v1519_v47 = vpack.c.bf16 %v936_v43, %v936_v43  ;;  %v968_v48 = vsel %vm840_vm6, %v1656_v31, %v904_v39  ;;  %vm838_vm8 = vcmp.ge.f32.partialorder %v751_v36, 0.0  ;;  %v902_v49 = vmul.f32 0.2, %v751_v36 }
 0x11d   : > { %1284 = vst.msk [vmem:[%s1830_s24 + $0xd4] sm:$0xf] %vm1230_vm3, %v1546_v42  ;;  %v1551_v50 = vpack.c.bf16 %v968_v48, %v968_v48  ;;  %v934_v51 = vsel %vm806_vm7, %v623_v35, %v870_v44  ;;  %vm809_vm9 = vcmp.ge.f32.partialorder %v1625_v40, 0.0  ;;  %v873_v52 = vmul.f32 0.2, %v1625_v40  ;;  %v1628_v62 = vpop.f32.mrb[28].mxu0 }
 0x11e   : > { %1257 = vst.msk [vmem:[%s1830_s24 + $0x68] sm:$0xf] %vm1230_vm3, %v1519_v47  ;;  %v1517_v53 = vpack.c.bf16 %v934_v51, %v934_v51  ;;  %v966_v54 = vsel %vm838_vm8, %v751_v36, %v902_v49  ;;  %vm841_vm10 = vcmp.ge.f32.partialorder %v1657_v41, 0.0  ;;  %v905_v55 = vmul.f32 0.2, %v1657_v41  ;;  %v1660_v63 = vpop.f32.mrb[28].mxu1 }
 0x11f   : > { %1289 = vst.msk [vmem:[%s1830_s24 + $0xe8] sm:$0xf] %vm1230_vm3, %v1551_v50  ;;  %v1549_v56 = vpack.c.bf16 %v966_v54, %v966_v54  ;;  %v937_v57 = vsel %vm809_vm9, %v1625_v40, %v873_v52  ;;  %vm807_vm11 = vcmp.ge.f32.partialorder %v626_v45, 0.0  ;;  %v871_v58 = vmul.f32 0.2, %v626_v45  ;;  %v639_v3 = vpop.f32.mrb[29].mxu0 }
 0x120   : > { %1255 = vst.msk [vmem:[%s1830_s24 + $0x60] sm:$0xf] %vm1230_vm3, %v1517_v53  ;;  %v1520_v59 = vpack.c.bf16 %v937_v57, %v937_v57  ;;  %v969_v60 = vsel %vm841_vm10, %v1657_v41, %v905_v55  ;;  %vm839_vm12 = vcmp.ge.f32.partialorder %v754_v46, 0.0  ;;  %v903_v61 = vmul.f32 0.2, %v754_v46  ;;  %v767_v4 = vpop.f32.mrb[29].mxu1 }
 0x121   : > { %1287 = vst.msk [vmem:[%s1830_s24 + $0xe0] sm:$0xf] %vm1230_vm3, %v1549_v56  ;;  %v1552_v0 = vpack.c.bf16 %v969_v60, %v969_v60  ;;  %v935_v1 = vsel %vm807_vm11, %v626_v45, %v871_v58  ;;  %vm812_vm13 = vcmp.ge.f32.partialorder %v1628_v62, 0.0  ;;  %v876_v2 = vmul.f32 0.2, %v1628_v62  ;;  %v1629_v8 = vpop.f32.mrb[30].mxu0 }
 0x122   : > { %1258 = vst.msk [vmem:[%s1830_s24 + $0x6c] sm:$0xf] %vm1230_vm3, %v1520_v59  ;;  %v1518_v5 = vpack.c.bf16 %v935_v1, %v935_v1  ;;  %v967_v6 = vsel %vm839_vm12, %v754_v46, %v903_v61  ;;  %vm844_vm14 = vcmp.ge.f32.partialorder %v1660_v63, 0.0  ;;  %v908_v7 = vmul.f32 0.2, %v1660_v63  ;;  %v1661_v9 = vpop.f32.mrb[30].mxu1 }
 0x123   : > { %1290 = vst.msk [vmem:[%s1830_s24 + $0xec] sm:$0xf] %vm1230_vm3, %v1552_v0  ;;  %v1550_v10 = vpack.c.bf16 %v967_v6, %v967_v6  ;;  %v940_v11 = vsel %vm812_vm13, %v1628_v62, %v876_v2  ;;  %vm810_vm15 = vcmp.ge.f32.partialorder %v639_v3, 0.0  ;;  %v874_v12 = vmul.f32 0.2, %v639_v3  ;;  %v642_v13 = vpop.f32.mrb[31].mxu0 }
 0x124   : > { %v770_v14 = vpop.f32.mrb[31].mxu1  ;;  %1256 = vst.msk [vmem:[%s1830_s24 + $0x64] sm:$0xf] %vm1230_vm3, %v1518_v5  ;;  %v1523_v15 = vpack.c.bf16 %v940_v11, %v940_v11  ;;  %v972_v16 = vsel %vm844_vm14, %v1660_v63, %v908_v7  ;;  %vm842_vm0 = vcmp.ge.f32.partialorder %v767_v4, 0.0  ;;  %v906_v17 = vmul.f32 0.2, %v767_v4 }
 0x125   : > { %1288 = vst.msk [vmem:[%s1830_s24 + $0xe4] sm:$0xf] %vm1230_vm3, %v1550_v10  ;;  %v1555_v18 = vpack.c.bf16 %v972_v16, %v972_v16  ;;  %v938_v19 = vsel %vm810_vm15, %v639_v3, %v874_v12  ;;  %vm813_vm1 = vcmp.ge.f32.partialorder %v1629_v8, 0.0  ;;  %v877_v20 = vmul.f32 0.2, %v1629_v8 }
 0x126   : > { %1261 = vst.msk [vmem:[%s1830_s24 + $0x78] sm:$0xf] %vm1230_vm3, %v1523_v15  ;;  %v1521_v21 = vpack.c.bf16 %v938_v19, %v938_v19  ;;  %v970_v22 = vsel %vm842_vm0, %v767_v4, %v906_v17  ;;  %vm845_vm2 = vcmp.ge.f32.partialorder %v1661_v9, 0.0  ;;  %v909_v23 = vmul.f32 0.2, %v1661_v9 }
 0x127   : > { %1293 = vst.msk [vmem:[%s1830_s24 + $0xf8] sm:$0xf] %vm1230_vm3, %v1555_v18  ;;  %v1553_v24 = vpack.c.bf16 %v970_v22, %v970_v22  ;;  %v941_v25 = vsel %vm813_vm1, %v1629_v8, %v877_v20  ;;  %vm811_vm4 = vcmp.ge.f32.partialorder %v642_v13, 0.0  ;;  %v875_v26 = vmul.f32 0.2, %v642_v13 }
 0x128   : > { %1259 = vst.msk [vmem:[%s1830_s24 + $0x70] sm:$0xf] %vm1230_vm3, %v1521_v21  ;;  %v1524_v27 = vpack.c.bf16 %v941_v25, %v941_v25  ;;  %v973_v28 = vsel %vm845_vm2, %v1661_v9, %v909_v23  ;;  %vm843_vm5 = vcmp.ge.f32.partialorder %v770_v14, 0.0  ;;  %v907_v29 = vmul.f32 0.2, %v770_v14 }
 0x129   : > { %1291 = vst.msk [vmem:[%s1830_s24 + $0xf0] sm:$0xf] %vm1230_vm3, %v1553_v24  ;;  %v1556_v30 = vpack.c.bf16 %v973_v28, %v973_v28  ;;  %v939_v31 = vsel %vm811_vm4, %v642_v13, %v875_v26 }
 0x12a   : > { %1262 = vst.msk [vmem:[%s1830_s24 + $0x7c] sm:$0xf] %vm1230_vm3, %v1524_v27  ;;  %v1522_v32 = vpack.c.bf16 %v939_v31, %v939_v31  ;;  %v971_v33 = vsel %vm843_vm5, %v770_v14, %v907_v29 }
 0x12b   : > { %1294 = vst.msk [vmem:[%s1830_s24 + $0xfc] sm:$0xf] %vm1230_vm3, %v1556_v30  ;;  %v1554_v34 = vpack.c.bf16 %v971_v33, %v971_v33 }
 0x12c   : > { %1260 = vst.msk [vmem:[%s1830_s24 + $0x74] sm:$0xf] %vm1230_vm3, %v1522_v32 }
 0x12d   : > { %1292 = vst.msk [vmem:[%s1830_s24 + $0xf4] sm:$0xf] %vm1230_vm3, %v1554_v34 }
 0x12e PF: > { %s12_s9 = sadd.s32 1, %s1717_s9  }
 0x12f   : > { %p9_p4 = scmp.ge.s32.totalorder %s12_s9, 6  }
 0x131   :  { %11 = sbr.rel (!%p9_p4) target bundleno = 1 (0x1), region = 58 }

// kernel: discriminator_forward.6
= control target key start
LH: loop header
LB: loop body
LE: loop exit
PB: predicated region body
PF: predicated region fallthrough
CT: control target
= control target key end

     0   :  { %s1296_s9 = smov 0   ;;  %s2060_s0 = inlined_call_operand.vmem [shape: bf16[2,256,128], index: 0, kind: input, shape index: {}]   ;;  %s2061_s1 = inlined_call_operand.vmem [shape: bf16[128,16], index: 1, kind: input, shape index: {}]   ;;  %s2062_s2 = inlined_call_operand.vmem [shape: bf16[2,256,16], index: 2, kind: output, shape index: {}]  }
   0x1 LB: > { %s1050_s10 = sadd.s32 4294967295, %s1279_s9   ;;  %p1054_p0 = scmp.ge.s32.totalorder %s1279_s9, 1  ;;  %s1279_s9 = sphi %s1296_s9, %s12_s9  }
   0x2   : > { %p112_p1 = scmp.lt.s32.totalorder %s1279_s9, 3 }
   0x4   : > { %p113_p2 = pnand %p1054_p0, %p112_p1 }
   0x5   : > { %v1247_v0 = vld [vmem:[%s2061_s1] sm:$0xff] (!%p113_p2)   ;;  %p134_p3 = scmp.lt.s32.totalorder (!%p113_p2), %s1050_s10, 1  ;;  %v1248_v1 = vld [vmem:[%s2061_s1 + $0x8] sm:$0xff] (!%p113_p2)   ;;  %v1249_v2 = vld [vmem:[%s2061_s1 + $0x10] sm:$0xff] (!%p113_p2)   ;;  %vm498_vm0 = vcmask (!%p113_p2), 130048  }
   0x6   : > { %116 = sbr.rel (%p113_p2) target bundleno = 481 (0x1e1), region = 28  ;;  %1175 = vmatprep.subr.bf16.mxu0 (!%p113_p2), %v1247_v0  ;;  %1223 = vmatprep.subr.bf16.mxu1 (!%p113_p2), %v1247_v0  ;;  %v1250_v3 = vld [vmem:[%s2061_s1 + $0x18] sm:$0xff] (!%p113_p2)   ;;  %v1251_v5 = vld [vmem:[%s2061_s1 + $0x20] sm:$0xff] (!%p113_p2)   ;;  %v1252_v6 = vld [vmem:[%s2061_s1 + $0x28] sm:$0xff] (!%p113_p2)  }
   0x7   : > { %1176 = vmatpush3.bf16.msra.mxu0 (!%p113_p2), %v1247_v0  ;;  %1231 = vmatpush3.bf16.msra.mxu1 (!%p113_p2), %v1247_v0  ;;  %v1253_v8 = vld [vmem:[%s2061_s1 + $0x30] sm:$0xff] (!%p113_p2)   ;;  %v1254_v9 = vld [vmem:[%s2061_s1 + $0x38] sm:$0xff] (!%p113_p2)  }
   0x8   : > { %1177 = vmatprep.subr.bf16.mxu0 (!%p113_p2), %v1248_v1  ;;  %1224 = vmatprep.subr.bf16.mxu1 (!%p113_p2), %v1248_v1 }
   0xb   : > { %1178 = vmatpush3.bf16.msra.mxu0 (!%p113_p2), %v1248_v1  ;;  %1232 = vmatpush3.bf16.msra.mxu1 (!%p113_p2), %v1248_v1 }
   0xc   : > { %1179 = vmatprep.subr.bf16.mxu0 (!%p113_p2), %v1249_v2  ;;  %1225 = vmatprep.subr.bf16.mxu1 (!%p113_p2), %v1249_v2 }
   0xd   : > { %s2078_s10 = smov (!%p134_p3, %s1050_s10), 1 }
   0xe   : > { %s1117_s17 = sshll.u32 %s2078_s10, 7 }
   0xf   : > { %s1321_s20 = scalar_lea.vmem %s2060_s0, %s1117_s17  ;;  %1180 = vmatpush3.bf16.msra.mxu0 %v1249_v2  ;;  %1233 = vmatpush3.bf16.msra.mxu1 %v1249_v2  ;;  %s1925_s5 = scalar_lea.vmem %s2062_s2, %s1117_s17 }
  0x10   : > { %v1255_v4 = vld [vmem:[%s1321_s20] sm:$0xff]   ;;  %1181 = vmatprep.subr.bf16.mxu0 %v1250_v3  ;;  %1226 = vmatprep.subr.bf16.mxu1 %v1250_v3  ;;  %v1256_v10 = vld [vmem:[%s1321_s20 + $0x8] sm:$0xff]   ;;  %v1257_v12 = vld [vmem:[%s1321_s20 + $0x10] sm:$0xff]  }
  0x11   : > { %1191 = vmatprep.mubr.bf16.mxu0 %v1255_v4  ;;  %v1263_v7 = vld [vmem:[%s1321_s20 + $0x40] sm:$0xff]   ;;  %v1264_v11 = vld [vmem:[%s1321_s20 + $0x48] sm:$0xff]   ;;  %v1265_v13 = vld [vmem:[%s1321_s20 + $0x50] sm:$0xff]  }
  0x12   : > { %1207 = vmatprep.mubr.bf16.mxu1 %v1263_v7  ;;  %v1258_v14 = vld [vmem:[%s1321_s20 + $0x18] sm:$0xff]   ;;  %v1259_v16 = vld [vmem:[%s1321_s20 + $0x20] sm:$0xff]   ;;  %v1260_v18 = vld [vmem:[%s1321_s20 + $0x28] sm:$0xff]  }
  0x13   : > { %1182 = vmatpush3.bf16.msra.mxu0 %v1250_v3  ;;  %1234 = vmatpush3.bf16.msra.mxu1 %v1250_v3  ;;  %v1266_v15 = vld [vmem:[%s1321_s20 + $0x58] sm:$0xff]   ;;  %v1267_v17 = vld [vmem:[%s1321_s20 + $0x60] sm:$0xff]   ;;  %v1268_v19 = vld [vmem:[%s1321_s20 + $0x68] sm:$0xff]  }
  0x14   : > { %1183 = vmatprep.subr.bf16.mxu0 %v1251_v5  ;;  %1227 = vmatprep.subr.bf16.mxu1 %v1251_v5  ;;  %v1261_v20 = vld [vmem:[%s1321_s20 + $0x30] sm:$0xff]   ;;  %v1262_v22 = vld [vmem:[%s1321_s20 + $0x38] sm:$0xff]  }
  0x15   : > { %v1269_v21 = vld [vmem:[%s1321_s20 + $0x70] sm:$0xff]   ;;  %v1270_v23 = vld [vmem:[%s1321_s20 + $0x78] sm:$0xff]  }
  0x17   : > { %1184 = vmatpush3.bf16.msra.mxu0 %v1251_v5  ;;  %1235 = vmatpush3.bf16.msra.mxu1 %v1251_v5 }
  0x18   : > { %1185 = vmatprep.subr.bf16.mxu0 %v1252_v6  ;;  %1228 = vmatprep.subr.bf16.mxu1 %v1252_v6 }
  0x1b   : > { %1186 = vmatpush3.bf16.msra.mxu0 %v1252_v6  ;;  %1236 = vmatpush3.bf16.msra.mxu1 %v1252_v6 }
  0x1c   : > { %1187 = vmatprep.subr.bf16.mxu0 %v1253_v8  ;;  %1229 = vmatprep.subr.bf16.mxu1 %v1253_v8 }
  0x1f   : > { %1188 = vmatpush3.bf16.msra.mxu0 %v1253_v8  ;;  %1237 = vmatpush3.bf16.msra.mxu1 %v1253_v8 }
  0x20   : > { %1189 = vmatprep.subr.bf16.mxu0 %v1254_v9  ;;  %1230 = vmatprep.subr.bf16.mxu1 %v1254_v9 }
  0x23   : > { %1190 = vmatpush3.bf16.msra.mxu0 %v1254_v9  ;;  %1238 = vmatpush3.bf16.msra.mxu1 %v1254_v9 }
  0x26   : > { %1192 = vmatmul.mubr.bf16.vlgmr.msra.gmra.mrb[0].mxu0 %v1256_v10  ;;  %1208 = vmatmul.mubr.bf16.vlgmr.msra.gmra.mrb[0].mxu1 %v1264_v11 }
  0x27   : > { %1195 = vmatprep.mubr.bf16.mxu0 %v1257_v12  ;;  %1211 = vmatprep.mubr.bf16.mxu1 %v1265_v13 }
  0x2e   : > { %1196 = vmatmul.mubr.bf16.gmra.mrb[4].mxu0 %v1258_v14  ;;  %1212 = vmatmul.mubr.bf16.gmra.mrb[4].mxu1 %v1266_v15 }
  0x2f   : > { %1199 = vmatprep.mubr.bf16.mxu0 %v1259_v16  ;;  %1215 = vmatprep.mubr.bf16.mxu1 %v1267_v17 }
  0x36   : > { %1200 = vmatmul.mubr.bf16.gmra.mrb[8].mxu0 %v1260_v18  ;;  %1216 = vmatmul.mubr.bf16.gmra.mrb[8].mxu1 %v1268_v19 }
  0x37   : > { %1203 = vmatprep.mubr.bf16.mxu0 %v1261_v20  ;;  %1219 = vmatprep.mubr.bf16.mxu1 %v1269_v21 }
  0x3e   : > { %1204 = vmatmul.mubr.bf16.gmra.mrb[12].mxu0 %v1262_v22  ;;  %1220 = vmatmul.mubr.bf16.gmra.mrb[12].mxu1 %v1270_v23 }
  0xf9   : > { %v1354_v24 = vpop.f32.mrb[0].mxu0  ;;  %v1356_v25 = vpop.f32.mrb[0].mxu1 }
  0xfa   : > { %v1358_v26 = vpop.f32.mrb[1].mxu0  ;;  %v1360_v27 = vpop.f32.mrb[1].mxu1  ;;  %v502_v35 = vsel %vm498_vm0, %v1354_v24, 0.0 }
  0xfb   : > { %v1362_v28 = vpop.f32.mrb[2].mxu0  ;;  %v1364_v29 = vpop.f32.mrb[2].mxu1  ;;  %v499_v32 = vsel %vm498_vm0, %v1358_v26, 0.0  ;;  %v530_v22 = vsel %vm498_vm0, %v1360_v27, 0.0 }
  0xfc   : > { %v1366_v30 = vpop.f32.mrb[3].mxu0  ;;  %v1368_v31 = vpop.f32.mrb[3].mxu1  ;;  %v504_v37 = vsel %vm498_vm0, %v1362_v28, 0.0 }
  0xfd   : > { %v500_v33 = vsel %vm498_vm0, %v1366_v30, 0.0 }
  0xfe   : > { %v501_v34 = vadd.f32 %v500_v33, %v499_v32  ;;  %v532_v33 = vsel %vm498_vm0, %v1368_v31, 0.0 }
 0x100   : > { %v503_v36 = vadd.f32 %v502_v35, %v501_v34  ;;  %v534_v35 = vsel %vm498_vm0, %v1356_v25, 0.0 }
 0x101   : > { %v1378_v38 = vpop.f32.mrb[4].mxu0  ;;  %v1380_v39 = vpop.f32.mrb[4].mxu1 }
 0x102   : > { %v1382_v40 = vpop.f32.mrb[5].mxu0  ;;  %v505_v41 = vadd.f32 %v504_v37, %v503_v36  ;;  %v1384_v42 = vpop.f32.mrb[5].mxu1  ;;  %v510_v51 = vsel %vm498_vm0, %v1378_v38, 0.0  ;;  %v536_v37 = vsel %vm498_vm0, %v1364_v29, 0.0 }
 0x103   : > { %v506_v43 = vsel %vm498_vm0, %v1382_v40, 0.0  ;;  %v1388_v44 = vpop.f32.mrb[6].mxu0  ;;  %v1390_v45 = vpop.f32.mrb[6].mxu1 }
 0x104   : > { %v507_v46 = vadd.f32 %v506_v43, %v505_v41  ;;  %v1392_v47 = vpop.f32.mrb[7].mxu0  ;;  %v1394_v48 = vpop.f32.mrb[7].mxu1  ;;  %v512_v53 = vsel %vm498_vm0, %v1388_v44, 0.0  ;;  %v538_v41 = vsel %vm498_vm0, %v1384_v42, 0.0 }
 0x105   : > { %v508_v49 = vsel %vm498_vm0, %v1392_v47, 0.0 }
 0x106   : > { %v509_v50 = vadd.f32 %v508_v49, %v507_v46  ;;  %v540_v49 = vsel %vm498_vm0, %v1394_v48, 0.0 }
 0x108   : > { %v511_v52 = vadd.f32 %v510_v51, %v509_v50  ;;  %v542_v51 = vsel %vm498_vm0, %v1380_v39, 0.0 }
 0x109   : > { %v1402_v54 = vpop.f32.mrb[8].mxu0  ;;  %v1404_v55 = vpop.f32.mrb[8].mxu1 }
 0x10a   : > { %v1406_v56 = vpop.f32.mrb[9].mxu0  ;;  %v513_v57 = vadd.f32 %v512_v53, %v511_v52  ;;  %v1408_v58 = vpop.f32.mrb[9].mxu1  ;;  %v518_v3 = vsel %vm498_vm0, %v1402_v54, 0.0  ;;  %v544_v53 = vsel %vm498_vm0, %v1390_v45, 0.0 }
 0x10b   : > { %v514_v59 = vsel %vm498_vm0, %v1406_v56, 0.0  ;;  %v1412_v60 = vpop.f32.mrb[10].mxu0  ;;  %v1414_v61 = vpop.f32.mrb[10].mxu1 }
 0x10c   : > { %v515_v62 = vadd.f32 %v514_v59, %v513_v57  ;;  %v1416_v63 = vpop.f32.mrb[11].mxu0  ;;  %v1418_v0 = vpop.f32.mrb[11].mxu1  ;;  %v520_v5 = vsel %vm498_vm0, %v1412_v60, 0.0  ;;  %v546_v57 = vsel %vm498_vm0, %v1408_v58, 0.0 }
 0x10d   : > { %v516_v1 = vsel %vm498_vm0, %v1416_v63, 0.0 }
 0x10e   : > { %v517_v2 = vadd.f32 %v516_v1, %v515_v62  ;;  %v548_v1 = vsel %vm498_vm0, %v1418_v0, 0.0 }
 0x110   : > { %v519_v4 = vadd.f32 %v518_v3, %v517_v2  ;;  %v550_v3 = vsel %vm498_vm0, %v1404_v55, 0.0 }
 0x111   : > { %v1426_v6 = vpop.f32.mrb[12].mxu0  ;;  %v1428_v7 = vpop.f32.mrb[12].mxu1 }
 0x112   : > { %v1430_v8 = vpop.f32.mrb[13].mxu0  ;;  %v521_v9 = vadd.f32 %v520_v5, %v519_v4  ;;  %v1432_v10 = vpop.f32.mrb[13].mxu1  ;;  %v526_v19 = vsel %vm498_vm0, %v1426_v6, 0.0  ;;  %v552_v5 = vsel %vm498_vm0, %v1414_v61, 0.0 }
 0x113   : > { %v522_v11 = vsel %vm498_vm0, %v1430_v8, 0.0  ;;  %v1436_v12 = vpop.f32.mrb[14].mxu0  ;;  %v1438_v13 = vpop.f32.mrb[14].mxu1 }
 0x114   : > { %v523_v14 = vadd.f32 %v522_v11, %v521_v9  ;;  %v422_v15 = vpop.f32.mrb[15].mxu0  ;;  %v1440_v16 = vpop.f32.mrb[15].mxu1  ;;  %v528_v21 = vsel %vm498_vm0, %v1436_v12, 0.0  ;;  %v554_v9 = vsel %vm498_vm0, %v1432_v10, 0.0 }
 0x115   : > { %v524_v17 = vsel %vm498_vm0, %v422_v15, 0.0 }
 0x116   : > { %v525_v18 = vadd.f32 %v524_v17, %v523_v14  ;;  %v556_v17 = vsel %vm498_vm0, %v1440_v16, 0.0 }
 0x118   : > { %v527_v20 = vadd.f32 %v526_v19, %v525_v18  ;;  %v558_v19 = vsel %vm498_vm0, %v1428_v7, 0.0 }
 0x11a   : > { %v529_v23 = vadd.f32 %v528_v21, %v527_v20  ;;  %v560_v21 = vsel %vm498_vm0, %v1438_v13, 0.0 }
 0x11c   : > { %v531_v32 = vadd.f32 %v530_v22, %v529_v23 }
 0x11e   : > { %v533_v34 = vadd.f32 %v532_v33, %v531_v32 }
 0x120   : > { %v535_v36 = vadd.f32 %v534_v35, %v533_v34 }
 0x122   : > { %v537_v43 = vadd.f32 %v536_v37, %v535_v36 }
 0x124   : > { %v539_v46 = vadd.f32 %v538_v41, %v537_v43 }
 0x126   : > { %v541_v50 = vadd.f32 %v540_v49, %v539_v46 }
 0x128   : > { %v543_v52 = vadd.f32 %v542_v51, %v541_v50 }
 0x12a   : > { %v545_v59 = vadd.f32 %v544_v53, %v543_v52 }
 0x12c   : > { %v547_v62 = vadd.f32 %v546_v57, %v545_v59 }
 0x12e   : > { %v549_v2 = vadd.f32 %v548_v1, %v547_v62 }
 0x130   : > { %v551_v4 = vadd.f32 %v550_v3, %v549_v2 }
 0x132   : > { %v553_v11 = vadd.f32 %v552_v5, %v551_v4 }
 0x134   : > { %v555_v14 = vadd.f32 %v554_v9, %v553_v11 }
 0x136   : > { %v557_v18 = vadd.f32 %v556_v17, %v555_v14 }
 0x138   : > { %v559_v20 = vadd.f32 %v558_v19, %v557_v18 }
 0x13a   : > { %v561_v22 = vadd.f32 %v560_v21, %v559_v20 }
 0x13c   : > { %v562_v23 = vrot.slane %v561_v22, 4 }
 0x13e   : > { %v563_v32 = vadd.f32 %v562_v23, %v561_v22 }
 0x140   : > { %v564_v33 = vrot.slane %v563_v32, 2 }
 0x142   : > { %v565_v34 = vadd.f32 %v564_v33, %v563_v32 }
 0x144   : > { %v566_v35 = vrot.slane %v565_v34, 1 }
 0x146   : > { %v567_v36 = vadd.f32 %v566_v35, %v565_v34 }
 0x148   : > { %v569_v37 = vmul.f32 0.00390625, %v567_v36 }
 0x14a   : > { %v1480_v41 = vsub.f32 %v1358_v26, %v569_v37  ;;  %v1483_v43 = vsub.f32 %v1366_v30, %v569_v37  ;;  %v1486_v46 = vsub.f32 %v1354_v24, %v569_v37  ;;  %v1489_v49 = vsub.f32 %v1362_v28, %v569_v37 }
 0x14b   : > { %v1492_v50 = vsub.f32 %v1382_v40, %v569_v37  ;;  %v1495_v51 = vsub.f32 %v1392_v47, %v569_v37  ;;  %v1498_v52 = vsub.f32 %v1378_v38, %v569_v37  ;;  %v1501_v26 = vsub.f32 %v1388_v44, %v569_v37 }
 0x14c   : > { %v1504_v30 = vsub.f32 %v1406_v56, %v569_v37  ;;  %v1507_v24 = vsub.f32 %v1416_v63, %v569_v37  ;;  %v1510_v28 = vsub.f32 %v1402_v54, %v569_v37  ;;  %v1513_v40 = vsub.f32 %v1412_v60, %v569_v37 }
 0x14d   : > { %v1516_v47 = vsub.f32 %v1430_v8, %v569_v37  ;;  %v1518_v38 = vsub.f32 %v422_v15, %v569_v37  ;;  %v1521_v44 = vsub.f32 %v1426_v6, %v569_v37  ;;  %v1524_v56 = vsub.f32 %v1436_v12, %v569_v37 }
 0x14e   : > { %v1527_v63 = vsub.f32 %v1360_v27, %v569_v37  ;;  %v1530_v54 = vsub.f32 %v1368_v31, %v569_v37  ;;  %v1533_v60 = vsub.f32 %v1356_v25, %v569_v37  ;;  %v1536_v8 = vsub.f32 %v1364_v29, %v569_v37 }
 0x14f   : > { %v1539_v15 = vsub.f32 %v1384_v42, %v569_v37  ;;  %v1542_v6 = vsub.f32 %v1394_v48, %v569_v37  ;;  %v1545_v12 = vsub.f32 %v1380_v39, %v569_v37  ;;  %v1548_v27 = vsub.f32 %v1390_v45, %v569_v37 }
 0x150   : > { %v1551_v31 = vsub.f32 %v1408_v58, %v569_v37  ;;  %v1554_v25 = vsub.f32 %v1418_v0, %v569_v37  ;;  %v1557_v29 = vsub.f32 %v1404_v55, %v569_v37  ;;  %v1560_v42 = vsub.f32 %v1414_v61, %v569_v37 }
 0x151   : > { %v1563_v48 = vsub.f32 %v1432_v10, %v569_v37  ;;  %v1566_v39 = vsub.f32 %v1440_v16, %v569_v37  ;;  %v1569_v45 = vsub.f32 %v1428_v7, %v569_v37  ;;  %v1572_v58 = vsub.f32 %v1438_v13, %v569_v37 }
 0x152   : > { %v602_v0 = vmul.f32 %v1480_v41, %v1480_v41  ;;  %v603_v55 = vmul.f32 %v1483_v43, %v1483_v43  ;;  %v604_v61 = vmul.f32 %v1486_v46, %v1486_v46  ;;  %v605_v10 = vmul.f32 %v1489_v49, %v1489_v49 }
 0x153   : > { %v606_v13 = vmul.f32 %v1492_v50, %v1492_v50  ;;  %v607_v62 = vmul.f32 %v1495_v51, %v1495_v51  ;;  %v608_v3 = vmul.f32 %v1498_v52, %v1498_v52  ;;  %v609_v9 = vmul.f32 %v1501_v26, %v1501_v26 }
 0x154   : > { %v634_v16 = vsel %vm498_vm0, %v602_v0, 0.0  ;;  %v635_v7 = vsel %vm498_vm0, %v603_v55, 0.0  ;;  %v637_v57 = vsel %vm498_vm0, %v604_v61, 0.0  ;;  %v639_v1 = vsel %vm498_vm0, %v605_v10, 0.0 }
 0x155   : > { %v636_v53 = vadd.f32 %v635_v7, %v634_v16  ;;  %v641_v4 = vsel %vm498_vm0, %v606_v13, 0.0  ;;  %v643_v11 = vsel %vm498_vm0, %v607_v62, 0.0  ;;  %v610_v17 = vmul.f32 %v1504_v30, %v1504_v30 }
 0x156   : > { %v645_v18 = vsel %vm498_vm0, %v608_v3, 0.0  ;;  %v611_v20 = vmul.f32 %v1507_v24, %v1507_v24  ;;  %v647_v21 = vsel %vm498_vm0, %v609_v9, 0.0  ;;  %v612_v23 = vmul.f32 %v1510_v28, %v1510_v28 }
 0x157   : > { %v638_v59 = vadd.f32 %v637_v57, %v636_v53  ;;  %v649_v32 = vsel %vm498_vm0, %v610_v17, 0.0  ;;  %v613_v34 = vmul.f32 %v1513_v40, %v1513_v40  ;;  %v614_v37 = vmul.f32 %v1516_v47, %v1516_v47 }
 0x158   : > { %v651_v35 = vsel %vm498_vm0, %v611_v20, 0.0  ;;  %v653_v0 = vsel %vm498_vm0, %v612_v23, 0.0  ;;  %v615_v61 = vmul.f32 %v1518_v38, %v1518_v38  ;;  %v616_v7 = vmul.f32 %v1521_v44, %v1521_v44 }
 0x159   : > { %v640_v2 = vadd.f32 %v639_v1, %v638_v59  ;;  %v655_v10 = vsel %vm498_vm0, %v613_v34, 0.0  ;;  %v657_v53 = vsel %vm498_vm0, %v614_v37, 0.0  ;;  %v617_v57 = vmul.f32 %v1524_v56, %v1524_v56 }
 0x15a   : > { %v659_v59 = vsel %vm498_vm0, %v615_v61, 0.0  ;;  %v618_v1 = vmul.f32 %v1527_v63, %v1527_v63 }
 0x15b   : > { %v642_v5 = vadd.f32 %v641_v4, %v640_v2  ;;  %v661_v2 = vsel %vm498_vm0, %v616_v7, 0.0  ;;  %v619_v4 = vmul.f32 %v1530_v54, %v1530_v54 }
 0x15d   : > { %v644_v14 = vadd.f32 %v643_v11, %v642_v5  ;;  %v663_v5 = vsel %vm498_vm0, %v617_v57, 0.0  ;;  %v620_v11 = vmul.f32 %v1533_v60, %v1533_v60 }
 0x15f   : > { %v646_v19 = vadd.f32 %v645_v18, %v644_v14  ;;  %v665_v14 = vsel %vm498_vm0, %v618_v1, 0.0  ;;  %v621_v18 = vmul.f32 %v1536_v8, %v1536_v8 }
 0x161   : > { %v648_v22 = vadd.f32 %v647_v21, %v646_v19  ;;  %v667_v19 = vsel %vm498_vm0, %v619_v4, 0.0  ;;  %v622_v21 = vmul.f32 %v1539_v15, %v1539_v15 }
 0x163   : > { %v650_v33 = vadd.f32 %v649_v32, %v648_v22  ;;  %v669_v22 = vsel %vm498_vm0, %v620_v11, 0.0  ;;  %v623_v32 = vmul.f32 %v1542_v6, %v1542_v6 }
 0x165   : > { %v652_v36 = vadd.f32 %v651_v35, %v650_v33  ;;  %v671_v33 = vsel %vm498_vm0, %v621_v18, 0.0  ;;  %v624_v35 = vmul.f32 %v1545_v12, %v1545_v12 }
 0x167   : > { %v654_v55 = vadd.f32 %v653_v0, %v652_v36  ;;  %v673_v36 = vsel %vm498_vm0, %v622_v21, 0.0  ;;  %v625_v0 = vmul.f32 %v1548_v27, %v1548_v27 }
 0x169   : > { %v656_v16 = vadd.f32 %v655_v10, %v654_v55  ;;  %v675_v55 = vsel %vm498_vm0, %v623_v32, 0.0  ;;  %v626_v10 = vmul.f32 %v1551_v31, %v1551_v31 }
 0x16b   : > { %v658_v13 = vadd.f32 %v657_v53, %v656_v16  ;;  %v677_v16 = vsel %vm498_vm0, %v624_v35, 0.0  ;;  %v627_v53 = vmul.f32 %v1554_v25, %v1554_v25 }
 0x16d   : > { %v660_v62 = vadd.f32 %v659_v59, %v658_v13  ;;  %v679_v13 = vsel %vm498_vm0, %v625_v0, 0.0  ;;  %v628_v59 = vmul.f32 %v1557_v29, %v1557_v29 }
 0x16f   : > { %v662_v3 = vadd.f32 %v661_v2, %v660_v62  ;;  %v681_v62 = vsel %vm498_vm0, %v626_v10, 0.0  ;;  %v629_v2 = vmul.f32 %v1560_v42, %v1560_v42 }
 0x171   : > { %v664_v9 = vadd.f32 %v663_v5, %v662_v3  ;;  %v683_v3 = vsel %vm498_vm0, %v627_v53, 0.0  ;;  %v630_v5 = vmul.f32 %v1563_v48, %v1563_v48 }
 0x173   : > { %v666_v17 = vadd.f32 %v665_v14, %v664_v9  ;;  %v685_v9 = vsel %vm498_vm0, %v628_v59, 0.0  ;;  %v631_v14 = vmul.f32 %v1566_v39, %v1566_v39 }
 0x175   : > { %v668_v20 = vadd.f32 %v667_v19, %v666_v17  ;;  %v687_v17 = vsel %vm498_vm0, %v629_v2, 0.0  ;;  %v632_v19 = vmul.f32 %v1569_v45, %v1569_v45 }
 0x177   : > { %v670_v23 = vadd.f32 %v669_v22, %v668_v20  ;;  %v689_v20 = vsel %vm498_vm0, %v630_v5, 0.0  ;;  %v633_v22 = vmul.f32 %v1572_v58, %v1572_v58 }
 0x179   : > { %v672_v34 = vadd.f32 %v671_v33, %v670_v23  ;;  %v691_v23 = vsel %vm498_vm0, %v631_v14, 0.0  ;;  %v693_v33 = vsel %vm498_vm0, %v632_v19, 0.0  ;;  %v695_v35 = vsel %vm498_vm0, %v633_v22, 0.0 }
 0x17b   : > { %v674_v37 = vadd.f32 %v673_v36, %v672_v34 }
 0x17d   : > { %v676_v61 = vadd.f32 %v675_v55, %v674_v37 }
 0x17f   : > { %v678_v7 = vadd.f32 %v677_v16, %v676_v61 }
 0x181   : > { %v680_v57 = vadd.f32 %v679_v13, %v678_v7 }
 0x183   : > { %v682_v1 = vadd.f32 %v681_v62, %v680_v57 }
 0x185   : > { %v684_v4 = vadd.f32 %v683_v3, %v682_v1 }
 0x187   : > { %v686_v11 = vadd.f32 %v685_v9, %v684_v4 }
 0x189   : > { %v688_v18 = vadd.f32 %v687_v17, %v686_v11 }
 0x18b   : > { %v690_v21 = vadd.f32 %v689_v20, %v688_v18 }
 0x18d   : > { %v692_v32 = vadd.f32 %v691_v23, %v690_v21 }
 0x18f   : > { %v694_v34 = vadd.f32 %v693_v33, %v692_v32 }
 0x191   : > { %v696_v36 = vadd.f32 %v695_v35, %v694_v34 }
 0x193   : > { %v697_v37 = vrot.slane %v696_v36, 4 }
 0x195   : > { %v698_v0 = vadd.f32 %v697_v37, %v696_v36 }
 0x197   : > { %v699_v55 = vrot.slane %v698_v0, 2 }
 0x199   : > { %v700_v61 = vadd.f32 %v699_v55, %v698_v0 }
 0x19b   : > { %v701_v10 = vrot.slane %v700_v61, 1 }
 0x19d   : > { %v702_v16 = vadd.f32 %v701_v10, %v700_v61 }
 0x19f   : > { %v703_v7 = vmul.f32 0.00390625, %v702_v16 }
 0x1a1   : > { %v704_v53 = vadd.f32 1e-05, %v703_v7 }
 0x1a3   : > { %1271 = vrsqrt.f32 %v704_v53 }
 0x1ad   : > { %v1272_v13 = vpop.eup %1271 }
 0x1ae   : > { %v1671_v57 = vmul.f32 %v1272_v13, %v1530_v54  ;;  %v1674_v59 = vmul.f32 %v1272_v13, %v1533_v60  ;;  %v1677_v62 = vmul.f32 %v1272_v13, %v1536_v8  ;;  %v1680_v1 = vmul.f32 %v1272_v13, %v1539_v15 }
 0x1af   : > { %v1683_v2 = vmul.f32 %v1272_v13, %v1542_v6  ;;  %v1686_v3 = vmul.f32 %v1272_v13, %v1545_v12  ;;  %v1689_v4 = vmul.f32 %v1272_v13, %v1548_v27  ;;  %v1692_v54 = vmul.f32 %v1272_v13, %v1551_v31 }
 0x1b0   : > { %v1695_v60 = vmul.f32 %v1272_v13, %v1554_v25  ;;  %v1698_v8 = vmul.f32 %v1272_v13, %v1557_v29  ;;  %v1701_v15 = vmul.f32 %v1272_v13, %v1560_v42  ;;  %v1704_v6 = vmul.f32 %v1272_v13, %v1563_v48 }
 0x1b1   : > { %v1707_v12 = vmul.f32 %v1272_v13, %v1566_v39  ;;  %v1710_v27 = vmul.f32 %v1272_v13, %v1569_v45  ;;  %v1713_v31 = vmul.f32 %v1272_v13, %v1572_v58  ;;  %v706_v25 = vmul.f32 %v1272_v13, %v1480_v41 }
 0x1b2   : > { %v707_v29 = vmul.f32 %v1272_v13, %v1483_v43  ;;  %v1718_v5 = vmul.f32 %v1272_v13, %v1486_v46  ;;  %v1721_v42 = vmul.f32 %v1272_v13, %v1489_v49  ;;  %v1724_v48 = vmul.f32 %v1272_v13, %v1492_v50 }
 0x1b3   : > { %v1727_v39 = vmul.f32 %v1272_v13, %v1495_v51  ;;  %v1730_v45 = vmul.f32 %v1272_v13, %v1498_v52  ;;  %v1733_v58 = vmul.f32 %v1272_v13, %v1501_v26  ;;  %v1736_v41 = vmul.f32 %v1272_v13, %v1504_v30 }
 0x1b4   : > { %v1739_v43 = vmul.f32 %v1272_v13, %v1507_v24  ;;  %v1742_v46 = vmul.f32 %v1272_v13, %v1510_v28  ;;  %v1745_v49 = vmul.f32 %v1272_v13, %v1513_v40  ;;  %v1748_v50 = vmul.f32 %v1272_v13, %v1516_v47 }
 0x1b5   : > { %v1751_v51 = vmul.f32 %v1272_v13, %v1518_v38  ;;  %v1754_v52 = vmul.f32 %v1272_v13, %v1521_v44  ;;  %v1757_v26 = vmul.f32 %v1272_v13, %v1524_v56  ;;  %v1760_v30 = vmul.f32 %v1272_v13, %v1527_v63 }
 0x1b6   : > { %vm738_vm1 = vcmp.ge.f32.partialorder %v706_v25, 0.0  ;;  %vm739_vm2 = vcmp.ge.f32.partialorder %v707_v29, 0.0  ;;  %vm740_vm3 = vcmp.ge.f32.partialorder %v1718_v5, 0.0  ;;  %vm741_vm4 = vcmp.ge.f32.partialorder %v1721_v42, 0.0 }
 0x1b7   : > { %vm742_vm5 = vcmp.ge.f32.partialorder %v1724_v48, 0.0  ;;  %vm743_vm6 = vcmp.ge.f32.partialorder %v1727_v39, 0.0  ;;  %vm744_vm7 = vcmp.ge.f32.partialorder %v1730_v45, 0.0  ;;  %vm745_vm8 = vcmp.ge.f32.partialorder %v1733_v58, 0.0 }
 0x1b8   : > { %vm748_vm11 = vcmp.ge.f32.partialorder %v1742_v46, 0.0  ;;  %v770_v24 = vmul.f32 0.2, %v706_v25  ;;  %v771_v28 = vmul.f32 0.2, %v707_v29  ;;  %vm753_vm0 = vcmp.ge.f32.partialorder %v1757_v26, 0.0 }
 0x1b9   : > { %v772_v40 = vmul.f32 0.2, %v1718_v5  ;;  %v773_v47 = vmul.f32 0.2, %v1721_v42  ;;  %v774_v38 = vmul.f32 0.2, %v1724_v48 }
 0x1ba   : > { %v775_v44 = vmul.f32 0.2, %v1727_v39  ;;  %vm758_vm12 = vcmp.ge.f32.partialorder %v1680_v1, 0.0  ;;  %v776_v56 = vmul.f32 0.2, %v1730_v45  ;;  %v1790_v11 = vsel %vm738_vm1, %v706_v25, %v770_v24 }
 0x1bb   : > { %v777_v63 = vmul.f32 0.2, %v1733_v58  ;;  %v778_v9 = vmul.f32 0.2, %v1736_v41  ;;  %vm762_vm14 = vcmp.ge.f32.partialorder %v1692_v54, 0.0  ;;  %vm763_vm13 = vcmp.ge.f32.partialorder %v1695_v60, 0.0 }
 0x1bc   : > { %v779_v14 = vmul.f32 0.2, %v1739_v43  ;;  %v780_v17 = vmul.f32 0.2, %v1742_v46  ;;  %v781_v18 = vmul.f32 0.2, %v1745_v49  ;;  %v1800_v19 = vsel %vm739_vm2, %v707_v29, %v771_v28 }
 0x1bd   : > { %vm765_vm15 = vcmp.ge.f32.partialorder %v1701_v15, 0.0  ;;  %vm766_vm10 = vcmp.ge.f32.partialorder %v1704_v6, 0.0  ;;  %vm767_vm9 = vcmp.ge.f32.partialorder %v1707_v12, 0.0  ;;  %v782_v20 = vmul.f32 0.2, %v1748_v50 }
 0x1be   : > { %v783_v21 = vmul.f32 0.2, %v1751_v51  ;;  %v784_v22 = vmul.f32 0.2, %v1754_v52  ;;  %v1812_v23 = vsel %vm740_vm3, %v1718_v5, %v772_v40  ;;  %vm768_vm2 = vcmp.ge.f32.partialorder %v1710_v27, 0.0 }
 0x1bf   : > { %vm769_vm1 = vcmp.ge.f32.partialorder %v1713_v31, 0.0  ;;  %v785_v32 = vmul.f32 0.2, %v1757_v26  ;;  %v786_v33 = vmul.f32 0.2, %v1760_v30  ;;  %v1822_v35 = vsel %vm741_vm4, %v1721_v42, %v773_v47 }
 0x1c0   : > { %v787_v34 = vmul.f32 0.2, %v1671_v57  ;;  %v788_v36 = vmul.f32 0.2, %v1674_v59  ;;  %v789_v37 = vmul.f32 0.2, %v1677_v62  ;;  %v806_v55 = vsel %vm742_vm5, %v1724_v48, %v774_v38 }
 0x1c1   : > { %v790_v0 = vmul.f32 0.2, %v1680_v1  ;;  %v791_v61 = vmul.f32 0.2, %v1683_v2  ;;  %v792_v10 = vmul.f32 0.2, %v1686_v3  ;;  %v807_v7 = vsel %vm743_vm6, %v1727_v39, %v775_v44 }
 0x1c2   : > { %v793_v16 = vmul.f32 0.2, %v1689_v4  ;;  %vm962_vm3 = vcmask 125952   ;;  %v794_v53 = vmul.f32 0.2, %v1692_v54  ;;  %v808_v29 = vsel %vm744_vm7, %v1730_v45, %v776_v56 }
 0x1c3   : > { %v795_v13 = vmul.f32 0.2, %v1695_v60  ;;  %v796_v25 = vmul.f32 0.2, %v1698_v8  ;;  %v797_v5 = vmul.f32 0.2, %v1701_v15  ;;  %v809_v39 = vsel %vm745_vm8, %v1733_v58, %v777_v63 }
 0x1c4   : > { %v798_v42 = vmul.f32 0.2, %v1704_v6  ;;  %v799_v48 = vmul.f32 0.2, %v1707_v12  ;;  %v800_v24 = vmul.f32 0.2, %v1710_v27  ;;  %v812_v47 = vsel %vm748_vm11, %v1742_v46, %v780_v17 }
 0x1c5   : > { %v801_v28 = vmul.f32 0.2, %v1713_v31  ;;  %vm2063_vm4 = vcmp.ge.f32.partialorder %v1736_v41, 0.0  ;;  %vm2064_vm5 = vcmp.ge.f32.partialorder %v1739_v43, 0.0  ;;  %vm2065_vm6 = vcmp.ge.f32.partialorder %v1745_v49, 0.0 }
 0x1c6   : > { %v810_v40 = vsel %vm2063_vm4, %v1736_v41, %v778_v9  ;;  %v811_v45 = vsel %vm2064_vm5, %v1739_v43, %v779_v14  ;;  %v813_v58 = vsel %vm2065_vm6, %v1745_v49, %v781_v18  ;;  %vm2066_vm7 = vcmp.ge.f32.partialorder %v1748_v50, 0.0 }
 0x1c7   : > { %v814_v38 = vsel %vm2066_vm7, %v1748_v50, %v782_v20  ;;  %vm2067_vm8 = vcmp.ge.f32.partialorder %v1751_v51, 0.0  ;;  %vm2068_vm4 = vcmp.ge.f32.partialorder %v1754_v52, 0.0  ;;  %v817_v46 = vsel %vm753_vm0, %v1757_v26, %v785_v32 }
 0x1c8   : > { %v815_v41 = vsel %vm2067_vm8, %v1751_v51, %v783_v21  ;;  %v816_v43 = vsel %vm2068_vm4, %v1754_v52, %v784_v22  ;;  %vm2069_vm11 = vcmp.ge.f32.partialorder %v1760_v30, 0.0  ;;  %vm2070_vm5 = vcmp.ge.f32.partialorder %v1671_v57, 0.0 }
 0x1c9   : > { %v818_v49 = vsel %vm2069_vm11, %v1760_v30, %v786_v33  ;;  %v819_v50 = vsel %vm2070_vm5, %v1671_v57, %v787_v34  ;;  %vm2071_vm6 = vcmp.ge.f32.partialorder %v1674_v59, 0.0  ;;  %vm2072_vm7 = vcmp.ge.f32.partialorder %v1677_v62, 0.0 }
 0x1ca   : > { %v1883_v51 = vsel %vm2071_vm6, %v1674_v59, %v788_v36  ;;  %v1888_v52 = vsel %vm2072_vm7, %v1677_v62, %v789_v37  ;;  %v1893_v26 = vsel %vm758_vm12, %v1680_v1, %v790_v0  ;;  %vm2073_vm0 = vcmp.ge.f32.partialorder %v1683_v2, 0.0 }
 0x1cb   : > { %v1898_v30 = vsel %vm2073_vm0, %v1683_v2, %v791_v61  ;;  %vm2074_vm8 = vcmp.ge.f32.partialorder %v1686_v3, 0.0  ;;  %vm2075_vm4 = vcmp.ge.f32.partialorder %v1689_v4, 0.0  ;;  %v1913_v62 = vsel %vm762_vm14, %v1692_v54, %v794_v53 }
 0x1cc   : > { %v1903_v57 = vsel %vm2074_vm8, %v1686_v3, %v792_v10  ;;  %v1908_v59 = vsel %vm2075_vm4, %v1689_v4, %v793_v16  ;;  %v1918_v1 = vsel %vm763_vm13, %v1695_v60, %v795_v13  ;;  %vm2076_vm12 = vcmp.ge.f32.partialorder %v1698_v8, 0.0 }
 0x1cd   : > { %v1930_v2 = vsel %vm2076_vm12, %v1698_v8, %v796_v25  ;;  %v1935_v3 = vsel %vm765_vm15, %v1701_v15, %v797_v5  ;;  %v1940_v4 = vsel %vm766_vm10, %v1704_v6, %v798_v42  ;;  %v1945_v54 = vsel %vm767_vm9, %v1707_v12, %v799_v48 }
 0x1ce   : > { %v1950_v60 = vsel %vm768_vm2, %v1710_v27, %v800_v24  ;;  %v1955_v8 = vsel %vm769_vm1, %v1713_v31, %v801_v28  ;;  %v1119_v15 = vpack.c.bf16 %v1790_v11, %v1790_v11  ;;  %v1120_v6 = vpack.c.bf16 %v1800_v19, %v1800_v19 }
 0x1cf   : > { %v1121_v12 = vpack.c.bf16 %v1812_v23, %v1812_v23  ;;  %v1122_v27 = vpack.c.bf16 %v1822_v35, %v1822_v35  ;;  %v1123_v44 = vpack.c.bf16 %v806_v55, %v806_v55  ;;  %v1124_v56 = vpack.c.bf16 %v807_v7, %v807_v7 }
 0x1d0   : > { %v1125_v31 = vpack.c.bf16 %v808_v29, %v808_v29  ;;  %v1126_v63 = vpack.c.bf16 %v809_v39, %v809_v39  ;;  %v1127_v9 = vpack.c.bf16 %v810_v40, %v810_v40  ;;  %v1128_v11 = vpack.c.bf16 %v811_v45, %v811_v45  ;;  %963 = vst.msk [vmem:[%s1925_s5] sm:$0xf] %vm962_vm3, %v1119_v15 }
 0x1d1   : > { %964 = vst.msk [vmem:[%s1925_s5 + $0x4] sm:$0xf] %vm962_vm3, %v1120_v6  ;;  %v1129_v14 = vpack.c.bf16 %v812_v47, %v812_v47  ;;  %v1130_v17 = vpack.c.bf16 %v813_v58, %v813_v58  ;;  %v1131_v18 = vpack.c.bf16 %v814_v38, %v814_v38  ;;  %v1132_v19 = vpack.c.bf16 %v815_v41, %v815_v41 }
 0x1d2   : > { %965 = vst.msk [vmem:[%s1925_s5 + $0x8] sm:$0xf] %vm962_vm3, %v1121_v12  ;;  %966 = vst.msk [vmem:[%s1925_s5 + $0xc] sm:$0xf] %vm962_vm3, %v1122_v27  ;;  %v1133_v20 = vpack.c.bf16 %v816_v43, %v816_v43  ;;  %v1134_v21 = vpack.c.bf16 %v817_v46, %v817_v46  ;;  %v1135_v22 = vpack.c.bf16 %v818_v49, %v818_v49 }
 0x1d3   : > { %967 = vst.msk [vmem:[%s1925_s5 + $0x10] sm:$0xf] %vm962_vm3, %v1123_v44  ;;  %968 = vst.msk [vmem:[%s1925_s5 + $0x14] sm:$0xf] %vm962_vm3, %v1124_v56  ;;  %v1136_v23 = vpack.c.bf16 %v819_v50, %v819_v50  ;;  %v1137_v32 = vpack.c.bf16 %v1883_v51, %v1883_v51  ;;  %v1138_v33 = vpack.c.bf16 %v1888_v52, %v1888_v52 }
 0x1d4   : > { %969 = vst.msk [vmem:[%s1925_s5 + $0x18] sm:$0xf] %vm962_vm3, %v1125_v31  ;;  %970 = vst.msk [vmem:[%s1925_s5 + $0x1c] sm:$0xf] %vm962_vm3, %v1126_v63  ;;  %v1139_v34 = vpack.c.bf16 %v1893_v26, %v1893_v26  ;;  %v1140_v35 = vpack.c.bf16 %v1898_v30, %v1898_v30  ;;  %v1141_v36 = vpack.c.bf16 %v1903_v57, %v1903_v57 }
 0x1d5   : > { %971 = vst.msk [vmem:[%s1925_s5 + $0x20] sm:$0xf] %vm962_vm3, %v1127_v9  ;;  %972 = vst.msk [vmem:[%s1925_s5 + $0x24] sm:$0xf] %vm962_vm3, %v1128_v11  ;;  %v1142_v37 = vpack.c.bf16 %v1908_v59, %v1908_v59  ;;  %v1143_v0 = vpack.c.bf16 %v1913_v62, %v1913_v62  ;;  %v1144_v55 = vpack.c.bf16 %v1918_v1, %v1918_v1 }
 0x1d6   : > { %973 = vst.msk [vmem:[%s1925_s5 + $0x28] sm:$0xf] %vm962_vm3, %v1129_v14  ;;  %974 = vst.msk [vmem:[%s1925_s5 + $0x2c] sm:$0xf] %vm962_vm3, %v1130_v17  ;;  %v1145_v61 = vpack.c.bf16 %v1930_v2, %v1930_v2  ;;  %v1146_v10 = vpack.c.bf16 %v1935_v3, %v1935_v3  ;;  %v1147_v16 = vpack.c.bf16 %v1940_v4, %v1940_v4 }
 0x1d7   : > { %975 = vst.msk [vmem:[%s1925_s5 + $0x30] sm:$0xf] %vm962_vm3, %v1131_v18  ;;  %976 = vst.msk [vmem:[%s1925_s5 + $0x34] sm:$0xf] %vm962_vm3, %v1132_v19  ;;  %v1148_v7 = vpack.c.bf16 %v1945_v54, %v1945_v54  ;;  %v1149_v53 = vpack.c.bf16 %v1950_v60, %v1950_v60  ;;  %v1150_v13 = vpack.c.bf16 %v1955_v8, %v1955_v8 }
 0x1d8   : > { %977 = vst.msk [vmem:[%s1925_s5 + $0x38] sm:$0xf] %vm962_vm3, %v1133_v20  ;;  %978 = vst.msk [vmem:[%s1925_s5 + $0x3c] sm:$0xf] %vm962_vm3, %v1134_v21 }
 0x1d9   : > { %979 = vst.msk [vmem:[%s1925_s5 + $0x40] sm:$0xf] %vm962_vm3, %v1135_v22  ;;  %980 = vst.msk [vmem:[%s1925_s5 + $0x44] sm:$0xf] %vm962_vm3, %v1136_v23 }
 0x1da   : > { %981 = vst.msk [vmem:[%s1925_s5 + $0x48] sm:$0xf] %vm962_vm3, %v1137_v32  ;;  %982 = vst.msk [vmem:[%s1925_s5 + $0x4c] sm:$0xf] %vm962_vm3, %v1138_v33 }
 0x1db   : > { %983 = vst.msk [vmem:[%s1925_s5 + $0x50] sm:$0xf] %vm962_vm3, %v1139_v34  ;;  %984 = vst.msk [vmem:[%s1925_s5 + $0x54] sm:$0xf] %vm962_vm3, %v1140_v35 }
 0x1dc   : > { %985 = vst.msk [vmem:[%s1925_s5 + $0x58] sm:$0xf] %vm962_vm3, %v1141_v36  ;;  %986 = vst.msk [vmem:[%s1925_s5 + $0x5c] sm:$0xf] %vm962_vm3, %v1142_v37 }
 0x1dd   : > { %987 = vst.msk [vmem:[%s1925_s5 + $0x60] sm:$0xf] %vm962_vm3, %v1143_v0  ;;  %988 = vst.msk [vmem:[%s1925_s5 + $0x64] sm:$0xf] %vm962_vm3, %v1144_v55 }
 0x1de   : > { %989 = vst.msk [vmem:[%s1925_s5 + $0x68] sm:$0xf] %vm962_vm3, %v1145_v61  ;;  %990 = vst.msk [vmem:[%s1925_s5 + $0x6c] sm:$0xf] %vm962_vm3, %v1146_v10 }
 0x1df   : > { %991 = vst.msk [vmem:[%s1925_s5 + $0x70] sm:$0xf] %vm962_vm3, %v1147_v16  ;;  %992 = vst.msk [vmem:[%s1925_s5 + $0x74] sm:$0xf] %vm962_vm3, %v1148_v7 }
 0x1e0   : > { %993 = vst.msk [vmem:[%s1925_s5 + $0x78] sm:$0xf] %vm962_vm3, %v1149_v53  ;;  %994 = vst.msk [vmem:[%s1925_s5 + $0x7c] sm:$0xf] %vm962_vm3, %v1150_v13 }
 0x1e1 PF: > { %s12_s9 = sadd.s32 1, %s1279_s9  }
 0x1e2   : > { %p9_p4 = scmp.ge.s32.totalorder %s12_s9, 4  }
 0x1e4   :  { %11 = sbr.rel (!%p9_p4) target bundleno = 1 (0x1), region = 58 }

// kernel: discriminator_forward.7
= control target key start
LH: loop header
LB: loop body
LE: loop exit
PB: predicated region body
PF: predicated region fallthrough
CT: control target
= control target key end

     0   :  { %s748_s9 = smov 0   ;;  %s859_s0 = inlined_call_operand.vmem [shape: bf16[2,64,256], index: 0, kind: input, shape index: {}]   ;;  %s860_s1 = inlined_call_operand.vmem [shape: bf16[256,32], index: 1, kind: input, shape index: {}]   ;;  %s861_s2 = inlined_call_operand.vmem [shape: bf16[2,64,32], index: 2, kind: output, shape index: {}]  }
   0x1 LB: > { %s578_s10 = sadd.s32 4294967295, %s731_s9   ;;  %p582_p0 = scmp.ge.s32.totalorder %s731_s9, 1  ;;  %s731_s9 = sphi %s748_s9, %s12_s9  }
   0x2   : > { %p112_p1 = scmp.lt.s32.totalorder %s731_s9, 3 }
   0x4   : > { %p113_p2 = pnand %p582_p0, %p112_p1 }
   0x5   : > { %v695_v0 = vld [vmem:[%s860_s1 + $0x40] sm:$0xff] (!%p113_p2)   ;;  %v697_v2 = vld [vmem:[%s860_s1 + $0x48] sm:$0xff] (!%p113_p2)   ;;  %p134_p3 = scmp.lt.s32.totalorder (!%p113_p2), %s578_s10, 1  ;;  %v699_v4 = vld [vmem:[%s860_s1 + $0x50] sm:$0xff] (!%p113_p2)   ;;  %vm386_vm0 = vcmask (!%p113_p2), 261120   ;;  %vm514_vm1 = vcmask (!%p113_p2), 257024  }
   0x6   : > { %116 = sbr.rel (%p113_p2) target bundleno = 348 (0x15c), region = 28  ;;  %v696_v1 = vld [vmem:[%s860_s1] sm:$0xff] (!%p113_p2)   ;;  %631 = vmatprep.subr.bf16.mxu0 (!%p113_p2), %v695_v0  ;;  %671 = vmatprep.subr.bf16.mxu1 (!%p113_p2), %v695_v0  ;;  %v698_v3 = vld [vmem:[%s860_s1 + $0x8] sm:$0xff] (!%p113_p2)   ;;  %v700_v5 = vld [vmem:[%s860_s1 + $0x10] sm:$0xff] (!%p113_p2)  }
   0x7   : > { %632 = vmatpush3.bf16.msra.mxu0 (!%p113_p2), %v696_v1  ;;  %679 = vmatpush3.bf16.msra.mxu1 (!%p113_p2), %v696_v1  ;;  %v701_v6 = vld [vmem:[%s860_s1 + $0x58] sm:$0xff] (!%p113_p2)   ;;  %v703_v8 = vld [vmem:[%s860_s1 + $0x60] sm:$0xff] (!%p113_p2)   ;;  %v705_v10 = vld [vmem:[%s860_s1 + $0x68] sm:$0xff] (!%p113_p2)  }
   0x8   : > { %633 = vmatprep.subr.bf16.mxu0 (!%p113_p2), %v697_v2  ;;  %672 = vmatprep.subr.bf16.mxu1 (!%p113_p2), %v697_v2  ;;  %v702_v7 = vld [vmem:[%s860_s1 + $0x18] sm:$0xff] (!%p113_p2)   ;;  %v704_v9 = vld [vmem:[%s860_s1 + $0x20] sm:$0xff] (!%p113_p2)   ;;  %v706_v13 = vld [vmem:[%s860_s1 + $0x28] sm:$0xff] (!%p113_p2)  }
   0x9   : > { %v707_v14 = vld [vmem:[%s860_s1 + $0x70] sm:$0xff] (!%p113_p2)   ;;  %v709_v16 = vld [vmem:[%s860_s1 + $0x78] sm:$0xff] (!%p113_p2)  }
   0xa   : > { %v708_v15 = vld [vmem:[%s860_s1 + $0x30] sm:$0xff] (!%p113_p2)   ;;  %v710_v17 = vld [vmem:[%s860_s1 + $0x38] sm:$0xff] (!%p113_p2)  }
   0xb   : > { %634 = vmatpush3.bf16.msra.mxu0 (!%p113_p2), %v698_v3  ;;  %680 = vmatpush3.bf16.msra.mxu1 (!%p113_p2), %v698_v3 }
   0xc   : > { %635 = vmatprep.subr.bf16.mxu0 (!%p113_p2), %v699_v4  ;;  %673 = vmatprep.subr.bf16.mxu1 (!%p113_p2), %v699_v4 }
   0xd   : > { %s863_s10 = smov (!%p134_p3, %s578_s10), 1 }
   0xe   : > { %s621_s27 = sshll.u32 %s863_s10, 6  ;;  %s622_s21 = sshll.u32 %s863_s10, 5 }
   0xf   : > { %636 = vmatpush3.bf16.msra.mxu0 %v700_v5  ;;  %681 = vmatpush3.bf16.msra.mxu1 %v700_v5  ;;  %s789_s4 = scalar_lea.vmem %s859_s0, %s621_s27  ;;  %s143_s10 = scalar_lea.vmem %s861_s2, %s622_s21 }
  0x10   : > { %637 = vmatprep.subr.bf16.mxu0 %v701_v6  ;;  %674 = vmatprep.subr.bf16.mxu1 %v701_v6  ;;  %v713_v11 = vld [vmem:[%s789_s4 + $0x4] ss:$8 sps:$4 sm:$0xff]   ;;  %v711_v18 = vld [vmem:[%s789_s4] ss:$8 sps:$4 sm:$0xff]   ;;  %v717_v20 = vld [vmem:[%s789_s4 + $0x14] ss:$8 sps:$4 sm:$0xff]  }
  0x11   : > { %v716_v12 = vld [vmem:[%s789_s4 + $0x24] ss:$8 sps:$4 sm:$0xff]   ;;  %353 = vmatprep.mubr.bf16.mxu0 %v713_v11  ;;  %v714_v19 = vld [vmem:[%s789_s4 + $0x20] ss:$8 sps:$4 sm:$0xff]   ;;  %v720_v21 = vld [vmem:[%s789_s4 + $0x34] ss:$8 sps:$4 sm:$0xff]  }
  0x12   : > { %369 = vmatprep.mubr.bf16.mxu1 %v716_v12  ;;  %v719_v22 = vld [vmem:[%s789_s4 + $0x10] ss:$8 sps:$4 sm:$0xff]  }
  0x13   : > { %638 = vmatpush3.bf16.msra.mxu0 %v702_v7  ;;  %682 = vmatpush3.bf16.msra.mxu1 %v702_v7  ;;  %v722_v23 = vld [vmem:[%s789_s4 + $0x30] ss:$8 sps:$4 sm:$0xff]  }
  0x14   : > { %639 = vmatprep.subr.bf16.mxu0 %v703_v8  ;;  %675 = vmatprep.subr.bf16.mxu1 %v703_v8 }
  0x17   : > { %640 = vmatpush3.bf16.msra.mxu0 %v704_v9  ;;  %683 = vmatpush3.bf16.msra.mxu1 %v704_v9 }
  0x18   : > { %641 = vmatprep.subr.bf16.mxu0 %v705_v10  ;;  %676 = vmatprep.subr.bf16.mxu1 %v705_v10 }
  0x1b   : > { %642 = vmatpush3.bf16.msra.mxu0 %v706_v13  ;;  %684 = vmatpush3.bf16.msra.mxu1 %v706_v13 }
  0x1c   : > { %643 = vmatprep.subr.bf16.mxu0 %v707_v14  ;;  %677 = vmatprep.subr.bf16.mxu1 %v707_v14 }
  0x1f   : > { %644 = vmatpush3.bf16.msra.mxu0 %v708_v15  ;;  %685 = vmatpush3.bf16.msra.mxu1 %v708_v15 }
  0x20   : > { %645 = vmatprep.subr.bf16.mxu0 %v709_v16  ;;  %678 = vmatprep.subr.bf16.mxu1 %v709_v16 }
  0x23   : > { %646 = vmatpush3.bf16.msra.mxu0 %v710_v17  ;;  %686 = vmatpush3.bf16.msra.mxu1 %v710_v17 }
  0x26   : > { %354 = vmatmul.mubr.bf16.vlgmr.msra.gmra.mrb[0].mxu0 %v711_v18  ;;  %370 = vmatmul.mubr.bf16.vlgmr.msra.gmra.mrb[0].mxu1 %v714_v19 }
  0x27   : > { %361 = vmatprep.mubr.bf16.mxu0 %v717_v20  ;;  %377 = vmatprep.mubr.bf16.mxu1 %v720_v21 }
  0x2e   : > { %362 = vmatmul.mubr.bf16.gmra.mrb[4].mxu0 %v719_v22  ;;  %378 = vmatmul.mubr.bf16.gmra.mrb[4].mxu1 %v722_v23 }
  0xf9   : > { %v647_v24 = vpop.f32.mrb[0].mxu0  ;;  %v659_v25 = vpop.f32.mrb[0].mxu1 }
  0xfa   : > { %v648_v26 = vpop.f32.mrb[1].mxu0  ;;  %v660_v27 = vpop.f32.mrb[1].mxu1 }
  0xfb   : > { %v649_v28 = vadd.f32 %v648_v26, %v647_v24  ;;  %v650_v29 = vpop.f32.mrb[2].mxu0  ;;  %v661_v30 = vadd.f32 %v660_v27, %v659_v25  ;;  %v662_v31 = vpop.f32.mrb[2].mxu1 }
  0xfc   : > { %v651_v32 = vpop.f32.mrb[3].mxu0  ;;  %v663_v33 = vpop.f32.mrb[3].mxu1 }
  0xfd   : > { %v652_v34 = vadd.f32 %v651_v32, %v650_v29  ;;  %v664_v35 = vadd.f32 %v663_v33, %v662_v31  ;;  %v387_v36 = vsel %vm386_vm0, %v649_v28, 0.0  ;;  %v394_v55 = vsel %vm386_vm0, %v661_v30, 0.0 }
  0xff   : > { %v388_v37 = vsel %vm386_vm0, %v652_v34, 0.0  ;;  %v396_v57 = vsel %vm386_vm0, %v664_v35, 0.0 }
 0x100   : > { %v389_v38 = vadd.f32 %v388_v37, %v387_v36 }
 0x101   : > { %v653_v39 = vpop.f32.mrb[4].mxu0  ;;  %v665_v40 = vpop.f32.mrb[4].mxu1 }
 0x102   : > { %v654_v41 = vpop.f32.mrb[5].mxu0  ;;  %v666_v42 = vpop.f32.mrb[5].mxu1 }
 0x103   : > { %v655_v43 = vadd.f32 %v654_v41, %v653_v39  ;;  %v656_v44 = vpop.f32.mrb[6].mxu0  ;;  %v667_v45 = vadd.f32 %v666_v42, %v665_v40  ;;  %v668_v46 = vpop.f32.mrb[6].mxu1 }
 0x104   : > { %v657_v47 = vpop.f32.mrb[7].mxu0  ;;  %v669_v48 = vpop.f32.mrb[7].mxu1 }
 0x105   : > { %v390_v49 = vsel %vm386_vm0, %v655_v43, 0.0  ;;  %v658_v50 = vadd.f32 %v657_v47, %v656_v44  ;;  %v670_v51 = vadd.f32 %v669_v48, %v668_v46  ;;  %v398_v58 = vsel %vm386_vm0, %v667_v45, 0.0 }
 0x106   : > { %v391_v52 = vadd.f32 %v390_v49, %v389_v38 }
 0x107   : > { %v392_v53 = vsel %vm386_vm0, %v658_v50, 0.0  ;;  %v400_v61 = vsel %vm386_vm0, %v670_v51, 0.0 }
 0x108   : > { %v393_v54 = vadd.f32 %v392_v53, %v391_v52 }
 0x10a   : > { %v395_v56 = vadd.f32 %v394_v55, %v393_v54 }
 0x10c   : > { %v397_v59 = vadd.f32 %v396_v57, %v395_v56 }
 0x10e   : > { %v399_v60 = vadd.f32 %v398_v58, %v397_v59 }
 0x110   : > { %v401_v62 = vadd.f32 %v400_v61, %v399_v60 }
 0x112   : > { %v402_v63 = vrot.slane %v401_v62, 4 }
 0x114   : > { %v403_v0 = vadd.f32 %v402_v63, %v401_v62 }
 0x116   : > { %v404_v1 = vrot.slane %v403_v0, 2 }
 0x118   : > { %v405_v2 = vadd.f32 %v404_v1, %v403_v0 }
 0x11a   : > { %v406_v3 = vrot.slane %v405_v2, 1 }
 0x11c   : > { %v407_v4 = vadd.f32 %v406_v3, %v405_v2 }
 0x11e   : > { %v409_v5 = vmul.f32 0.015625, %v407_v4 }
 0x120   : > { %v410_v6 = vsub.f32 %v649_v28, %v409_v5  ;;  %v411_v7 = vsub.f32 %v652_v34, %v409_v5  ;;  %v412_v8 = vsub.f32 %v655_v43, %v409_v5  ;;  %v413_v9 = vsub.f32 %v658_v50, %v409_v5 }
 0x121   : > { %v414_v10 = vsub.f32 %v661_v30, %v409_v5  ;;  %v415_v11 = vsub.f32 %v664_v35, %v409_v5  ;;  %v416_v12 = vsub.f32 %v667_v45, %v409_v5  ;;  %v417_v13 = vsub.f32 %v670_v51, %v409_v5 }
 0x122   : > { %v418_v14 = vmul.f32 %v410_v6, %v410_v6  ;;  %v419_v15 = vmul.f32 %v411_v7, %v411_v7  ;;  %v420_v16 = vmul.f32 %v412_v8, %v412_v8  ;;  %v421_v17 = vmul.f32 %v413_v9, %v413_v9 }
 0x123   : > { %v422_v21 = vmul.f32 %v414_v10, %v414_v10  ;;  %v423_v24 = vmul.f32 %v415_v11, %v415_v11  ;;  %v424_v27 = vmul.f32 %v416_v12, %v416_v12  ;;  %v425_v30 = vmul.f32 %v417_v13, %v417_v13 }
 0x124   : > { %v426_v18 = vsel %vm386_vm0, %v418_v14, 0.0  ;;  %v427_v19 = vsel %vm386_vm0, %v419_v15, 0.0  ;;  %v429_v22 = vsel %vm386_vm0, %v420_v16, 0.0  ;;  %v431_v25 = vsel %vm386_vm0, %v421_v17, 0.0 }
 0x125   : > { %v428_v20 = vadd.f32 %v427_v19, %v426_v18  ;;  %v433_v28 = vsel %vm386_vm0, %v422_v21, 0.0  ;;  %v435_v31 = vsel %vm386_vm0, %v423_v24, 0.0  ;;  %v437_v33 = vsel %vm386_vm0, %v424_v27, 0.0 }
 0x126   : > { %v439_v35 = vsel %vm386_vm0, %v425_v30, 0.0 }
 0x127   : > { %v430_v23 = vadd.f32 %v429_v22, %v428_v20 }
 0x129   : > { %v432_v26 = vadd.f32 %v431_v25, %v430_v23 }
 0x12b   : > { %v434_v29 = vadd.f32 %v433_v28, %v432_v26 }
 0x12d   : > { %v436_v32 = vadd.f32 %v435_v31, %v434_v29 }
 0x12f   : > { %v438_v34 = vadd.f32 %v437_v33, %v436_v32 }
 0x131   : > { %v440_v36 = vadd.f32 %v439_v35, %v438_v34 }
 0x133   : > { %v441_v37 = vrot.slane %v440_v36, 4 }
 0x135   : > { %v442_v38 = vadd.f32 %v441_v37, %v440_v36 }
 0x137   : > { %v443_v39 = vrot.slane %v442_v38, 2 }
 0x139   : > { %v444_v40 = vadd.f32 %v443_v39, %v442_v38 }
 0x13b   : > { %v445_v41 = vrot.slane %v444_v40, 1 }
 0x13d   : > { %v446_v42 = vadd.f32 %v445_v41, %v444_v40 }
 0x13f   : > { %v447_v43 = vmul.f32 0.015625, %v446_v42 }
 0x141   : > { %v448_v44 = vadd.f32 1e-05, %v447_v43 }
 0x143   : > { %723 = vrsqrt.f32 %v448_v44 }
 0x14d   : > { %v724_v45 = vpop.eup %723 }
 0x14e   : > { %v450_v46 = vmul.f32 %v724_v45, %v410_v6  ;;  %v451_v47 = vmul.f32 %v724_v45, %v411_v7  ;;  %v452_v48 = vmul.f32 %v724_v45, %v412_v8  ;;  %v453_v49 = vmul.f32 %v724_v45, %v413_v9 }
 0x14f   : > { %v454_v50 = vmul.f32 %v724_v45, %v414_v10  ;;  %v455_v51 = vmul.f32 %v724_v45, %v415_v11  ;;  %v456_v52 = vmul.f32 %v724_v45, %v416_v12  ;;  %v457_v53 = vmul.f32 %v724_v45, %v417_v13 }
 0x150   : > { %vm458_vm2 = vcmp.ge.f32.partialorder %v450_v46, 0.0  ;;  %vm459_vm3 = vcmp.ge.f32.partialorder %v451_v47, 0.0  ;;  %vm460_vm4 = vcmp.ge.f32.partialorder %v452_v48, 0.0  ;;  %vm461_vm5 = vcmp.ge.f32.partialorder %v453_v49, 0.0 }
 0x151   : > { %vm462_vm6 = vcmp.ge.f32.partialorder %v454_v50, 0.0  ;;  %vm463_vm7 = vcmp.ge.f32.partialorder %v455_v51, 0.0  ;;  %vm464_vm8 = vcmp.ge.f32.partialorder %v456_v52, 0.0  ;;  %vm465_vm9 = vcmp.ge.f32.partialorder %v457_v53, 0.0 }
 0x152   : > { %v466_v54 = vmul.f32 0.2, %v450_v46  ;;  %v467_v55 = vmul.f32 0.2, %v451_v47  ;;  %v468_v56 = vmul.f32 0.2, %v452_v48 }
 0x153   : > { %v469_v57 = vmul.f32 0.2, %v453_v49  ;;  %v470_v58 = vmul.f32 0.2, %v454_v50  ;;  %v471_v59 = vmul.f32 0.2, %v455_v51 }
 0x154   : > { %v472_v60 = vmul.f32 0.2, %v456_v52  ;;  %v473_v61 = vmul.f32 0.2, %v457_v53  ;;  %v474_v62 = vsel %vm458_vm2, %v450_v46, %v466_v54  ;;  %v475_v63 = vsel %vm459_vm3, %v451_v47, %v467_v55 }
 0x155   : > { %v476_v0 = vsel %vm460_vm4, %v452_v48, %v468_v56  ;;  %v477_v1 = vsel %vm461_vm5, %v453_v49, %v469_v57  ;;  %v478_v2 = vsel %vm462_vm6, %v454_v50, %v470_v58  ;;  %v479_v3 = vsel %vm463_vm7, %v455_v51, %v471_v59 }
 0x156   : > { %v480_v4 = vsel %vm464_vm8, %v456_v52, %v472_v60  ;;  %v481_v5 = vsel %vm465_vm9, %v457_v53, %v473_v61  ;;  %v623_v6 = vpack.c.bf16 %v474_v62, %v474_v62  ;;  %v624_v7 = vpack.c.bf16 %v475_v63, %v475_v63 }
 0x157   : > { %v625_v8 = vpack.c.bf16 %v476_v0, %v476_v0  ;;  %v626_v9 = vpack.c.bf16 %v477_v1, %v477_v1  ;;  %v627_v10 = vpack.c.bf16 %v478_v2, %v478_v2  ;;  %v628_v11 = vpack.c.bf16 %v479_v3, %v479_v3 }
 0x158   : > { %v629_v12 = vpack.c.bf16 %v480_v4, %v480_v4  ;;  %v630_v13 = vpack.c.bf16 %v481_v5, %v481_v5  ;;  %515 = vst.msk [vmem:[%s143_s10] sm:$0xf] %vm514_vm1, %v623_v6  ;;  %516 = vst.msk [vmem:[%s143_s10 + $0x4] sm:$0xf] %vm514_vm1, %v624_v7 }
 0x159   : > { %517 = vst.msk [vmem:[%s143_s10 + $0x8] sm:$0xf] %vm514_vm1, %v625_v8  ;;  %518 = vst.msk [vmem:[%s143_s10 + $0xc] sm:$0xf] %vm514_vm1, %v626_v9 }
 0x15a   : > { %519 = vst.msk [vmem:[%s143_s10 + $0x10] sm:$0xf] %vm514_vm1, %v627_v10  ;;  %520 = vst.msk [vmem:[%s143_s10 + $0x14] sm:$0xf] %vm514_vm1, %v628_v11 }
 0x15b   : > { %521 = vst.msk [vmem:[%s143_s10 + $0x18] sm:$0xf] %vm514_vm1, %v629_v12  ;;  %522 = vst.msk [vmem:[%s143_s10 + $0x1c] sm:$0xf] %vm514_vm1, %v630_v13 }
 0x15c PF: > { %s12_s9 = sadd.s32 1, %s731_s9  }
 0x15d   : > { %p9_p4 = scmp.ge.s32.totalorder %s12_s9, 4  }
 0x15f   :  { %11 = sbr.rel (!%p9_p4) target bundleno = 1 (0x1), region = 58 }

// kernel: discriminator_forward.8
= control target key start
LH: loop header
LB: loop body
LE: loop exit
PB: predicated region body
PF: predicated region fallthrough
CT: control target
= control target key end

     0   :  { %s1041_s9 = smov 0   ;;  %s1191_s0 = inlined_call_operand.vmem [shape: bf16[2,49,512], index: 0, kind: input, shape index: {}]   ;;  %s1192_s1 = inlined_call_operand.vmem [shape: bf16[512,64], index: 1, kind: input, shape index: {}]   ;;  %s1193_s2 = inlined_call_operand.vmem [shape: bf16[2,49,64], index: 2, kind: output, shape index: {}]  }
   0x1 LB: > { %s801_s10 = sadd.s32 4294967295, %s1024_s9   ;;  %p805_p0 = scmp.ge.s32.totalorder %s1024_s9, 1  ;;  %s1024_s9 = sphi %s1041_s9, %s12_s9  }
   0x2   : > { %p112_p1 = scmp.lt.s32.totalorder %s1024_s9, 3 }
   0x4   : > { %p113_p2 = pnand %p805_p0, %p112_p1 }
   0x5   : > { %v962_v0 = vld [vmem:[%s1192_s1 + $0x40] sm:$0xff] (!%p113_p2)   ;;  %v966_v4 = vld [vmem:[%s1192_s1 + $0x48] sm:$0xff] (!%p113_p2)   ;;  %v970_v8 = vld [vmem:[%s1192_s1 + $0x50] sm:$0xff] (!%p113_p2)   ;;  %p134_p3 = scmp.lt.s32.totalorder (!%p113_p2), %s801_s10, 1  ;;  %vm617_vm0 = vcmask (!%p113_p2), 523264   ;;  %vm629_vm1 = vcmask (!%p113_p2), 516096  }
   0x6   : > { %116 = sbr.rel (%p113_p2) target bundleno = 355 (0x163), region = 28  ;;  %v963_v1 = vld [vmem:[%s1192_s1 + $0xc0] sm:$0xff] (!%p113_p2)   ;;  %872 = vmatprep.subr.bf16.mxu0 (!%p113_p2), %v962_v0  ;;  %v967_v5 = vld [vmem:[%s1192_s1 + $0xc8] sm:$0xff] (!%p113_p2)   ;;  %v971_v9 = vld [vmem:[%s1192_s1 + $0xd0] sm:$0xff] (!%p113_p2)   ;;  %vm733_vm2 = vcmask (!%p113_p2), 519168  }
   0x7   : > { %v964_v2 = vld [vmem:[%s1192_s1] sm:$0xff] (!%p113_p2)   ;;  %912 = vmatprep.subr.bf16.mxu1 (!%p113_p2), %v963_v1  ;;  %v968_v6 = vld [vmem:[%s1192_s1 + $0x8] sm:$0xff] (!%p113_p2)   ;;  %v972_v10 = vld [vmem:[%s1192_s1 + $0x10] sm:$0xff] (!%p113_p2)   ;;  %vm741_vm3 = vsmask.f32 (!%p113_p2), 256 }
   0x8   : > { %v965_v3 = vld [vmem:[%s1192_s1 + $0x80] sm:$0xff] (!%p113_p2)   ;;  %873 = vmatpush3.bf16.msra.mxu0 (!%p113_p2), %v964_v2  ;;  %v969_v7 = vld [vmem:[%s1192_s1 + $0x88] sm:$0xff] (!%p113_p2)   ;;  %v973_v11 = vld [vmem:[%s1192_s1 + $0x90] sm:$0xff] (!%p113_p2)  }
   0x9   : > { %913 = vmatpush3.bf16.msra.mxu1 (!%p113_p2), %v965_v3  ;;  %874 = vmatprep.subr.bf16.mxu0 (!%p113_p2), %v966_v4  ;;  %v974_v12 = vld [vmem:[%s1192_s1 + $0x58] sm:$0xff] (!%p113_p2)   ;;  %v978_v16 = vld [vmem:[%s1192_s1 + $0x60] sm:$0xff] (!%p113_p2)   ;;  %v982_v20 = vld [vmem:[%s1192_s1 + $0x68] sm:$0xff] (!%p113_p2)  }
   0xa   : > { %914 = vmatprep.subr.bf16.mxu1 (!%p113_p2), %v967_v5  ;;  %v975_v13 = vld [vmem:[%s1192_s1 + $0xd8] sm:$0xff] (!%p113_p2)   ;;  %v979_v17 = vld [vmem:[%s1192_s1 + $0xe0] sm:$0xff] (!%p113_p2)   ;;  %v983_v21 = vld [vmem:[%s1192_s1 + $0xe8] sm:$0xff] (!%p113_p2)  }
   0xb   : > { %v976_v14 = vld [vmem:[%s1192_s1 + $0x18] sm:$0xff] (!%p113_p2)   ;;  %v980_v18 = vld [vmem:[%s1192_s1 + $0x20] sm:$0xff] (!%p113_p2)   ;;  %v984_v22 = vld [vmem:[%s1192_s1 + $0x28] sm:$0xff] (!%p113_p2)  }
   0xc   : > { %875 = vmatpush3.bf16.msra.mxu0 (!%p113_p2), %v968_v6  ;;  %v977_v15 = vld [vmem:[%s1192_s1 + $0x98] sm:$0xff] (!%p113_p2)   ;;  %v981_v19 = vld [vmem:[%s1192_s1 + $0xa0] sm:$0xff] (!%p113_p2)   ;;  %v985_v23 = vld [vmem:[%s1192_s1 + $0xa8] sm:$0xff] (!%p113_p2)  }
   0xd   : > { %915 = vmatpush3.bf16.msra.mxu1 %v969_v7  ;;  %876 = vmatprep.subr.bf16.mxu0 %v970_v8  ;;  %s1195_s10 = smov (!%p134_p3, %s801_s10), 1  ;;  %v986_v24 = vld [vmem:[%s1192_s1 + $0x70] sm:$0xff]   ;;  %v990_v28 = vld [vmem:[%s1192_s1 + $0x78] sm:$0xff]   ;;  %vm742_vm11 = vmand %vm629_vm1, %vm741_vm3 }
   0xe   : > { %916 = vmatprep.subr.bf16.mxu1 %v971_v9  ;;  %v987_v25 = vld [vmem:[%s1192_s1 + $0xf0] sm:$0xff]   ;;  %s952_s11 = smul.u32 112, %s1195_s10  ;;  %v991_v29 = vld [vmem:[%s1192_s1 + $0xf8] sm:$0xff]  }
   0xf   : > { %v988_v26 = vld [vmem:[%s1192_s1 + $0x30] sm:$0xff]   ;;  %v992_v30 = vld [vmem:[%s1192_s1 + $0x38] sm:$0xff]   ;;  %s953_s27 = smul.u32 28, %s1195_s10 }
  0x10   : > { %877 = vmatpush3.bf16.msra.mxu0 %v972_v10  ;;  %v989_v27 = vld [vmem:[%s1192_s1 + $0xb0] sm:$0xff]   ;;  %s138_s22 = scalar_lea.vmem %s1191_s0, %s952_s11  ;;  %v993_v31 = vld [vmem:[%s1192_s1 + $0xb8] sm:$0xff]  }
  0x11   : > { %917 = vmatpush3.bf16.msra.mxu1 %v973_v11  ;;  %878 = vmatprep.subr.bf16.mxu0 %v974_v12  ;;  %v994_v32 = vld [vmem:[%s138_s22] ss:$16 sps:$4 sm:$0xff]   ;;  %v996_v33 = vld [vmem:[%s138_s22 + $0x4] ss:$16 sps:$4 sm:$0xff]   ;;  %v997_v34 = vld [vmem:[%s138_s22 + $0x8] ss:$16 sps:$4 sm:$0xff]   ;;  %s143_s30 = scalar_lea.vmem %s1193_s2, %s953_s27 }
  0x12   : > { %918 = vmatprep.subr.bf16.mxu1 %v975_v13  ;;  %v999_v35 = vld [vmem:[%s138_s22 + $0xc] ss:$16 sps:$4 sm:$0xff]   ;;  %521 = vmatprep.mubr.bf16.mxu0 %v996_v33  ;;  %v1000_v36 = vld [vmem:[%s138_s22 + $0x24] ss:$16 sps:$4 sm:$0xff]   ;;  %v1004_v38 = vld [vmem:[%s138_s22 + $0x20] ss:$16 sps:$4 sm:$0xff]  }
  0x13   : > { %585 = vmatprep.mubr.bf16.mxu1 %v999_v35  ;;  %v1002_v37 = vld [vmem:[%s138_s22 + $0x2c] ss:$16 sps:$4 sm:$0xff]   ;;  %v1005_v39 = vld [vmem:[%s138_s22 + $0x28] ss:$16 sps:$4 sm:$0xff]   ;;  %v1006_v40 = vld [vmem:[%s138_s22 + $0x44] ss:$16 sps:$4 sm:$0xff]  }
  0x14   : > { %879 = vmatpush3.bf16.msra.mxu0 %v976_v14  ;;  %v1008_v41 = vld [vmem:[%s138_s22 + $0x4c] ss:$16 sps:$4 sm:$0xff]   ;;  %v157_v42 = vld [vmem:[%s138_s22 + $0x60] sm:$0x11]  ;;  %v1011_v45 = vld [vmem:[%s138_s22 + $0x48] ss:$16 sps:$4 sm:$0xff]  }
  0x15   : > { %919 = vmatpush3.bf16.msra.mxu1 %v977_v15  ;;  %880 = vmatprep.subr.bf16.mxu0 %v978_v16  ;;  %v158_v43 = vld [vmem:[%s138_s22 + $0x68] sm:$0x11]  ;;  %v1010_v44 = vld [vmem:[%s138_s22 + $0x40] ss:$16 sps:$4 sm:$0xff]   ;;  %v821_v46 = vcombine.high %v157_v42, %v157_v42  ;;  %v820_v48 = vcombine.low %v157_v42, %v157_v42 }
  0x16   : > { %920 = vmatprep.subr.bf16.mxu1 %v979_v17  ;;  %v823_v47 = vcombine.high %v158_v43, %v158_v43  ;;  %v822_v49 = vcombine.low %v158_v43, %v158_v43 }
  0x18   : > { %881 = vmatpush3.bf16.msra.mxu0 %v980_v18 }
  0x19   : > { %921 = vmatpush3.bf16.msra.mxu1 %v981_v19  ;;  %882 = vmatprep.subr.bf16.mxu0 %v982_v20 }
  0x1a   : > { %922 = vmatprep.subr.bf16.mxu1 %v983_v21 }
  0x1c   : > { %883 = vmatpush3.bf16.msra.mxu0 %v984_v22 }
  0x1d   : > { %923 = vmatpush3.bf16.msra.mxu1 %v985_v23  ;;  %884 = vmatprep.subr.bf16.mxu0 %v986_v24 }
  0x1e   : > { %924 = vmatprep.subr.bf16.mxu1 %v987_v25 }
  0x20   : > { %885 = vmatpush3.bf16.msra.mxu0 %v988_v26 }
  0x21   : > { %925 = vmatpush3.bf16.msra.mxu1 %v989_v27  ;;  %886 = vmatprep.subr.bf16.mxu0 %v990_v28 }
  0x22   : > { %926 = vmatprep.subr.bf16.mxu1 %v991_v29 }
  0x24   : > { %887 = vmatpush3.bf16.msra.mxu0 %v992_v30 }
  0x25   : > { %927 = vmatpush3.bf16.msra.mxu1 %v993_v31 }
  0x27   : > { %522 = vmatmul.mubr.bf16.vlgmr.msra.gmra.mrb[0].mxu0 %v994_v32 }
  0x28   : > { %586 = vmatmul.mubr.bf16.vlgmr.msra.gmra.mrb[0].mxu1 %v997_v34  ;;  %529 = vmatprep.mubr.bf16.mxu0 %v1000_v36 }
  0x29   : > { %593 = vmatprep.mubr.bf16.mxu1 %v1002_v37 }
  0x2f   : > { %530 = vmatmul.mubr.bf16.gmra.mrb[4].mxu0 %v1004_v38 }
  0x30   : > { %594 = vmatmul.mubr.bf16.gmra.mrb[4].mxu1 %v1005_v39  ;;  %537 = vmatprep.mubr.bf16.mxu0 %v1006_v40 }
  0x31   : > { %601 = vmatprep.mubr.bf16.mxu1 %v1008_v41 }
  0x37   : > { %538 = vmatmul.mubr.bf16.gmra.mrb[8].mxu0 %v1010_v44 }
  0x38   : > { %602 = vmatmul.mubr.bf16.gmra.mrb[8].mxu1 %v1011_v45  ;;  %545 = vmatprep.mubr.bf16.mxu0 %v821_v46 }
  0x39   : > { %609 = vmatprep.mubr.bf16.mxu1 %v823_v47 }
  0x3f   : > { %546 = vmatmul.mubr.bf16.gmra.mrb[12].mxu0 %v820_v48 }
  0x40   : > { %610 = vmatmul.mubr.bf16.gmra.mrb[12].mxu1 %v822_v49 }
  0xfa   : > { %v888_v50 = vpop.f32.mrb[0].mxu0 }
  0xfb   : > { %v928_v51 = vpop.f32.mrb[0].mxu1  ;;  %v889_v52 = vpop.f32.mrb[1].mxu0 }
  0xfc   : > { %v890_v53 = vadd.f32 %v889_v52, %v888_v50  ;;  %v929_v54 = vpop.f32.mrb[1].mxu1  ;;  %v891_v55 = vpop.f32.mrb[2].mxu0 }
  0xfd   : > { %v930_v56 = vadd.f32 %v929_v54, %v928_v51  ;;  %v931_v57 = vpop.f32.mrb[2].mxu1  ;;  %v892_v58 = vpop.f32.mrb[3].mxu0 }
  0xfe   : > { %v893_v59 = vadd.f32 %v892_v58, %v891_v55  ;;  %v932_v60 = vpop.f32.mrb[3].mxu1 }
  0xff   : > { %v1155_v61 = vadd.f32 %v930_v56, %v890_v53  ;;  %v933_v62 = vadd.f32 %v932_v60, %v931_v57 }
 0x101   : > { %v591_v63 = vadd.f32 %v933_v62, %v893_v59  ;;  %v618_v1 = vsel %vm617_vm0, %v1155_v61, 0.0 }
 0x102   : > { %v894_v0 = vpop.f32.mrb[4].mxu0 }
 0x103   : > { %v619_v2 = vsel %vm617_vm0, %v591_v63, 0.0  ;;  %v934_v3 = vpop.f32.mrb[4].mxu1  ;;  %v895_v4 = vpop.f32.mrb[5].mxu0 }
 0x104   : > { %v620_v5 = vadd.f32 %v619_v2, %v618_v1  ;;  %v896_v6 = vadd.f32 %v895_v4, %v894_v0  ;;  %v935_v7 = vpop.f32.mrb[5].mxu1  ;;  %v897_v8 = vpop.f32.mrb[6].mxu0 }
 0x105   : > { %v936_v9 = vadd.f32 %v935_v7, %v934_v3  ;;  %v937_v10 = vpop.f32.mrb[6].mxu1  ;;  %v898_v11 = vpop.f32.mrb[7].mxu0 }
 0x106   : > { %v899_v12 = vadd.f32 %v898_v11, %v897_v8  ;;  %v938_v13 = vpop.f32.mrb[7].mxu1 }
 0x107   : > { %v596_v14 = vadd.f32 %v936_v9, %v896_v6  ;;  %v939_v15 = vadd.f32 %v938_v13, %v937_v10 }
 0x109   : > { %v621_v16 = vsel %vm617_vm0, %v596_v14, 0.0  ;;  %v599_v17 = vadd.f32 %v939_v15, %v899_v12 }
 0x10a   : > { %v622_v18 = vadd.f32 %v621_v16, %v620_v5  ;;  %v900_v19 = vpop.f32.mrb[8].mxu0 }
 0x10b   : > { %v623_v20 = vsel %vm617_vm0, %v599_v17, 0.0  ;;  %v940_v21 = vpop.f32.mrb[8].mxu1  ;;  %v901_v22 = vpop.f32.mrb[9].mxu0 }
 0x10c   : > { %v624_v23 = vadd.f32 %v623_v20, %v622_v18  ;;  %v902_v24 = vadd.f32 %v901_v22, %v900_v19  ;;  %v941_v25 = vpop.f32.mrb[9].mxu1  ;;  %v903_v26 = vpop.f32.mrb[10].mxu0 }
 0x10d   : > { %v942_v27 = vadd.f32 %v941_v25, %v940_v21  ;;  %v943_v28 = vpop.f32.mrb[10].mxu1  ;;  %v904_v29 = vpop.f32.mrb[11].mxu0 }
 0x10e   : > { %v905_v30 = vadd.f32 %v904_v29, %v903_v26  ;;  %v944_v31 = vpop.f32.mrb[11].mxu1 }
 0x10f   : > { %v604_v32 = vadd.f32 %v942_v27, %v902_v24  ;;  %v945_v33 = vadd.f32 %v944_v31, %v943_v28 }
 0x111   : > { %v625_v34 = vsel %vm617_vm0, %v604_v32, 0.0  ;;  %v607_v35 = vadd.f32 %v945_v33, %v905_v30 }
 0x112   : > { %v626_v36 = vadd.f32 %v625_v34, %v624_v23  ;;  %v906_v37 = vpop.f32.mrb[12].mxu0 }
 0x113   : > { %v627_v38 = vsel %vm617_vm0, %v607_v35, 0.0  ;;  %v946_v39 = vpop.f32.mrb[12].mxu1  ;;  %v907_v40 = vpop.f32.mrb[13].mxu0 }
 0x114   : > { %v628_v41 = vadd.f32 %v627_v38, %v626_v36  ;;  %v908_v42 = vadd.f32 %v907_v40, %v906_v37  ;;  %v947_v43 = vpop.f32.mrb[13].mxu1  ;;  %v909_v44 = vpop.f32.mrb[14].mxu0 }
 0x115   : > { %v948_v45 = vadd.f32 %v947_v43, %v946_v39  ;;  %v949_v46 = vpop.f32.mrb[14].mxu1  ;;  %v910_v47 = vpop.f32.mrb[15].mxu0 }
 0x116   : > { %v950_v48 = vpop.f32.mrb[15].mxu1 }
 0x117   : > { %v612_v49 = vadd.f32 %v948_v45, %v908_v42 }
 0x119   : > { %v630_v50 = vsel %vm629_vm1, %v612_v49, 0.0 }
 0x11a   : > { %v631_v51 = vadd.f32 %v630_v50, %v628_v41 }
 0x11c   : > { %v632_v52 = vrot.slane %v631_v51, 4 }
 0x11e   : > { %v633_v53 = vadd.f32 %v632_v52, %v631_v51 }
 0x120   : > { %v634_v54 = vrot.slane %v633_v53, 2 }
 0x122   : > { %v635_v55 = vadd.f32 %v634_v54, %v633_v53 }
 0x124   : > { %v636_v56 = vrot.slane %v635_v55, 1 }
 0x126   : > { %v637_v57 = vadd.f32 %v636_v56, %v635_v55 }
 0x128   : > { %v639_v58 = vmul.f32 0.020408163, %v637_v57 }
 0x12a   : > { %v640_v59 = vsub.f32 %v1155_v61, %v639_v58  ;;  %v641_v60 = vsub.f32 %v591_v63, %v639_v58  ;;  %v642_v62 = vsub.f32 %v596_v14, %v639_v58  ;;  %v643_v0 = vsub.f32 %v599_v17, %v639_v58 }
 0x12b   : > { %v644_v1 = vsub.f32 %v604_v32, %v639_v58  ;;  %v645_v2 = vsub.f32 %v607_v35, %v639_v58  ;;  %v646_v3 = vsub.f32 %v612_v49, %v639_v58  ;;  %v743_v58 = vld [vmem:[%s143_s30 + $0x18] sm:$0x1] }
 0x12c   : > { %v647_v4 = vmul.f32 %v640_v59, %v640_v59  ;;  %v648_v5 = vmul.f32 %v641_v60, %v641_v60  ;;  %v649_v6 = vmul.f32 %v642_v62, %v642_v62  ;;  %v650_v7 = vmul.f32 %v643_v0, %v643_v0 }
 0x12d   : > { %v651_v11 = vmul.f32 %v644_v1, %v644_v1  ;;  %v652_v61 = vmul.f32 %v645_v2, %v645_v2  ;;  %v653_v15 = vmul.f32 %v646_v3, %v646_v3 }
 0x12e   : > { %v654_v8 = vsel %vm617_vm0, %v647_v4, 0.0  ;;  %v655_v9 = vsel %vm617_vm0, %v648_v5, 0.0  ;;  %v657_v12 = vsel %vm617_vm0, %v649_v6, 0.0  ;;  %v659_v63 = vsel %vm617_vm0, %v650_v7, 0.0 }
 0x12f   : > { %v656_v10 = vadd.f32 %v655_v9, %v654_v8  ;;  %v661_v16 = vsel %vm617_vm0, %v651_v11, 0.0  ;;  %v663_v18 = vsel %vm617_vm0, %v652_v61, 0.0  ;;  %v665_v20 = vsel %vm629_vm1, %v653_v15, 0.0 }
 0x131   : > { %v658_v13 = vadd.f32 %v657_v12, %v656_v10 }
 0x133   : > { %v660_v14 = vadd.f32 %v659_v63, %v658_v13 }
 0x135   : > { %v662_v17 = vadd.f32 %v661_v16, %v660_v14 }
 0x137   : > { %v664_v19 = vadd.f32 %v663_v18, %v662_v17 }
 0x139   : > { %v666_v21 = vadd.f32 %v665_v20, %v664_v19 }
 0x13b   : > { %v667_v22 = vrot.slane %v666_v21, 4 }
 0x13d   : > { %v668_v23 = vadd.f32 %v667_v22, %v666_v21 }
 0x13f   : > { %v669_v24 = vrot.slane %v668_v23, 2 }
 0x141   : > { %v670_v25 = vadd.f32 %v669_v24, %v668_v23 }
 0x143   : > { %v671_v26 = vrot.slane %v670_v25, 1 }
 0x145   : > { %v672_v27 = vadd.f32 %v671_v26, %v670_v25 }
 0x147   : > { %v673_v28 = vmul.f32 0.020408163, %v672_v27 }
 0x149   : > { %v674_v29 = vadd.f32 1e-05, %v673_v28 }
 0x14b   : > { %1016 = vrsqrt.f32 %v674_v29 }
 0x155   : > { %v1017_v30 = vpop.eup %1016 }
 0x156   : > { %v676_v31 = vmul.f32 %v1017_v30, %v640_v59  ;;  %v677_v32 = vmul.f32 %v1017_v30, %v641_v60  ;;  %v678_v33 = vmul.f32 %v1017_v30, %v642_v62  ;;  %v679_v34 = vmul.f32 %v1017_v30, %v643_v0 }
 0x157   : > { %v680_v35 = vmul.f32 %v1017_v30, %v644_v1  ;;  %v681_v36 = vmul.f32 %v1017_v30, %v645_v2  ;;  %v682_v37 = vmul.f32 %v1017_v30, %v646_v3 }
 0x158   : > { %vm683_vm4 = vcmp.ge.f32.partialorder %v676_v31, 0.0  ;;  %vm684_vm5 = vcmp.ge.f32.partialorder %v677_v32, 0.0  ;;  %vm685_vm6 = vcmp.ge.f32.partialorder %v678_v33, 0.0  ;;  %vm686_vm7 = vcmp.ge.f32.partialorder %v679_v34, 0.0 }
 0x159   : > { %vm687_vm8 = vcmp.ge.f32.partialorder %v680_v35, 0.0  ;;  %vm688_vm9 = vcmp.ge.f32.partialorder %v681_v36, 0.0  ;;  %vm689_vm10 = vcmp.ge.f32.partialorder %v682_v37, 0.0  ;;  %v690_v38 = vmul.f32 0.2, %v676_v31 }
 0x15a   : > { %v691_v39 = vmul.f32 0.2, %v677_v32  ;;  %v692_v40 = vmul.f32 0.2, %v678_v33  ;;  %v693_v41 = vmul.f32 0.2, %v679_v34 }
 0x15b   : > { %v694_v42 = vmul.f32 0.2, %v680_v35  ;;  %v695_v43 = vmul.f32 0.2, %v681_v36  ;;  %v696_v44 = vmul.f32 0.2, %v682_v37  ;;  %v697_v45 = vsel %vm683_vm4, %v676_v31, %v690_v38 }
 0x15c   : > { %v698_v46 = vsel %vm684_vm5, %v677_v32, %v691_v39  ;;  %v699_v47 = vsel %vm685_vm6, %v678_v33, %v692_v40  ;;  %v700_v48 = vsel %vm686_vm7, %v679_v34, %v693_v41  ;;  %v865_v49 = vpack.c.bf16 %v697_v45, %v697_v45 }
 0x15d   : > { %v701_v50 = vsel %vm687_vm8, %v680_v35, %v694_v42  ;;  %v702_v51 = vsel %vm688_vm9, %v681_v36, %v695_v43  ;;  %v703_v52 = vsel %vm689_vm10, %v682_v37, %v696_v44  ;;  %v866_v53 = vpack.c.bf16 %v698_v46, %v698_v46 }
 0x15e   : > { %v867_v54 = vpack.c.bf16 %v699_v47, %v699_v47  ;;  %v868_v55 = vpack.c.bf16 %v700_v48, %v700_v48  ;;  %v869_v56 = vpack.c.bf16 %v701_v50, %v701_v50  ;;  %v870_v57 = vpack.c.bf16 %v702_v51, %v702_v51  ;;  %734 = vst.msk [vmem:[%s143_s30] sm:$0xf] %vm733_vm2, %v865_v49 }
 0x15f   : > { %v871_v59 = vpack.c.bf16 %v703_v52, %v703_v52  ;;  %735 = vst.msk [vmem:[%s143_s30 + $0x4] sm:$0xf] %vm733_vm2, %v866_v53 }
 0x160   : > { %736 = vst.msk [vmem:[%s143_s30 + $0x8] sm:$0xf] %vm733_vm2, %v867_v54  ;;  %737 = vst.msk [vmem:[%s143_s30 + $0xc] sm:$0xf] %vm733_vm2, %v868_v55 }
 0x161   : > { %738 = vst.msk [vmem:[%s143_s30 + $0x10] sm:$0xf] %vm733_vm2, %v869_v56  ;;  %739 = vst.msk [vmem:[%s143_s30 + $0x14] sm:$0xf] %vm733_vm2, %v870_v57  ;;  %v744_v60 = vsel %vm742_vm11, %v871_v59, %v743_v58 }
 0x162   : > { %745 = vst [vmem:[%s143_s30 + $0x18] sm:$0x1] %v744_v60 }
 0x163 PF: > { %s12_s9 = sadd.s32 1, %s1024_s9  }
 0x164   : > { %p9_p4 = scmp.ge.s32.totalorder %s12_s9, 4  }
 0x166   :  { %11 = sbr.rel (!%p9_p4) target bundleno = 1 (0x1), region = 58 }

// kernel: discriminator_forward.9
= control target key start
LH: loop header
LB: loop body
LE: loop exit
PB: predicated region body
PF: predicated region fallthrough
CT: control target
= control target key end

     0   :  { %s1808_s1 = inlined_call_operand.vmem [shape: bf16[1024,128], index: 1, kind: input, shape index: {}]   ;;  %s1809_s0 = inlined_call_operand.vmem [shape: bf16[72,1024], index: 0, kind: input, shape index: {}]   ;;  %s1810_s2 = inlined_call_operand.vmem [shape: f32[1,128], index: 2, kind: input, shape index: {}]   ;;  %s1811_s3 = inlined_call_operand.vmem [shape: f32[72,128], index: 3, kind: output, shape index: {}]  }
   0x1   :  { %v1348_v0 = vld [vmem:[%s1808_s1 + $0x40] sm:$0xff]   ;;  %v1352_v4 = vld [vmem:[%s1808_s1 + $0x48] sm:$0xff]   ;;  %v1356_v8 = vld [vmem:[%s1808_s1 + $0x50] sm:$0xff]  }
   0x2   :  { %v1349_v1 = vld [vmem:[%s1808_s1 + $0xc0] sm:$0xff]   ;;  %1164 = vmatprep.subr.bf16.mxu0 %v1348_v0  ;;  %v1353_v5 = vld [vmem:[%s1808_s1 + $0xc8] sm:$0xff]   ;;  %v1357_v9 = vld [vmem:[%s1808_s1 + $0xd0] sm:$0xff]  }
   0x3   :  { %v1350_v2 = vld [vmem:[%s1808_s1] sm:$0xff]   ;;  %1210 = vmatprep.subr.bf16.mxu1 %v1349_v1  ;;  %v1354_v6 = vld [vmem:[%s1808_s1 + $0x8] sm:$0xff]   ;;  %v1358_v10 = vld [vmem:[%s1808_s1 + $0x10] sm:$0xff]  }
   0x4   :  { %v1351_v3 = vld [vmem:[%s1808_s1 + $0x80] sm:$0xff]   ;;  %1165 = vmatpush3.bf16.msra.mxu0 %v1350_v2  ;;  %v1355_v7 = vld [vmem:[%s1808_s1 + $0x88] sm:$0xff]   ;;  %v1359_v11 = vld [vmem:[%s1808_s1 + $0x90] sm:$0xff]  }
   0x5   :  { %1211 = vmatpush3.bf16.msra.mxu1 %v1351_v3  ;;  %1166 = vmatprep.subr.bf16.mxu0 %v1352_v4  ;;  %v1360_v12 = vld [vmem:[%s1808_s1 + $0x58] sm:$0xff]   ;;  %v1364_v16 = vld [vmem:[%s1808_s1 + $0x60] sm:$0xff]   ;;  %v1368_v20 = vld [vmem:[%s1808_s1 + $0x68] sm:$0xff]  }
   0x6   :  { %1212 = vmatprep.subr.bf16.mxu1 %v1353_v5  ;;  %v1361_v13 = vld [vmem:[%s1808_s1 + $0xd8] sm:$0xff]   ;;  %v1365_v17 = vld [vmem:[%s1808_s1 + $0xe0] sm:$0xff]   ;;  %v1369_v21 = vld [vmem:[%s1808_s1 + $0xe8] sm:$0xff]  }
   0x7   :  { %v1362_v14 = vld [vmem:[%s1808_s1 + $0x18] sm:$0xff]   ;;  %v1366_v18 = vld [vmem:[%s1808_s1 + $0x20] sm:$0xff]   ;;  %v1370_v22 = vld [vmem:[%s1808_s1 + $0x28] sm:$0xff]  }
   0x8   :  { %1167 = vmatpush3.bf16.msra.mxu0 %v1354_v6  ;;  %v1363_v15 = vld [vmem:[%s1808_s1 + $0x98] sm:$0xff]   ;;  %v1367_v19 = vld [vmem:[%s1808_s1 + $0xa0] sm:$0xff]   ;;  %v1371_v23 = vld [vmem:[%s1808_s1 + $0xa8] sm:$0xff]  }
   0x9   :  { %1213 = vmatpush3.bf16.msra.mxu1 %v1355_v7  ;;  %1168 = vmatprep.subr.bf16.mxu0 %v1356_v8  ;;  %v1372_v24 = vld [vmem:[%s1808_s1 + $0x70] sm:$0xff]   ;;  %v1376_v28 = vld [vmem:[%s1808_s1 + $0x78] sm:$0xff]   ;;  %v15_v32 = vld [vmem:[%s1809_s0] sm:$0xff] }
   0xa   :  { %1214 = vmatprep.subr.bf16.mxu1 %v1357_v9  ;;  %v1373_v25 = vld [vmem:[%s1808_s1 + $0xf0] sm:$0xff]   ;;  %v1377_v29 = vld [vmem:[%s1808_s1 + $0xf8] sm:$0xff]   ;;  %v19_v33 = vld [vmem:[%s1809_s0 + $0x20] sm:$0xff] }
   0xb   :  { %v1374_v26 = vld [vmem:[%s1808_s1 + $0x30] sm:$0xff]   ;;  %v1378_v30 = vld [vmem:[%s1808_s1 + $0x38] sm:$0xff]   ;;  %v16_v34 = vld [vmem:[%s1809_s0 + $0x8] sm:$0xff]  ;;  %v1060_v35 = vcombine.low %v15_v32, %v19_v33  ;;  %v1061_v36 = vcombine.high %v15_v32, %v19_v33 }
   0xc   :  { %1169 = vmatpush3.bf16.msra.mxu0 %v1358_v10  ;;  %v1375_v27 = vld [vmem:[%s1808_s1 + $0xb0] sm:$0xff]   ;;  %v1379_v31 = vld [vmem:[%s1808_s1 + $0xb8] sm:$0xff]   ;;  %v20_v37 = vld [vmem:[%s1809_s0 + $0x28] sm:$0xff] }
   0xd   :  { %1215 = vmatpush3.bf16.msra.mxu1 %v1359_v11  ;;  %1170 = vmatprep.subr.bf16.mxu0 %v1360_v12  ;;  %v1062_v38 = vcombine.low %v16_v34, %v20_v37  ;;  %v1063_v39 = vcombine.high %v16_v34, %v20_v37  ;;  %v1380_v40 = vld [vmem:[%s1808_s1 + $0x140] sm:$0xff]   ;;  %v1384_v44 = vld [vmem:[%s1808_s1 + $0x148] sm:$0xff]   ;;  %v1388_v56 = vld [vmem:[%s1808_s1 + $0x150] sm:$0xff]  }
   0xe   :  { %1216 = vmatprep.subr.bf16.mxu1 %v1361_v13  ;;  %790 = vmatprep.mubr.bf16.mxu0 %v1061_v36  ;;  %v1381_v41 = vld [vmem:[%s1808_s1 + $0x100] sm:$0xff]   ;;  %v1385_v45 = vld [vmem:[%s1808_s1 + $0x108] sm:$0xff]   ;;  %v1389_v57 = vld [vmem:[%s1808_s1 + $0x110] sm:$0xff]  }
   0xf   :  { %862 = vmatprep.mubr.bf16.mxu1 %v1063_v39  ;;  %v1382_v42 = vld [vmem:[%s1808_s1 + $0x1c0] sm:$0xff]   ;;  %v24_v49 = vld [vmem:[%s1809_s0 + $0x48] sm:$0xff]  ;;  %v1390_v58 = vld [vmem:[%s1808_s1 + $0x1d0] sm:$0xff]  }
  0x10   :  { %1171 = vmatpush3.bf16.msra.mxu0 %v1362_v14  ;;  %v1383_v43 = vld [vmem:[%s1808_s1 + $0x180] sm:$0xff]   ;;  %v28_v50 = vld [vmem:[%s1809_s0 + $0x68] sm:$0xff]  ;;  %v1391_v59 = vld [vmem:[%s1808_s1 + $0x190] sm:$0xff]  }
  0x11   :  { %1217 = vmatpush3.bf16.msra.mxu1 %v1363_v15  ;;  %1172 = vmatprep.subr.bf16.mxu0 %v1364_v16  ;;  %v23_v46 = vld [vmem:[%s1809_s0 + $0x40] sm:$0xff]  ;;  %v1071_v52 = vcombine.high %v24_v49, %v28_v50  ;;  %v1386_v53 = vld [vmem:[%s1808_s1 + $0x1c8] sm:$0xff]   ;;  %v1070_v54 = vcombine.low %v24_v49, %v28_v50  ;;  %v1392_v2 = vld [vmem:[%s1808_s1 + $0x158] sm:$0xff]  }
  0x12   :  { %1218 = vmatprep.subr.bf16.mxu1 %v1365_v17  ;;  %v27_v47 = vld [vmem:[%s1809_s0 + $0x60] sm:$0xff]  ;;  %v1387_v55 = vld [vmem:[%s1808_s1 + $0x188] sm:$0xff]   ;;  %v1393_v5 = vld [vmem:[%s1808_s1 + $0x118] sm:$0xff]  }
  0x13   :  { %v1069_v48 = vcombine.high %v23_v46, %v27_v47  ;;  %v1068_v51 = vcombine.low %v23_v46, %v27_v47  ;;  %v31_v60 = vld [vmem:[%s1809_s0 + $0x80] sm:$0xff]  ;;  %v32_v62 = vld [vmem:[%s1809_s0 + $0x88] sm:$0xff]  ;;  %v1394_v6 = vld [vmem:[%s1808_s1 + $0x1d8] sm:$0xff]  }
  0x14   :  { %1173 = vmatpush3.bf16.msra.mxu0 %v1366_v18  ;;  %v35_v61 = vld [vmem:[%s1809_s0 + $0xa0] sm:$0xff]  ;;  %v36_v63 = vld [vmem:[%s1809_s0 + $0xa8] sm:$0xff]  ;;  %v1395_v7 = vld [vmem:[%s1808_s1 + $0x198] sm:$0xff]  }
  0x15   :  { %1219 = vmatpush3.bf16.msra.mxu1 %v1367_v19  ;;  %1174 = vmatprep.subr.bf16.mxu0 %v1368_v20  ;;  %v1077_v0 = vcombine.high %v31_v60, %v35_v61  ;;  %v1079_v1 = vcombine.high %v32_v62, %v36_v63  ;;  %v1076_v3 = vcombine.low %v31_v60, %v35_v61  ;;  %v1396_v8 = vld [vmem:[%s1808_s1 + $0x160] sm:$0xff]   ;;  %v40_v13 = vld [vmem:[%s1809_s0 + $0xc8] sm:$0xff]  ;;  %v1411_v33 = vld [vmem:[%s1808_s1 + $0x1b0] sm:$0xff]  }
  0x16   :  { %1220 = vmatprep.subr.bf16.mxu1 %v1369_v21  ;;  %v1078_v4 = vcombine.low %v32_v62, %v36_v63  ;;  %v1397_v9 = vld [vmem:[%s1808_s1 + $0x120] sm:$0xff]   ;;  %v44_v15 = vld [vmem:[%s1809_s0 + $0xe8] sm:$0xff]  ;;  %v1412_v34 = vld [vmem:[%s1808_s1 + $0x178] sm:$0xff]  }
  0x17   :  { %v1398_v10 = vld [vmem:[%s1808_s1 + $0x1e0] sm:$0xff]   ;;  %v1087_v17 = vcombine.high %v40_v13, %v44_v15  ;;  %v1086_v19 = vcombine.low %v40_v13, %v44_v15  ;;  %v1400_v20 = vld [vmem:[%s1808_s1 + $0x168] sm:$0xff]   ;;  %v1414_v36 = vld [vmem:[%s1808_s1 + $0x1f8] sm:$0xff]  }
  0x18   :  { %1175 = vmatpush3.bf16.msra.mxu0 %v1370_v22  ;;  %v39_v11 = vld [vmem:[%s1809_s0 + $0xc0] sm:$0xff]  ;;  %v1401_v21 = vld [vmem:[%s1808_s1 + $0x128] sm:$0xff]   ;;  %v1415_v37 = vld [vmem:[%s1808_s1 + $0x1b8] sm:$0xff]  }
  0x19   :  { %1221 = vmatpush3.bf16.msra.mxu1 %v1371_v23  ;;  %1176 = vmatprep.subr.bf16.mxu0 %v1372_v24  ;;  %v43_v12 = vld [vmem:[%s1809_s0 + $0xe0] sm:$0xff]  ;;  %v1402_v22 = vld [vmem:[%s1808_s1 + $0x1e8] sm:$0xff]   ;;  %v1404_v24 = vld [vmem:[%s1808_s1 + $0x170] sm:$0xff]  }
  0x1a   :  { %1222 = vmatprep.subr.bf16.mxu1 %v1373_v25  ;;  %v1085_v14 = vcombine.high %v39_v11, %v43_v12  ;;  %v1084_v16 = vcombine.low %v39_v11, %v43_v12  ;;  %v1399_v18 = vld [vmem:[%s1808_s1 + $0x1a0] sm:$0xff]   ;;  %v1403_v23 = vld [vmem:[%s1808_s1 + $0x1a8] sm:$0xff]   ;;  %v21_v39 = vld [vmem:[%s1809_s0 + $0x30] sm:$0xff] }
  0x1b   :  { %v47_v25 = vld [vmem:[%s1809_s0 + $0x100] sm:$0xff]  ;;  %v26_v47 = vld [vmem:[%s1809_s0 + $0x58] sm:$0xff]  ;;  %v41_v60 = vld [vmem:[%s1809_s0 + $0xd0] sm:$0xff] }
  0x1c   :  { %1177 = vmatpush3.bf16.msra.mxu0 %v1374_v26  ;;  %v48_v26 = vld [vmem:[%s1809_s0 + $0x108] sm:$0xff]  ;;  %v45_v61 = vld [vmem:[%s1809_s0 + $0xf0] sm:$0xff]  ;;  %v42_v62 = vld [vmem:[%s1809_s0 + $0xd8] sm:$0xff] }
  0x1d   :  { %1223 = vmatpush3.bf16.msra.mxu1 %v1375_v27  ;;  %1178 = vmatprep.subr.bf16.mxu0 %v1376_v28  ;;  %v1093_v27 = vcombine.high %v47_v25, %v47_v25  ;;  %v1095_v28 = vcombine.high %v48_v26, %v48_v26  ;;  %v1094_v32 = vcombine.low %v48_v26, %v48_v26  ;;  %v46_v63 = vld [vmem:[%s1809_s0 + $0xf8] sm:$0xff] }
  0x1e   :  { %1224 = vmatprep.subr.bf16.mxu1 %v1377_v29  ;;  %v1407_v29 = vld [vmem:[%s1808_s1 + $0x130] sm:$0xff]  }
  0x20   :  { %1179 = vmatpush3.bf16.msra.mxu0 %v1378_v30  ;;  %v1092_v30 = vcombine.low %v47_v25, %v47_v25 }
  0x21   :  { %1225 = vmatpush3.bf16.msra.mxu1 %v1379_v31  ;;  %1256 = vmatprep.subr.bf16.mxu0 %v1380_v40  ;;  %v1410_v31 = vld [vmem:[%s1808_s1 + $0x1f0] sm:$0xff]   ;;  %v18_v40 = vld [vmem:[%s1809_s0 + $0x18] sm:$0xff] }
  0x22   :  { %1302 = vmatprep.subr.bf16.mxu1 %v1382_v42  ;;  %v22_v42 = vld [vmem:[%s1809_s0 + $0x38] sm:$0xff] }
  0x23   :  { %791 = vmatmul.mubr.bf16.vlgmr.msra.gmra.mrb[0].mxu0 %v1060_v35  ;;  %v1413_v35 = vld [vmem:[%s1808_s1 + $0x138] sm:$0xff]   ;;  %v1067_v46 = vcombine.high %v18_v40, %v22_v42  ;;  %v1066_v49 = vcombine.low %v18_v40, %v22_v42 }
  0x24   :  { %863 = vmatmul.mubr.bf16.vlgmr.msra.gmra.mrb[0].mxu1 %v1062_v38  ;;  %1257 = vmatpush3.bf16.msra.mxu0 %v1381_v41  ;;  %v17_v38 = vld [vmem:[%s1809_s0 + $0x10] sm:$0xff] }
  0x25   :  { %1303 = vmatpush3.bf16.msra.mxu1 %v1383_v43  ;;  %1258 = vmatprep.subr.bf16.mxu0 %v1384_v44  ;;  %v1065_v41 = vcombine.high %v17_v38, %v21_v39  ;;  %v25_v43 = vld [vmem:[%s1809_s0 + $0x50] sm:$0xff] }
  0x26   :  { %798 = vmatprep.mubr.bf16.mxu0 %v1069_v48  ;;  %870 = vmatprep.mubr.bf16.mxu1 %v1071_v52  ;;  %v29_v44 = vld [vmem:[%s1809_s0 + $0x70] sm:$0xff]  ;;  %v30_v48 = vld [vmem:[%s1809_s0 + $0x78] sm:$0xff] }
  0x27   :  { %1304 = vmatprep.subr.bf16.mxu1 %v1386_v53  ;;  %v1073_v50 = vcombine.high %v25_v43, %v29_v44  ;;  %v33_v52 = vld [vmem:[%s1809_s0 + $0x90] sm:$0xff] }
  0x28   :  { %1259 = vmatpush3.bf16.msra.mxu0 %v1385_v45  ;;  %v1064_v45 = vcombine.low %v17_v38, %v21_v39  ;;  %v37_v53 = vld [vmem:[%s1809_s0 + $0xb0] sm:$0xff] }
  0x29   :  { %1305 = vmatpush3.bf16.msra.mxu1 %v1387_v55  ;;  %1260 = vmatprep.subr.bf16.mxu0 %v1388_v56  ;;  %v38_v55 = vld [vmem:[%s1809_s0 + $0xb8] sm:$0xff]  ;;  %v1072_v56 = vcombine.low %v25_v43, %v29_v44 }
  0x2a   :  { %1306 = vmatprep.subr.bf16.mxu1 %v1390_v58  ;;  %v1081_v58 = vcombine.high %v33_v52, %v37_v53 }
  0x2b   :  { %799 = vmatmul.mubr.bf16.gmra.mrb[4].mxu0 %v1068_v51  ;;  %v1075_v51 = vcombine.high %v26_v47, %v30_v48 }
  0x2c   :  { %871 = vmatmul.mubr.bf16.gmra.mrb[4].mxu1 %v1070_v54  ;;  %1261 = vmatpush3.bf16.msra.mxu0 %v1389_v57  ;;  %v34_v54 = vld [vmem:[%s1809_s0 + $0x98] sm:$0xff]  ;;  %v1074_v57 = vcombine.low %v26_v47, %v30_v48 }
  0x2d   :  { %1307 = vmatpush3.bf16.msra.mxu1 %v1391_v59  ;;  %806 = vmatprep.mubr.bf16.mxu0 %v1077_v0  ;;  %v1083_v59 = vcombine.high %v34_v54, %v38_v55  ;;  %v1080_v0 = vcombine.low %v33_v52, %v37_v53 }
  0x2e   :  { %878 = vmatprep.mubr.bf16.mxu1 %v1079_v1  ;;  %1262 = vmatprep.subr.bf16.mxu0 %v1392_v2  ;;  %v1082_v1 = vcombine.low %v34_v54, %v38_v55  ;;  %v1089_v2 = vcombine.high %v41_v60, %v45_v61 }
  0x2f   :  { %1308 = vmatprep.subr.bf16.mxu1 %v1394_v6  ;;  %v1088_v6 = vcombine.low %v41_v60, %v45_v61 }
  0x30   :  { %1263 = vmatpush3.bf16.msra.mxu0 %v1393_v5  ;;  %v50_v5 = vld [vmem:[%s1809_s0 + $0x118] sm:$0xff] }
  0x31   :  { %1309 = vmatpush3.bf16.msra.mxu1 %v1395_v7  ;;  %1264 = vmatprep.subr.bf16.mxu0 %v1396_v8  ;;  %v1090_v7 = vcombine.low %v42_v62, %v46_v63  ;;  %v1098_v11 = vcombine.low %v50_v5, %v50_v5 }
  0x32   :  { %1310 = vmatprep.subr.bf16.mxu1 %v1398_v10 }
  0x33   :  { %807 = vmatmul.mubr.bf16.gmra.mrb[8].mxu0 %v1076_v3  ;;  %v1091_v3 = vcombine.high %v42_v62, %v46_v63 }
  0x34   :  { %879 = vmatmul.mubr.bf16.gmra.mrb[8].mxu1 %v1078_v4  ;;  %1265 = vmatpush3.bf16.msra.mxu0 %v1397_v9  ;;  %v49_v4 = vld [vmem:[%s1809_s0 + $0x110] sm:$0xff]  ;;  %v1099_v9 = vcombine.high %v50_v5, %v50_v5 }
  0x35   :  { %814 = vmatprep.mubr.bf16.mxu0 %v1085_v14  ;;  %886 = vmatprep.mubr.bf16.mxu1 %v1087_v17  ;;  %v1097_v8 = vcombine.high %v49_v4, %v49_v4  ;;  %v1096_v10 = vcombine.low %v49_v4, %v49_v4  ;;  %v1743_v14 = vld [vmem:[%s1810_s2] ss:$0 sm:$0xff] }
  0x36   :  { %1311 = vmatpush3.bf16.msra.mxu1 %v1399_v18  ;;  %1266 = vmatprep.subr.bf16.mxu0 %v1400_v20 }
  0x37   :  { %1312 = vmatprep.subr.bf16.mxu1 %v1402_v22 }
  0x38   :  { %1267 = vmatpush3.bf16.msra.mxu0 %v1401_v21 }
  0x39   :  { %1268 = vmatprep.subr.bf16.mxu0 %v1404_v24 }
  0x3a   :  { %1313 = vmatpush3.bf16.msra.mxu1 %v1403_v23 }
  0x3b   :  { %815 = vmatmul.mubr.bf16.gmra.mrb[12].mxu0 %v1084_v16  ;;  %1314 = vmatprep.subr.bf16.mxu1 %v1410_v31 }
  0x3c   :  { %887 = vmatmul.mubr.bf16.gmra.mrb[12].mxu1 %v1086_v19  ;;  %822 = vmatprep.mubr.bf16.mxu0 %v1093_v27 }
  0x3d   :  { %894 = vmatprep.mubr.bf16.mxu1 %v1095_v28  ;;  %1269 = vmatpush3.bf16.msra.mxu0 %v1407_v29 }
  0x3e   :  { %1315 = vmatpush3.bf16.msra.mxu1 %v1411_v33  ;;  %1270 = vmatprep.subr.bf16.mxu0 %v1412_v34 }
  0x3f   :  { %1316 = vmatprep.subr.bf16.mxu1 %v1414_v36 }
  0x41   :  { %1271 = vmatpush3.bf16.msra.mxu0 %v1413_v35 }
  0x42   :  { %1317 = vmatpush3.bf16.msra.mxu1 %v1415_v37 }
  0x43   :  { %823 = vmatmul.mubr.bf16.gmra.mrb[16].mxu0 %v1092_v30 }
  0x44   :  { %895 = vmatmul.mubr.bf16.gmra.mrb[16].mxu1 %v1094_v32  ;;  %934 = vmatprep.mubr.bf16.mxu0 %v1065_v41 }
  0x45   :  { %1006 = vmatprep.mubr.bf16.mxu1 %v1067_v46 }
  0x4b   :  { %935 = vmatmul.mubr.bf16.vlgmr.msra.gmra.mrb[20].mxu0 %v1064_v45 }
  0x4c   :  { %1007 = vmatmul.mubr.bf16.vlgmr.msra.gmra.mrb[20].mxu1 %v1066_v49  ;;  %942 = vmatprep.mubr.bf16.mxu0 %v1073_v50 }
  0x4d   :  { %1014 = vmatprep.mubr.bf16.mxu1 %v1075_v51 }
  0x53   :  { %943 = vmatmul.mubr.bf16.gmra.mrb[24].mxu0 %v1072_v56 }
  0x54   :  { %1015 = vmatmul.mubr.bf16.gmra.mrb[24].mxu1 %v1074_v57  ;;  %950 = vmatprep.mubr.bf16.mxu0 %v1081_v58 }
  0x55   :  { %1022 = vmatprep.mubr.bf16.mxu1 %v1083_v59 }
  0x5b   :  { %951 = vmatmul.mubr.bf16.gmra.mrb[28].mxu0 %v1080_v0 }
  0x5c   :  { %1023 = vmatmul.mubr.bf16.gmra.mrb[28].mxu1 %v1082_v1  ;;  %958 = vmatprep.mubr.bf16.mxu0 %v1089_v2 }
  0x5d   :  { %1030 = vmatprep.mubr.bf16.mxu1 %v1091_v3 }
  0x63   :  { %959 = vmatmul.mubr.bf16.gmra.mrb[32].mxu0 %v1088_v6 }
  0x64   :  { %1031 = vmatmul.mubr.bf16.gmra.mrb[32].mxu1 %v1090_v7  ;;  %966 = vmatprep.mubr.bf16.mxu0 %v1097_v8 }
  0x65   :  { %1038 = vmatprep.mubr.bf16.mxu1 %v1099_v9 }
  0x6b   :  { %967 = vmatmul.mubr.bf16.gmra.mrb[36].mxu0 %v1096_v10 }
  0x6c   :  { %1039 = vmatmul.mubr.bf16.gmra.mrb[36].mxu1 %v1098_v11 }
  0xf6   :  { %v1180_v12 = vpop.f32.mrb[0].mxu0 }
  0xf7   :  { %v1226_v13 = vpop.f32.mrb[0].mxu1  ;;  %v1181_v15 = vpop.f32.mrb[1].mxu0 }
  0xf8   :  { %v1182_v16 = vadd.f32 %v1181_v15, %v1180_v12  ;;  %v1227_v17 = vpop.f32.mrb[1].mxu1  ;;  %v1183_v18 = vpop.f32.mrb[2].mxu0 }
  0xf9   :  { %v1228_v19 = vadd.f32 %v1227_v17, %v1226_v13  ;;  %v1229_v20 = vpop.f32.mrb[2].mxu1  ;;  %v1184_v21 = vpop.f32.mrb[3].mxu0 }
  0xfa   :  { %v793_v22 = vadd.f32 %v1182_v16, %v1743_v14  ;;  %v1185_v23 = vadd.f32 %v1184_v21, %v1183_v18  ;;  %v1230_v24 = vpop.f32.mrb[3].mxu1 }
  0xfb   :  { %v1231_v25 = vadd.f32 %v1230_v24, %v1229_v20 }
  0xfc   :  { %v1746_v26 = vadd.f32 %v1228_v19, %v793_v22  ;;  %v796_v27 = vadd.f32 %v1185_v23, %v1743_v14 }
  0xfe   :  { %v1749_v28 = vadd.f32 %v1231_v25, %v796_v27  ;;  %v1186_v29 = vpop.f32.mrb[4].mxu0 }
  0xff   :  { %v1232_v30 = vpop.f32.mrb[4].mxu1  ;;  %v1187_v31 = vpop.f32.mrb[5].mxu0 }
 0x100   :  { %v1188_v32 = vadd.f32 %v1187_v31, %v1186_v29  ;;  %v1233_v33 = vpop.f32.mrb[5].mxu1  ;;  %v1189_v34 = vpop.f32.mrb[6].mxu0 }
 0x101   :  { %v1234_v35 = vadd.f32 %v1233_v33, %v1232_v30  ;;  %v1235_v36 = vpop.f32.mrb[6].mxu1  ;;  %v1190_v37 = vpop.f32.mrb[7].mxu0 }
 0x102   :  { %v801_v38 = vadd.f32 %v1188_v32, %v1743_v14  ;;  %v1191_v39 = vadd.f32 %v1190_v37, %v1189_v34  ;;  %v1236_v40 = vpop.f32.mrb[7].mxu1 }
 0x103   :  { %v1237_v41 = vadd.f32 %v1236_v40, %v1235_v36 }
 0x104   :  { %v1752_v42 = vadd.f32 %v1234_v35, %v801_v38  ;;  %v804_v43 = vadd.f32 %v1191_v39, %v1743_v14 }
 0x106   :  { %v1755_v44 = vadd.f32 %v1237_v41, %v804_v43  ;;  %v1192_v45 = vpop.f32.mrb[8].mxu0 }
 0x107   :  { %v1238_v46 = vpop.f32.mrb[8].mxu1  ;;  %v1193_v47 = vpop.f32.mrb[9].mxu0 }
 0x108   :  { %v1194_v48 = vadd.f32 %v1193_v47, %v1192_v45  ;;  %v1239_v49 = vpop.f32.mrb[9].mxu1  ;;  %v1195_v50 = vpop.f32.mrb[10].mxu0 }
 0x109   :  { %v1240_v51 = vadd.f32 %v1239_v49, %v1238_v46  ;;  %v1241_v52 = vpop.f32.mrb[10].mxu1  ;;  %v1196_v53 = vpop.f32.mrb[11].mxu0 }
 0x10a   :  { %v809_v54 = vadd.f32 %v1194_v48, %v1743_v14  ;;  %v1197_v55 = vadd.f32 %v1196_v53, %v1195_v50  ;;  %v1242_v56 = vpop.f32.mrb[11].mxu1 }
 0x10b   :  { %v1243_v57 = vadd.f32 %v1242_v56, %v1241_v52 }
 0x10c   :  { %v1758_v58 = vadd.f32 %v1240_v51, %v809_v54  ;;  %v812_v59 = vadd.f32 %v1197_v55, %v1743_v14 }
 0x10e   :  { %v1761_v60 = vadd.f32 %v1243_v57, %v812_v59  ;;  %v1198_v61 = vpop.f32.mrb[12].mxu0 }
 0x10f   :  { %v1244_v62 = vpop.f32.mrb[12].mxu1  ;;  %v1199_v63 = vpop.f32.mrb[13].mxu0 }
 0x110   :  { %v1200_v0 = vadd.f32 %v1199_v63, %v1198_v61  ;;  %v1245_v1 = vpop.f32.mrb[13].mxu1  ;;  %v1201_v2 = vpop.f32.mrb[14].mxu0 }
 0x111   :  { %v1246_v3 = vadd.f32 %v1245_v1, %v1244_v62  ;;  %v1247_v4 = vpop.f32.mrb[14].mxu1  ;;  %v1202_v5 = vpop.f32.mrb[15].mxu0 }
 0x112   :  { %v817_v6 = vadd.f32 %v1200_v0, %v1743_v14  ;;  %v1203_v7 = vadd.f32 %v1202_v5, %v1201_v2  ;;  %v1248_v8 = vpop.f32.mrb[15].mxu1 }
 0x113   :  { %v1249_v9 = vadd.f32 %v1248_v8, %v1247_v4 }
 0x114   :  { %v1764_v10 = vadd.f32 %v1246_v3, %v817_v6  ;;  %v820_v11 = vadd.f32 %v1203_v7, %v1743_v14 }
 0x116   :  { %v1767_v12 = vadd.f32 %v1249_v9, %v820_v11  ;;  %v1204_v13 = vpop.f32.mrb[16].mxu0 }
 0x117   :  { %v1250_v15 = vpop.f32.mrb[16].mxu1  ;;  %v1205_v16 = vpop.f32.mrb[17].mxu0 }
 0x118   :  { %v1206_v17 = vadd.f32 %v1205_v16, %v1204_v13  ;;  %v1251_v18 = vpop.f32.mrb[17].mxu1  ;;  %v1207_v19 = vpop.f32.mrb[18].mxu0 }
 0x119   :  { %v1252_v20 = vadd.f32 %v1251_v18, %v1250_v15  ;;  %v1253_v21 = vpop.f32.mrb[18].mxu1  ;;  %v1208_v22 = vpop.f32.mrb[19].mxu0 }
 0x11a   :  { %v825_v23 = vadd.f32 %v1206_v17, %v1743_v14  ;;  %v1254_v24 = vpop.f32.mrb[19].mxu1 }
 0x11c   :  { %v1770_v25 = vadd.f32 %v1252_v20, %v825_v23 }
 0x11e   :  { %v1272_v27 = vpop.f32.mrb[20].mxu0 }
 0x11f   :  { %v1318_v29 = vpop.f32.mrb[20].mxu1  ;;  %v1273_v30 = vpop.f32.mrb[21].mxu0 }
 0x120   :  { %v1274_v31 = vadd.f32 %v1273_v30, %v1272_v27  ;;  %v1319_v32 = vpop.f32.mrb[21].mxu1  ;;  %v1275_v33 = vpop.f32.mrb[22].mxu0 }
 0x121   :  { %v1320_v34 = vadd.f32 %v1319_v32, %v1318_v29  ;;  %v1321_v35 = vpop.f32.mrb[22].mxu1  ;;  %v1276_v36 = vpop.f32.mrb[23].mxu0 }
 0x122   :  { %v937_v37 = vadd.f32 %v1274_v31, %v1746_v26  ;;  %v1277_v38 = vadd.f32 %v1276_v36, %v1275_v33  ;;  %v1322_v39 = vpop.f32.mrb[23].mxu1 }
 0x123   :  { %v1323_v40 = vadd.f32 %v1322_v39, %v1321_v35 }
 0x124   :  { %v1009_v41 = vadd.f32 %v1320_v34, %v937_v37  ;;  %v940_v14 = vadd.f32 %v1277_v38, %v1749_v28 }
 0x126   :  { %1046 = vst [vmem:[%s1811_s3] sm:$0xff] %v1009_v41  ;;  %v1012_v43 = vadd.f32 %v1323_v40, %v940_v14  ;;  %v1278_v45 = vpop.f32.mrb[24].mxu0 }
 0x127   :  { %v1324_v46 = vpop.f32.mrb[24].mxu1  ;;  %v1279_v47 = vpop.f32.mrb[25].mxu0 }
 0x128   :  { %1047 = vst [vmem:[%s1811_s3 + $0x8] sm:$0xff] %v1012_v43  ;;  %v1280_v48 = vadd.f32 %v1279_v47, %v1278_v45  ;;  %v1325_v26 = vpop.f32.mrb[25].mxu1  ;;  %v1281_v49 = vpop.f32.mrb[26].mxu0 }
 0x129   :  { %v1326_v50 = vadd.f32 %v1325_v26, %v1324_v46  ;;  %v1327_v51 = vpop.f32.mrb[26].mxu1  ;;  %v1282_v52 = vpop.f32.mrb[27].mxu0 }
 0x12a   :  { %v945_v28 = vadd.f32 %v1280_v48, %v1752_v42  ;;  %v1283_v53 = vadd.f32 %v1282_v52, %v1281_v49  ;;  %v1328_v54 = vpop.f32.mrb[27].mxu1 }
 0x12b   :  { %v1329_v55 = vadd.f32 %v1328_v54, %v1327_v51 }
 0x12c   :  { %v1017_v56 = vadd.f32 %v1326_v50, %v945_v28  ;;  %v948_v57 = vadd.f32 %v1283_v53, %v1755_v44 }
 0x12e   :  { %1048 = vst [vmem:[%s1811_s3 + $0x10] sm:$0xff] %v1017_v56  ;;  %v1020_v59 = vadd.f32 %v1329_v55, %v948_v57  ;;  %v1284_v61 = vpop.f32.mrb[28].mxu0 }
 0x12f   :  { %v1330_v62 = vpop.f32.mrb[28].mxu1  ;;  %v1285_v63 = vpop.f32.mrb[29].mxu0 }
 0x130   :  { %1049 = vst [vmem:[%s1811_s3 + $0x18] sm:$0xff] %v1020_v59  ;;  %v1286_v0 = vadd.f32 %v1285_v63, %v1284_v61  ;;  %v1331_v42 = vpop.f32.mrb[29].mxu1  ;;  %v1287_v1 = vpop.f32.mrb[30].mxu0 }
 0x131   :  { %v1332_v2 = vadd.f32 %v1331_v42, %v1330_v62  ;;  %v1333_v3 = vpop.f32.mrb[30].mxu1  ;;  %v1288_v4 = vpop.f32.mrb[31].mxu0 }
 0x132   :  { %v953_v44 = vadd.f32 %v1286_v0, %v1758_v58  ;;  %v1289_v5 = vadd.f32 %v1288_v4, %v1287_v1  ;;  %v1334_v6 = vpop.f32.mrb[31].mxu1 }
 0x133   :  { %v1335_v7 = vadd.f32 %v1334_v6, %v1333_v3 }
 0x134   :  { %v1025_v8 = vadd.f32 %v1332_v2, %v953_v44  ;;  %v956_v9 = vadd.f32 %v1289_v5, %v1761_v60 }
 0x136   :  { %1050 = vst [vmem:[%s1811_s3 + $0x20] sm:$0xff] %v1025_v8  ;;  %v1028_v11 = vadd.f32 %v1335_v7, %v956_v9  ;;  %v1290_v13 = vpop.f32.mrb[32].mxu0 }
 0x137   :  { %v1336_v15 = vpop.f32.mrb[32].mxu1  ;;  %v1291_v16 = vpop.f32.mrb[33].mxu0 }
 0x138   :  { %1051 = vst [vmem:[%s1811_s3 + $0x28] sm:$0xff] %v1028_v11  ;;  %v1292_v17 = vadd.f32 %v1291_v16, %v1290_v13  ;;  %v1337_v58 = vpop.f32.mrb[33].mxu1  ;;  %v1293_v18 = vpop.f32.mrb[34].mxu0 }
 0x139   :  { %v1338_v19 = vadd.f32 %v1337_v58, %v1336_v15  ;;  %v1339_v20 = vpop.f32.mrb[34].mxu1  ;;  %v1294_v21 = vpop.f32.mrb[35].mxu0 }
 0x13a   :  { %v961_v60 = vadd.f32 %v1292_v17, %v1764_v10  ;;  %v1295_v22 = vadd.f32 %v1294_v21, %v1293_v18  ;;  %v1340_v23 = vpop.f32.mrb[35].mxu1 }
 0x13b   :  { %v1341_v24 = vadd.f32 %v1340_v23, %v1339_v20 }
 0x13c   :  { %v1033_v27 = vadd.f32 %v1338_v19, %v961_v60  ;;  %v964_v29 = vadd.f32 %v1295_v22, %v1767_v12 }
 0x13e   :  { %1052 = vst [vmem:[%s1811_s3 + $0x30] sm:$0xff] %v1033_v27  ;;  %v1036_v30 = vadd.f32 %v1341_v24, %v964_v29  ;;  %v1296_v31 = vpop.f32.mrb[36].mxu0 }
 0x13f   :  { %v1342_v32 = vpop.f32.mrb[36].mxu1  ;;  %v1297_v33 = vpop.f32.mrb[37].mxu0 }
 0x140   :  { %1053 = vst [vmem:[%s1811_s3 + $0x38] sm:$0xff] %v1036_v30  ;;  %v1298_v34 = vadd.f32 %v1297_v33, %v1296_v31  ;;  %v1343_v10 = vpop.f32.mrb[37].mxu1  ;;  %v1299_v35 = vpop.f32.mrb[38].mxu0 }
 0x141   :  { %v1344_v36 = vadd.f32 %v1343_v10, %v1342_v32  ;;  %v1345_v37 = vpop.f32.mrb[38].mxu1  ;;  %v1300_v38 = vpop.f32.mrb[39].mxu0 }
 0x142   :  { %v969_v12 = vadd.f32 %v1298_v34, %v1770_v25  ;;  %v1346_v39 = vpop.f32.mrb[39].mxu1 }
 0x144   :  { %v1041_v40 = vadd.f32 %v1344_v36, %v969_v12 }
 0x146   :  { %1054 = vst [vmem:[%s1811_s3 + $0x40] sm:$0xff] %v1041_v40 }

</bundles_post_ra>
